<compile_context>
chip_gen: v5e
topology: v5e:2x2
jax: 0.10.0
libtpu: 0.0.40
codegen_flags: <defaults>
</compile_context>

<pallas_src>
import jax
import jax.numpy as jnp
import numpy as np
from jax.experimental import pallas as pl
from jax.experimental.pallas import tpu as pltpu

SOS_IDX = 1
B, S, H, V = 2, 8, 32, 16          # batch, src seq len, hidden, vocab
MAX_LEN = 8                        # decode steps
HI = jax.lax.Precision.HIGHEST


def make_decoder_kernel(fuse_out: bool):
    """Fully-unrolled greedy-decode kernel.

    fuse_out=True : out-proj columns ride along in the h-side matmul (144-lane
                    output; single pass on v6e/v7x 256-wide MXU).
    fuse_out=False: hproj kept at exactly 4H = 128 lanes; out-proj is a
                    separate push (v5e and older 128-wide MXUs).
    """

    def decoder_kernel(enc_ref, h0_ref, whall_ref, win_ref, ua_ref, bias_ref,
                       logp_ref, hfin_ref, attn_ref):
        f32 = jnp.float32

        keys = enc_ref[...].astype(f32)            # (B, S, H)
        biases = bias_ref[...].astype(f32)         # (5, 3H) packed
        kb = biases[0:1, :H]                       # Wa_b + Ua_b            (1, H)
        va = biases[1:2, :H]                       # Va weight row          (1, H)
        b_gi = biases[2:3, :]                      # [bir+bhr, biz+bhz, bin](1, 3H)
        b_hn = biases[3:4, :H]                     # b_hn                   (1, H)
        ob = biases[4:5, :V]                       # out bias               (1, V)

        # Ua(keys) (+ folded Wa_b + Ua_b) is loop-invariant -> hoist once.
        kproj = jax.lax.dot_general(
            keys, ua_ref[...], (((2,), (0,)), ((), ())),
            preferred_element_type=f32, precision=HI) + kb[None]          # (B,S,H)

        h = h0_ref[...].astype(f32)                                       # (B, H)
        iota_v = jax.lax.broadcasted_iota(jnp.int32, (B, V), 1)
        # step-0 input is the SOS one-hot (embedding folded into win_fused)
        x = (iota_v == SOS_IDX).astype(f32)                               # (B, V)

        def finish_step(logits):
            """log-softmax + greedy one-hot feedback from (B, V) logits."""
            mx = jnp.max(logits, axis=-1, keepdims=True)
            idx = jnp.min(jnp.where(logits == mx, iota_v, V),
                          axis=-1, keepdims=True)                         # first argmax
            onehot = (iota_v == idx).astype(f32)
            lse = jnp.log(jnp.sum(jnp.exp(logits - mx), axis=-1, keepdims=True))
            return logits - mx - lse, onehot

        logp_rows = []   # MAX_LEN x (B, V) kept register-resident
        attn_rows = []   # MAX_LEN x (B, S) kept register-resident

        for i in range(MAX_LEN):
            # h-side matmul; weights re-read from VMEM at each use (vld slots
            # idle) to avoid pinning weight vregs across the unrolled loop.
            if fuse_out:
                hp = jnp.dot(h, whall_ref[...],
                             preferred_element_type=f32, precision=HI)    # (B, 4H+V)
                if i > 0:
                    # previous step's logits come out of this push
                    logp, x = finish_step(hp[:, 4 * H:] + ob)
                    logp_rows.append(logp)
                qproj = hp[:, :H]
                gh = hp[:, H:4 * H]
            else:
                hp = jnp.dot(h, whall_ref[:, :4 * H],
                             preferred_element_type=f32, precision=HI)    # (B, 128)
                qproj = hp[:, :H]
                gh = hp[:, H:]

            # Bahdanau attention: Va(tanh(Wa(q) + Ua(keys))) -> softmax -> bmm.
            # Intentionally VPU multiply + XLU reduce (not MXU): push latency
            # would land on the serial chain for no throughput gain.
            t = jnp.tanh(qproj[:, None, :] + kproj)                        # (B, S, H)
            scores = jnp.sum(t * va[None], axis=-1)                        # (B, S)
            m = jnp.max(scores, axis=-1, keepdims=True)
            e = jnp.exp(scores - m)
            denom = jnp.sum(e, axis=-1, keepdims=True)
            inv = pl.reciprocal(denom, approx=True)
            inv = inv * (2.0 - denom * inv)       # Newton step: required for tolerance
            w = e * inv                                                    # softmax (B, S)
            attn_rows.append(w)
            context = jnp.sum(w[:, :, None] * keys, axis=1)                # (B, H)

            # GRU cell; embedding folded into the input-gate weights so the
            # one-hot feeds the gate matmul directly.
            xin = jnp.concatenate([x, context], axis=-1)                   # (B, V+H)
            gi = jnp.dot(xin, win_ref[...],
                         preferred_element_type=f32, precision=HI) + b_gi  # (B, 3H)
            grz = jax.nn.sigmoid(gi[:, :2 * H] + gh[:, :2 * H])
            r = grz[:, :H]
            z = grz[:, H:]
            n = jnp.tanh(gi[:, 2 * H:] + r * (gh[:, 2 * H:] + b_hn))
            h = (1.0 - z) * n + z * h

            if not fuse_out:
                logits = jnp.dot(h, whall_ref[:, 4 * H:],
                                 preferred_element_type=f32, precision=HI) + ob
                logp, x = finish_step(logits)
                logp_rows.append(logp)

        if fuse_out:
            # standalone out-proj for the final step (no step MAX_LEN hproj)
            logits = jnp.dot(h, whall_ref[:, 4 * H:],
                             preferred_element_type=f32, precision=HI) + ob
            logp, _ = finish_step(logits)
            logp_rows.append(logp)

        # one lane-dense store per output (no per-step masked vst, no
        # store->load->store round trip for the log-softmax finalize).
        hfin_ref[...] = h
        logp_ref[...] = jnp.concatenate(logp_rows, axis=-1)   # (B, MAX_LEN*V) = (2, 128)
        attn_ref[...] = jnp.concatenate(attn_rows, axis=-1)   # (B, MAX_LEN*S) = (2, 64)

    return decoder_kernel


def run_decoder(params, encoder_outputs, encoder_hidden, fuse_out=None):
    (emb, Wa_w, Wa_b, Ua_w, Ua_b, Va_w, Va_b,
     W_ih, W_hh, b_ih, b_hh, out_w, out_b) = params

    if fuse_out is None:
        # 256-lane MXU (v6e / v7x): fuse out_w into the h-side matmul.
        # 128-lane MXU (v5e and older): keep hproj at exactly 128 lanes.
        kind = jax.devices()[0].device_kind.lower()
        fuse_out = any(tag in kind for tag in ("v6", "v7", "7x"))

    def pad3h(v):
        return jnp.concatenate([v, jnp.zeros((3 * H - v.shape[0],), jnp.float32)])

    # biases folded host-side (Va bias dropped: softmax shift-invariant)
    kb = Wa_b + Ua_b
    b_gi = b_ih + jnp.concatenate([b_hh[:2 * H], jnp.zeros((H,), jnp.float32)])
    bias_pack = jnp.stack([pad3h(kb), pad3h(Va_w[0]), b_gi,
                           pad3h(b_hh[2 * H:]), pad3h(out_b)], axis=0)      # (5, 3H)

    # [Wa^T | W_hh^T | W_out^T]  (H, 4H+V); kernel either uses the trailing V
    # columns fused (v6e/v7x) or as a separate 128-aligned slice (v5e).
    w_hall = jnp.concatenate([Wa_w.T, W_hh.T, out_w.T], axis=1)

    # embedding folded into the input-side GRU gate weights:
    # gi = [onehot | context] @ [emb @ W_ih[:, :H].T ; W_ih[:, H:].T]
    win_fused = jnp.concatenate(
        [jnp.dot(emb, W_ih[:, :H].T, precision=HI), W_ih[:, H:].T], axis=0)  # (V+H, 3H)

    args = (encoder_outputs, encoder_hidden[0], w_hall, win_fused, Ua_w.T, bias_pack)

    vmem = lambda: pl.BlockSpec(memory_space=pltpu.MemorySpace.VMEM)
    # Grid-less call = one TensorCore. For v7x multi-sequence workloads, add a
    # leading 'parallel' grid axis over independent sequences; padding B up to
    # 8 (f32 sublane tile) is also free throughput if the caller allows it.
    logp_p, h_fin, attn_p = pl.pallas_call(
        make_decoder_kernel(fuse_out),
        out_shape=(
            jax.ShapeDtypeStruct((B, MAX_LEN * V), jnp.float32),
            jax.ShapeDtypeStruct((B, H), jnp.float32),
            jax.ShapeDtypeStruct((B, MAX_LEN * S), jnp.float32),
        ),
        in_specs=[vmem() for _ in range(len(args))],
        out_specs=(vmem(), vmem(), vmem()),
    )(*args)

    decoder_outputs = logp_p.reshape(B, MAX_LEN, V)    # pure reshape, no transpose
    attentions = attn_p.reshape(B, MAX_LEN, S)
    decoder_hidden = h_fin[None, :, :]                 # (1, B, H)
    return decoder_outputs, decoder_hidden, attentions


def reference_decoder(params, enc, h0):
    """Pure-JAX mirror of the PyTorch forward (eval mode, greedy decoding)."""
    (emb, Wa_w, Wa_b, Ua_w, Ua_b, Va_w, Va_b,
     W_ih, W_hh, b_ih, b_hh, out_w, out_b) = params
    h = h0[0]
    tok = jnp.full((enc.shape[0],), SOS_IDX, dtype=jnp.int32)
    logits_list, attn_list = [], []
    for _ in range(MAX_LEN):
        embedded = emb[tok]
        q = jnp.dot(h, Wa_w.T, precision=HI) + Wa_b
        k = jnp.einsum('bsh,oh->bso', enc, Ua_w, precision=HI) + Ua_b
        t = jnp.tanh(q[:, None, :] + k)
        scores = (jnp.einsum('bso,vo->bsv', t, Va_w, precision=HI) + Va_b)[..., 0]
        w = jax.nn.softmax(scores, axis=-1)
        context = jnp.einsum('bs,bsh->bh', w, enc, precision=HI)
        x = jnp.concatenate([embedded, context], axis=-1)
        gi = jnp.dot(x, W_ih.T, precision=HI) + b_ih
        gh = jnp.dot(h, W_hh.T, precision=HI) + b_hh
        i_r, i_z, i_n = gi[:, :H], gi[:, H:2 * H], gi[:, 2 * H:]
        h_r, h_z, h_n = gh[:, :H], gh[:, H:2 * H], gh[:, 2 * H:]
        r = jax.nn.sigmoid(i_r + h_r)
        z = jax.nn.sigmoid(i_z + h_z)
        n = jnp.tanh(i_n + r * h_n)
        h = (1 - z) * n + z * h
        logits = jnp.dot(h, out_w.T, precision=HI) + out_b
        logits_list.append(logits)
        attn_list.append(w)
        tok = jnp.argmax(logits, axis=-1).astype(jnp.int32)
    logp = jax.nn.log_softmax(jnp.stack(logits_list, axis=1), axis=-1)
    return logp, h[None], jnp.stack(attn_list, axis=1)


def init_params(key):
    ks = jax.random.split(key, 13)

    def u(k, shape, fan_in):
        bound = 1.0 / np.sqrt(fan_in)
        return jax.random.uniform(k, shape, jnp.float32, -bound, bound)

    emb = jax.random.normal(ks[0], (V, H), jnp.float32)
    Wa_w, Wa_b = u(ks[1], (H, H), H), u(ks[2], (H,), H)
    Ua_w, Ua_b = u(ks[3], (H, H), H), u(ks[4], (H,), H)
    Va_w, Va_b = u(ks[5], (1, H), H), u(ks[6], (1,), H)
    W_ih, b_ih = u(ks[7], (3 * H, 2 * H), H), u(ks[8], (3 * H,), H)
    W_hh, b_hh = u(ks[9], (3 * H, H), H), u(ks[10], (3 * H,), H)
    out_w, out_b = u(ks[11], (V, H), H), u(ks[12], (V,), H)
    return (emb, Wa_w, Wa_b, Ua_w, Ua_b, Va_w, Va_b,
            W_ih, W_hh, b_ih, b_hh, out_w, out_b)


if __name__ == "__main__":
    key = jax.random.PRNGKey(0)
    kp, ke, kh = jax.random.split(key, 3)
    params = init_params(kp)
    encoder_outputs = jax.random.normal(ke, (B, S, H), jnp.float32)
    encoder_hidden = jax.random.normal(kh, (1, B, H), jnp.float32)

    dec_out, dec_hid, attn = run_decoder(params, encoder_outputs, encoder_hidden)
    jax.block_until_ready((dec_out, dec_hid, attn))

    ref_out, ref_hid, ref_attn = reference_decoder(params, encoder_outputs, encoder_hidden)
    np.testing.assert_allclose(np.asarray(dec_out), np.asarray(ref_out), rtol=5e-4, atol=5e-4)
    np.testing.assert_allclose(np.asarray(dec_hid), np.asarray(ref_hid), rtol=5e-4, atol=5e-4)
    np.testing.assert_allclose(np.asarray(attn), np.asarray(ref_attn), rtol=5e-4, atol=5e-4)

    assert dec_out.shape == (B, MAX_LEN, V)
    assert dec_hid.shape == (1, B, H)
    assert attn.shape == (B, MAX_LEN, S)
    print("KERNEL_OK")
</pallas_src>

<mosaic_0001>
module attributes {stable_mosaic.version = 11 : i64} {
  func.func @decoder_kernel(%arg0: memref<2x8x32xf32, #tpu.memory_space<vmem>>, %arg1: memref<2x32xf32, #tpu.memory_space<vmem>>, %arg2: memref<32x144xf32, #tpu.memory_space<vmem>>, %arg3: memref<48x96xf32, #tpu.memory_space<vmem>>, %arg4: memref<32x32xf32, #tpu.memory_space<vmem>>, %arg5: memref<5x96xf32, #tpu.memory_space<vmem>>, %arg6: memref<2x128xf32, #tpu.memory_space<vmem>>, %arg7: memref<2x32xf32, #tpu.memory_space<vmem>>, %arg8: memref<2x64xf32, #tpu.memory_space<vmem>>) attributes {dimension_semantics = [], scalar_prefetch = 0 : i64, scratch_operands = 0 : i64, tpu.core_type = #tpu.core_type<tc>} {
    %c0 = arith.constant 0 : index
    %c0_0 = arith.constant 0 : index
    %c0_1 = arith.constant 0 : index
    %0 = vector.load %arg0[%c0, %c0_0, %c0_1] : memref<2x8x32xf32, #tpu.memory_space<vmem>>, vector<2x8x32xf32>
    %c0_2 = arith.constant 0 : index
    %c0_3 = arith.constant 0 : index
    %1 = vector.load %arg5[%c0_2, %c0_3] : memref<5x96xf32, #tpu.memory_space<vmem>>, vector<5x96xf32>
    %2 = vector.extract_strided_slice %1 {offsets = [0, 0], sizes = [1, 32], strides = [1, 1]} : vector<5x96xf32> to vector<1x32xf32>
    %3 = vector.extract_strided_slice %1 {offsets = [1, 0], sizes = [1, 32], strides = [1, 1]} : vector<5x96xf32> to vector<1x32xf32>
    %4 = vector.extract_strided_slice %1 {offsets = [2, 0], sizes = [1, 96], strides = [1, 1]} : vector<5x96xf32> to vector<1x96xf32>
    %5 = vector.extract_strided_slice %1 {offsets = [3, 0], sizes = [1, 32], strides = [1, 1]} : vector<5x96xf32> to vector<1x32xf32>
    %6 = vector.extract_strided_slice %1 {offsets = [4, 0], sizes = [1, 16], strides = [1, 1]} : vector<5x96xf32> to vector<1x16xf32>
    %c0_4 = arith.constant 0 : index
    %c0_5 = arith.constant 0 : index
    %7 = vector.load %arg4[%c0_4, %c0_5] : memref<32x32xf32, #tpu.memory_space<vmem>>, vector<32x32xf32>
    %cst = arith.constant dense<0.000000e+00> : vector<2x8x32xf32>
    %8 = tpu.matmul %0, %7, %cst {dimension_numbers = #tpu.dot_dimension_numbers<[2], [0], [0, 1], [1], [0, 0, 0, 1, 1, 1], [], []>, precision = #tpu.contract_precision<fp32>} : vector<2x8x32xf32>, vector<32x32xf32>, vector<2x8x32xf32> -> vector<2x8x32xf32>
    %9 = vector.shape_cast %2 : vector<1x32xf32> to vector<1x1x32xf32>
    %10 = vector.broadcast %9 : vector<1x1x32xf32> to vector<2x8x32xf32>
    %11 = arith.addf %8, %10 : vector<2x8x32xf32>
    %c0_6 = arith.constant 0 : index
    %c0_7 = arith.constant 0 : index
    %12 = vector.load %arg1[%c0_6, %c0_7] : memref<2x32xf32, #tpu.memory_space<vmem>>, vector<2x32xf32>
    %13 = tpu.iota {dimensions = array<i32: 1>} : vector<2x16xi32>
    %c1_i32 = arith.constant 1 : i32
    %14 = vector.broadcast %c1_i32 : i32 to vector<2x16xi32>
    %15 = arith.cmpi eq, %13, %14 : vector<2x16xi32>
    %16 = arith.extui %15 : vector<2x16xi1> to vector<2x16xi32>
    %17 = arith.sitofp %16 : vector<2x16xi32> to vector<2x16xf32>
    %c0_8 = arith.constant 0 : index
    %c0_9 = arith.constant 0 : index
    %18 = vector.load %arg2[%c0_8, %c0_9] : memref<32x144xf32, #tpu.memory_space<vmem>>, vector<32x128xf32>
    %cst_10 = arith.constant dense<0.000000e+00> : vector<2x128xf32>
    %19 = tpu.matmul %12, %18, %cst_10 {dimension_numbers = #tpu.dot_dimension_numbers<[1], [0], [0], [1], [0, 0, 1, 1], [], []>, precision = #tpu.contract_precision<fp32>} : vector<2x32xf32>, vector<32x128xf32>, vector<2x128xf32> -> vector<2x128xf32>
    %20 = vector.extract_strided_slice %19 {offsets = [0, 0], sizes = [2, 32], strides = [1, 1]} : vector<2x128xf32> to vector<2x32xf32>
    %21 = vector.extract_strided_slice %19 {offsets = [0, 32], sizes = [2, 96], strides = [1, 1]} : vector<2x128xf32> to vector<2x96xf32>
    %22 = vector.shape_cast %20 : vector<2x32xf32> to vector<2x1x32xf32>
    %23 = vector.broadcast %22 : vector<2x1x32xf32> to vector<2x8x32xf32>
    %24 = arith.addf %23, %11 : vector<2x8x32xf32>
    %25 = math.tanh %24 : vector<2x8x32xf32>
    %26 = vector.shape_cast %3 : vector<1x32xf32> to vector<1x1x32xf32>
    %27 = vector.broadcast %26 : vector<1x1x32xf32> to vector<2x8x32xf32>
    %28 = arith.mulf %25, %27 : vector<2x8x32xf32>
    %cst_11 = arith.constant dense<0.000000e+00> : vector<2x8xf32>
    %29 = vector.multi_reduction <add>, %28, %cst_11 [2] : vector<2x8x32xf32> to vector<2x8xf32>
    %cst_12 = arith.constant dense<0xFF800000> : vector<2xf32>
    %30 = vector.multi_reduction <maximumf>, %29, %cst_12 [1] : vector<2x8xf32> to vector<2xf32>
    %31 = vector.shape_cast %30 : vector<2xf32> to vector<2x1xf32>
    %32 = vector.broadcast %31 : vector<2x1xf32> to vector<2x8xf32>
    %33 = arith.subf %29, %32 : vector<2x8xf32>
    %34 = math.exp %33 : vector<2x8xf32>
    %cst_13 = arith.constant dense<0.000000e+00> : vector<2xf32>
    %35 = vector.multi_reduction <add>, %34, %cst_13 [1] : vector<2x8xf32> to vector<2xf32>
    %36 = vector.shape_cast %35 : vector<2xf32> to vector<2x1xf32>
    %37 = tpu.reciprocal %36 {approx = true} : vector<2x1xf32> -> vector<2x1xf32>
    %38 = arith.mulf %36, %37 : vector<2x1xf32>
    %cst_14 = arith.constant 2.000000e+00 : f32
    %39 = vector.broadcast %cst_14 : f32 to vector<2x1xf32>
    %40 = arith.subf %39, %38 : vector<2x1xf32>
    %41 = arith.mulf %37, %40 : vector<2x1xf32>
    %42 = vector.broadcast %41 : vector<2x1xf32> to vector<2x8xf32>
    %43 = arith.mulf %34, %42 : vector<2x8xf32>
    %44 = vector.shape_cast %43 : vector<2x8xf32> to vector<2x8x1xf32>
    %45 = vector.broadcast %44 : vector<2x8x1xf32> to vector<2x8x32xf32>
    %46 = arith.mulf %45, %0 : vector<2x8x32xf32>
    %cst_15 = arith.constant dense<0.000000e+00> : vector<2x32xf32>
    %47 = vector.multi_reduction <add>, %46, %cst_15 [1] : vector<2x8x32xf32> to vector<2x32xf32>
    %48 = tpu.concatenate %17, %47 in 1 : vector<2x16xf32>, vector<2x32xf32> -> vector<2x48xf32>
    %c0_16 = arith.constant 0 : index
    %c0_17 = arith.constant 0 : index
    %49 = vector.load %arg3[%c0_16, %c0_17] : memref<48x96xf32, #tpu.memory_space<vmem>>, vector<48x96xf32>
    %cst_18 = arith.constant dense<0.000000e+00> : vector<2x96xf32>
    %50 = tpu.matmul %48, %49, %cst_18 {dimension_numbers = #tpu.dot_dimension_numbers<[1], [0], [0], [1], [0, 0, 1, 1], [], []>, precision = #tpu.contract_precision<fp32>} : vector<2x48xf32>, vector<48x96xf32>, vector<2x96xf32> -> vector<2x96xf32>
    %51 = vector.broadcast %4 : vector<1x96xf32> to vector<2x96xf32>
    %52 = arith.addf %50, %51 : vector<2x96xf32>
    %53 = vector.extract_strided_slice %52 {offsets = [0, 0], sizes = [2, 64], strides = [1, 1]} : vector<2x96xf32> to vector<2x64xf32>
    %54 = vector.extract_strided_slice %21 {offsets = [0, 0], sizes = [2, 64], strides = [1, 1]} : vector<2x96xf32> to vector<2x64xf32>
    %55 = arith.addf %53, %54 : vector<2x64xf32>
    %56 = arith.negf %55 : vector<2x64xf32>
    %57 = math.exp %56 : vector<2x64xf32>
    %cst_19 = arith.constant 1.000000e+00 : f32
    %58 = vector.broadcast %cst_19 : f32 to vector<2x64xf32>
    %59 = arith.addf %58, %57 : vector<2x64xf32>
    %60 = arith.divf %58, %59 : vector<2x64xf32>
    %61 = vector.extract_strided_slice %60 {offsets = [0, 0], sizes = [2, 32], strides = [1, 1]} : vector<2x64xf32> to vector<2x32xf32>
    %62 = vector.extract_strided_slice %60 {offsets = [0, 32], sizes = [2, 32], strides = [1, 1]} : vector<2x64xf32> to vector<2x32xf32>
    %63 = vector.extract_strided_slice %52 {offsets = [0, 64], sizes = [2, 32], strides = [1, 1]} : vector<2x96xf32> to vector<2x32xf32>
    %64 = vector.extract_strided_slice %21 {offsets = [0, 64], sizes = [2, 32], strides = [1, 1]} : vector<2x96xf32> to vector<2x32xf32>
    %65 = vector.broadcast %5 : vector<1x32xf32> to vector<2x32xf32>
    %66 = arith.addf %64, %65 : vector<2x32xf32>
    %67 = arith.mulf %61, %66 : vector<2x32xf32>
    %68 = arith.addf %63, %67 : vector<2x32xf32>
    %69 = math.tanh %68 : vector<2x32xf32>
    %cst_20 = arith.constant 1.000000e+00 : f32
    %70 = vector.broadcast %cst_20 : f32 to vector<2x32xf32>
    %71 = arith.subf %70, %62 : vector<2x32xf32>
    %72 = arith.mulf %71, %69 : vector<2x32xf32>
    %73 = arith.mulf %62, %12 : vector<2x32xf32>
    %74 = arith.addf %72, %73 : vector<2x32xf32>
    %c0_21 = arith.constant 0 : index
    %c128 = arith.constant 128 : index
    %75 = vector.load %arg2[%c0_21, %c128] : memref<32x144xf32, #tpu.memory_space<vmem>>, vector<32x16xf32>
    %cst_22 = arith.constant dense<0.000000e+00> : vector<2x16xf32>
    %76 = tpu.matmul %74, %75, %cst_22 {dimension_numbers = #tpu.dot_dimension_numbers<[1], [0], [0], [1], [0, 0, 1, 1], [], []>, precision = #tpu.contract_precision<fp32>} : vector<2x32xf32>, vector<32x16xf32>, vector<2x16xf32> -> vector<2x16xf32>
    %77 = vector.broadcast %6 : vector<1x16xf32> to vector<2x16xf32>
    %78 = arith.addf %76, %77 : vector<2x16xf32>
    %cst_23 = arith.constant dense<0xFF800000> : vector<2xf32>
    %79 = vector.multi_reduction <maximumf>, %78, %cst_23 [1] : vector<2x16xf32> to vector<2xf32>
    %80 = vector.shape_cast %79 : vector<2xf32> to vector<2x1xf32>
    %81 = vector.broadcast %80 : vector<2x1xf32> to vector<2x16xf32>
    %82 = arith.cmpf oeq, %78, %81 : vector<2x16xf32>
    %c16_i32 = arith.constant 16 : i32
    %83 = vector.broadcast %c16_i32 : i32 to vector<2x16xi32>
    %84 = arith.select %82, %13, %83 : vector<2x16xi1>, vector<2x16xi32>
    %cst_24 = arith.constant dense<2147483647> : vector<2xi32>
    %85 = vector.multi_reduction <minsi>, %84, %cst_24 [1] : vector<2x16xi32> to vector<2xi32>
    %86 = vector.shape_cast %85 : vector<2xi32> to vector<2x1xi32>
    %87 = vector.broadcast %86 : vector<2x1xi32> to vector<2x16xi32>
    %88 = arith.cmpi eq, %13, %87 : vector<2x16xi32>
    %89 = arith.extui %88 : vector<2x16xi1> to vector<2x16xi32>
    %90 = arith.sitofp %89 : vector<2x16xi32> to vector<2x16xf32>
    %91 = vector.broadcast %80 : vector<2x1xf32> to vector<2x16xf32>
    %92 = arith.subf %78, %91 : vector<2x16xf32>
    %93 = math.exp %92 : vector<2x16xf32>
    %cst_25 = arith.constant dense<0.000000e+00> : vector<2xf32>
    %94 = vector.multi_reduction <add>, %93, %cst_25 [1] : vector<2x16xf32> to vector<2xf32>
    %95 = vector.shape_cast %94 : vector<2xf32> to vector<2x1xf32>
    %96 = math.log %95 : vector<2x1xf32>
    %97 = vector.broadcast %80 : vector<2x1xf32> to vector<2x16xf32>
    %98 = arith.subf %78, %97 : vector<2x16xf32>
    %99 = vector.broadcast %96 : vector<2x1xf32> to vector<2x16xf32>
    %100 = arith.subf %98, %99 : vector<2x16xf32>
    %c0_26 = arith.constant 0 : index
    %c0_27 = arith.constant 0 : index
    %101 = vector.load %arg2[%c0_26, %c0_27] : memref<32x144xf32, #tpu.memory_space<vmem>>, vector<32x128xf32>
    %cst_28 = arith.constant dense<0.000000e+00> : vector<2x128xf32>
    %102 = tpu.matmul %74, %101, %cst_28 {dimension_numbers = #tpu.dot_dimension_numbers<[1], [0], [0], [1], [0, 0, 1, 1], [], []>, precision = #tpu.contract_precision<fp32>} : vector<2x32xf32>, vector<32x128xf32>, vector<2x128xf32> -> vector<2x128xf32>
    %103 = vector.extract_strided_slice %102 {offsets = [0, 0], sizes = [2, 32], strides = [1, 1]} : vector<2x128xf32> to vector<2x32xf32>
    %104 = vector.extract_strided_slice %102 {offsets = [0, 32], sizes = [2, 96], strides = [1, 1]} : vector<2x128xf32> to vector<2x96xf32>
    %105 = vector.shape_cast %103 : vector<2x32xf32> to vector<2x1x32xf32>
    %106 = vector.broadcast %105 : vector<2x1x32xf32> to vector<2x8x32xf32>
    %107 = arith.addf %106, %11 : vector<2x8x32xf32>
    %108 = math.tanh %107 : vector<2x8x32xf32>
    %109 = vector.shape_cast %3 : vector<1x32xf32> to vector<1x1x32xf32>
    %110 = vector.broadcast %109 : vector<1x1x32xf32> to vector<2x8x32xf32>
    %111 = arith.mulf %108, %110 : vector<2x8x32xf32>
    %cst_29 = arith.constant dense<0.000000e+00> : vector<2x8xf32>
    %112 = vector.multi_reduction <add>, %111, %cst_29 [2] : vector<2x8x32xf32> to vector<2x8xf32>
    %cst_30 = arith.constant dense<0xFF800000> : vector<2xf32>
    %113 = vector.multi_reduction <maximumf>, %112, %cst_30 [1] : vector<2x8xf32> to vector<2xf32>
    %114 = vector.shape_cast %113 : vector<2xf32> to vector<2x1xf32>
    %115 = vector.broadcast %114 : vector<2x1xf32> to vector<2x8xf32>
    %116 = arith.subf %112, %115 : vector<2x8xf32>
    %117 = math.exp %116 : vector<2x8xf32>
    %cst_31 = arith.constant dense<0.000000e+00> : vector<2xf32>
    %118 = vector.multi_reduction <add>, %117, %cst_31 [1] : vector<2x8xf32> to vector<2xf32>
    %119 = vector.shape_cast %118 : vector<2xf32> to vector<2x1xf32>
    %120 = tpu.reciprocal %119 {approx = true} : vector<2x1xf32> -> vector<2x1xf32>
    %121 = arith.mulf %119, %120 : vector<2x1xf32>
    %cst_32 = arith.constant 2.000000e+00 : f32
    %122 = vector.broadcast %cst_32 : f32 to vector<2x1xf32>
    %123 = arith.subf %122, %121 : vector<2x1xf32>
    %124 = arith.mulf %120, %123 : vector<2x1xf32>
    %125 = vector.broadcast %124 : vector<2x1xf32> to vector<2x8xf32>
    %126 = arith.mulf %117, %125 : vector<2x8xf32>
    %127 = vector.shape_cast %126 : vector<2x8xf32> to vector<2x8x1xf32>
    %128 = vector.broadcast %127 : vector<2x8x1xf32> to vector<2x8x32xf32>
    %129 = arith.mulf %128, %0 : vector<2x8x32xf32>
    %cst_33 = arith.constant dense<0.000000e+00> : vector<2x32xf32>
    %130 = vector.multi_reduction <add>, %129, %cst_33 [1] : vector<2x8x32xf32> to vector<2x32xf32>
    %131 = tpu.concatenate %90, %130 in 1 : vector<2x16xf32>, vector<2x32xf32> -> vector<2x48xf32>
    %c0_34 = arith.constant 0 : index
    %c0_35 = arith.constant 0 : index
    %132 = vector.load %arg3[%c0_34, %c0_35] : memref<48x96xf32, #tpu.memory_space<vmem>>, vector<48x96xf32>
    %cst_36 = arith.constant dense<0.000000e+00> : vector<2x96xf32>
    %133 = tpu.matmul %131, %132, %cst_36 {dimension_numbers = #tpu.dot_dimension_numbers<[1], [0], [0], [1], [0, 0, 1, 1], [], []>, precision = #tpu.contract_precision<fp32>} : vector<2x48xf32>, vector<48x96xf32>, vector<2x96xf32> -> vector<2x96xf32>
    %134 = vector.broadcast %4 : vector<1x96xf32> to vector<2x96xf32>
    %135 = arith.addf %133, %134 : vector<2x96xf32>
    %136 = vector.extract_strided_slice %135 {offsets = [0, 0], sizes = [2, 64], strides = [1, 1]} : vector<2x96xf32> to vector<2x64xf32>
    %137 = vector.extract_strided_slice %104 {offsets = [0, 0], sizes = [2, 64], strides = [1, 1]} : vector<2x96xf32> to vector<2x64xf32>
    %138 = arith.addf %136, %137 : vector<2x64xf32>
    %139 = arith.negf %138 : vector<2x64xf32>
    %140 = math.exp %139 : vector<2x64xf32>
    %cst_37 = arith.constant 1.000000e+00 : f32
    %141 = vector.broadcast %cst_37 : f32 to vector<2x64xf32>
    %142 = arith.addf %141, %140 : vector<2x64xf32>
    %143 = arith.divf %141, %142 : vector<2x64xf32>
    %144 = vector.extract_strided_slice %143 {offsets = [0, 0], sizes = [2, 32], strides = [1, 1]} : vector<2x64xf32> to vector<2x32xf32>
    %145 = vector.extract_strided_slice %143 {offsets = [0, 32], sizes = [2, 32], strides = [1, 1]} : vector<2x64xf32> to vector<2x32xf32>
    %146 = vector.extract_strided_slice %135 {offsets = [0, 64], sizes = [2, 32], strides = [1, 1]} : vector<2x96xf32> to vector<2x32xf32>
    %147 = vector.extract_strided_slice %104 {offsets = [0, 64], sizes = [2, 32], strides = [1, 1]} : vector<2x96xf32> to vector<2x32xf32>
    %148 = vector.broadcast %5 : vector<1x32xf32> to vector<2x32xf32>
    %149 = arith.addf %147, %148 : vector<2x32xf32>
    %150 = arith.mulf %144, %149 : vector<2x32xf32>
    %151 = arith.addf %146, %150 : vector<2x32xf32>
    %152 = math.tanh %151 : vector<2x32xf32>
    %cst_38 = arith.constant 1.000000e+00 : f32
    %153 = vector.broadcast %cst_38 : f32 to vector<2x32xf32>
    %154 = arith.subf %153, %145 : vector<2x32xf32>
    %155 = arith.mulf %154, %152 : vector<2x32xf32>
    %156 = arith.mulf %145, %74 : vector<2x32xf32>
    %157 = arith.addf %155, %156 : vector<2x32xf32>
    %c0_39 = arith.constant 0 : index
    %c128_40 = arith.constant 128 : index
    %158 = vector.load %arg2[%c0_39, %c128_40] : memref<32x144xf32, #tpu.memory_space<vmem>>, vector<32x16xf32>
    %cst_41 = arith.constant dense<0.000000e+00> : vector<2x16xf32>
    %159 = tpu.matmul %157, %158, %cst_41 {dimension_numbers = #tpu.dot_dimension_numbers<[1], [0], [0], [1], [0, 0, 1, 1], [], []>, precision = #tpu.contract_precision<fp32>} : vector<2x32xf32>, vector<32x16xf32>, vector<2x16xf32> -> vector<2x16xf32>
    %160 = vector.broadcast %6 : vector<1x16xf32> to vector<2x16xf32>
    %161 = arith.addf %159, %160 : vector<2x16xf32>
    %cst_42 = arith.constant dense<0xFF800000> : vector<2xf32>
    %162 = vector.multi_reduction <maximumf>, %161, %cst_42 [1] : vector<2x16xf32> to vector<2xf32>
    %163 = vector.shape_cast %162 : vector<2xf32> to vector<2x1xf32>
    %164 = vector.broadcast %163 : vector<2x1xf32> to vector<2x16xf32>
    %165 = arith.cmpf oeq, %161, %164 : vector<2x16xf32>
    %c16_i32_43 = arith.constant 16 : i32
    %166 = vector.broadcast %c16_i32_43 : i32 to vector<2x16xi32>
    %167 = arith.select %165, %13, %166 : vector<2x16xi1>, vector<2x16xi32>
    %cst_44 = arith.constant dense<2147483647> : vector<2xi32>
    %168 = vector.multi_reduction <minsi>, %167, %cst_44 [1] : vector<2x16xi32> to vector<2xi32>
    %169 = vector.shape_cast %168 : vector<2xi32> to vector<2x1xi32>
    %170 = vector.broadcast %169 : vector<2x1xi32> to vector<2x16xi32>
    %171 = arith.cmpi eq, %13, %170 : vector<2x16xi32>
    %172 = arith.extui %171 : vector<2x16xi1> to vector<2x16xi32>
    %173 = arith.sitofp %172 : vector<2x16xi32> to vector<2x16xf32>
    %174 = vector.broadcast %163 : vector<2x1xf32> to vector<2x16xf32>
    %175 = arith.subf %161, %174 : vector<2x16xf32>
    %176 = math.exp %175 : vector<2x16xf32>
    %cst_45 = arith.constant dense<0.000000e+00> : vector<2xf32>
    %177 = vector.multi_reduction <add>, %176, %cst_45 [1] : vector<2x16xf32> to vector<2xf32>
    %178 = vector.shape_cast %177 : vector<2xf32> to vector<2x1xf32>
    %179 = math.log %178 : vector<2x1xf32>
    %180 = vector.broadcast %163 : vector<2x1xf32> to vector<2x16xf32>
    %181 = arith.subf %161, %180 : vector<2x16xf32>
    %182 = vector.broadcast %179 : vector<2x1xf32> to vector<2x16xf32>
    %183 = arith.subf %181, %182 : vector<2x16xf32>
    %c0_46 = arith.constant 0 : index
    %c0_47 = arith.constant 0 : index
    %184 = vector.load %arg2[%c0_46, %c0_47] : memref<32x144xf32, #tpu.memory_space<vmem>>, vector<32x128xf32>
    %cst_48 = arith.constant dense<0.000000e+00> : vector<2x128xf32>
    %185 = tpu.matmul %157, %184, %cst_48 {dimension_numbers = #tpu.dot_dimension_numbers<[1], [0], [0], [1], [0, 0, 1, 1], [], []>, precision = #tpu.contract_precision<fp32>} : vector<2x32xf32>, vector<32x128xf32>, vector<2x128xf32> -> vector<2x128xf32>
    %186 = vector.extract_strided_slice %185 {offsets = [0, 0], sizes = [2, 32], strides = [1, 1]} : vector<2x128xf32> to vector<2x32xf32>
    %187 = vector.extract_strided_slice %185 {offsets = [0, 32], sizes = [2, 96], strides = [1, 1]} : vector<2x128xf32> to vector<2x96xf32>
    %188 = vector.shape_cast %186 : vector<2x32xf32> to vector<2x1x32xf32>
    %189 = vector.broadcast %188 : vector<2x1x32xf32> to vector<2x8x32xf32>
    %190 = arith.addf %189, %11 : vector<2x8x32xf32>
    %191 = math.tanh %190 : vector<2x8x32xf32>
    %192 = vector.shape_cast %3 : vector<1x32xf32> to vector<1x1x32xf32>
    %193 = vector.broadcast %192 : vector<1x1x32xf32> to vector<2x8x32xf32>
    %194 = arith.mulf %191, %193 : vector<2x8x32xf32>
    %cst_49 = arith.constant dense<0.000000e+00> : vector<2x8xf32>
    %195 = vector.multi_reduction <add>, %194, %cst_49 [2] : vector<2x8x32xf32> to vector<2x8xf32>
    %cst_50 = arith.constant dense<0xFF800000> : vector<2xf32>
    %196 = vector.multi_reduction <maximumf>, %195, %cst_50 [1] : vector<2x8xf32> to vector<2xf32>
    %197 = vector.shape_cast %196 : vector<2xf32> to vector<2x1xf32>
    %198 = vector.broadcast %197 : vector<2x1xf32> to vector<2x8xf32>
    %199 = arith.subf %195, %198 : vector<2x8xf32>
    %200 = math.exp %199 : vector<2x8xf32>
    %cst_51 = arith.constant dense<0.000000e+00> : vector<2xf32>
    %201 = vector.multi_reduction <add>, %200, %cst_51 [1] : vector<2x8xf32> to vector<2xf32>
    %202 = vector.shape_cast %201 : vector<2xf32> to vector<2x1xf32>
    %203 = tpu.reciprocal %202 {approx = true} : vector<2x1xf32> -> vector<2x1xf32>
    %204 = arith.mulf %202, %203 : vector<2x1xf32>
    %cst_52 = arith.constant 2.000000e+00 : f32
    %205 = vector.broadcast %cst_52 : f32 to vector<2x1xf32>
    %206 = arith.subf %205, %204 : vector<2x1xf32>
    %207 = arith.mulf %203, %206 : vector<2x1xf32>
    %208 = vector.broadcast %207 : vector<2x1xf32> to vector<2x8xf32>
    %209 = arith.mulf %200, %208 : vector<2x8xf32>
    %210 = vector.shape_cast %209 : vector<2x8xf32> to vector<2x8x1xf32>
    %211 = vector.broadcast %210 : vector<2x8x1xf32> to vector<2x8x32xf32>
    %212 = arith.mulf %211, %0 : vector<2x8x32xf32>
    %cst_53 = arith.constant dense<0.000000e+00> : vector<2x32xf32>
    %213 = vector.multi_reduction <add>, %212, %cst_53 [1] : vector<2x8x32xf32> to vector<2x32xf32>
    %214 = tpu.concatenate %173, %213 in 1 : vector<2x16xf32>, vector<2x32xf32> -> vector<2x48xf32>
    %c0_54 = arith.constant 0 : index
    %c0_55 = arith.constant 0 : index
    %215 = vector.load %arg3[%c0_54, %c0_55] : memref<48x96xf32, #tpu.memory_space<vmem>>, vector<48x96xf32>
    %cst_56 = arith.constant dense<0.000000e+00> : vector<2x96xf32>
    %216 = tpu.matmul %214, %215, %cst_56 {dimension_numbers = #tpu.dot_dimension_numbers<[1], [0], [0], [1], [0, 0, 1, 1], [], []>, precision = #tpu.contract_precision<fp32>} : vector<2x48xf32>, vector<48x96xf32>, vector<2x96xf32> -> vector<2x96xf32>
    %217 = vector.broadcast %4 : vector<1x96xf32> to vector<2x96xf32>
    %218 = arith.addf %216, %217 : vector<2x96xf32>
    %219 = vector.extract_strided_slice %218 {offsets = [0, 0], sizes = [2, 64], strides = [1, 1]} : vector<2x96xf32> to vector<2x64xf32>
    %220 = vector.extract_strided_slice %187 {offsets = [0, 0], sizes = [2, 64], strides = [1, 1]} : vector<2x96xf32> to vector<2x64xf32>
    %221 = arith.addf %219, %220 : vector<2x64xf32>
    %222 = arith.negf %221 : vector<2x64xf32>
    %223 = math.exp %222 : vector<2x64xf32>
    %cst_57 = arith.constant 1.000000e+00 : f32
    %224 = vector.broadcast %cst_57 : f32 to vector<2x64xf32>
    %225 = arith.addf %224, %223 : vector<2x64xf32>
    %226 = arith.divf %224, %225 : vector<2x64xf32>
    %227 = vector.extract_strided_slice %226 {offsets = [0, 0], sizes = [2, 32], strides = [1, 1]} : vector<2x64xf32> to vector<2x32xf32>
    %228 = vector.extract_strided_slice %226 {offsets = [0, 32], sizes = [2, 32], strides = [1, 1]} : vector<2x64xf32> to vector<2x32xf32>
    %229 = vector.extract_strided_slice %218 {offsets = [0, 64], sizes = [2, 32], strides = [1, 1]} : vector<2x96xf32> to vector<2x32xf32>
    %230 = vector.extract_strided_slice %187 {offsets = [0, 64], sizes = [2, 32], strides = [1, 1]} : vector<2x96xf32> to vector<2x32xf32>
    %231 = vector.broadcast %5 : vector<1x32xf32> to vector<2x32xf32>
    %232 = arith.addf %230, %231 : vector<2x32xf32>
    %233 = arith.mulf %227, %232 : vector<2x32xf32>
    %234 = arith.addf %229, %233 : vector<2x32xf32>
    %235 = math.tanh %234 : vector<2x32xf32>
    %cst_58 = arith.constant 1.000000e+00 : f32
    %236 = vector.broadcast %cst_58 : f32 to vector<2x32xf32>
    %237 = arith.subf %236, %228 : vector<2x32xf32>
    %238 = arith.mulf %237, %235 : vector<2x32xf32>
    %239 = arith.mulf %228, %157 : vector<2x32xf32>
    %240 = arith.addf %238, %239 : vector<2x32xf32>
    %c0_59 = arith.constant 0 : index
    %c128_60 = arith.constant 128 : index
    %241 = vector.load %arg2[%c0_59, %c128_60] : memref<32x144xf32, #tpu.memory_space<vmem>>, vector<32x16xf32>
    %cst_61 = arith.constant dense<0.000000e+00> : vector<2x16xf32>
    %242 = tpu.matmul %240, %241, %cst_61 {dimension_numbers = #tpu.dot_dimension_numbers<[1], [0], [0], [1], [0, 0, 1, 1], [], []>, precision = #tpu.contract_precision<fp32>} : vector<2x32xf32>, vector<32x16xf32>, vector<2x16xf32> -> vector<2x16xf32>
    %243 = vector.broadcast %6 : vector<1x16xf32> to vector<2x16xf32>
    %244 = arith.addf %242, %243 : vector<2x16xf32>
    %cst_62 = arith.constant dense<0xFF800000> : vector<2xf32>
    %245 = vector.multi_reduction <maximumf>, %244, %cst_62 [1] : vector<2x16xf32> to vector<2xf32>
    %246 = vector.shape_cast %245 : vector<2xf32> to vector<2x1xf32>
    %247 = vector.broadcast %246 : vector<2x1xf32> to vector<2x16xf32>
    %248 = arith.cmpf oeq, %244, %247 : vector<2x16xf32>
    %c16_i32_63 = arith.constant 16 : i32
    %249 = vector.broadcast %c16_i32_63 : i32 to vector<2x16xi32>
    %250 = arith.select %248, %13, %249 : vector<2x16xi1>, vector<2x16xi32>
    %cst_64 = arith.constant dense<2147483647> : vector<2xi32>
    %251 = vector.multi_reduction <minsi>, %250, %cst_64 [1] : vector<2x16xi32> to vector<2xi32>
    %252 = vector.shape_cast %251 : vector<2xi32> to vector<2x1xi32>
    %253 = vector.broadcast %252 : vector<2x1xi32> to vector<2x16xi32>
    %254 = arith.cmpi eq, %13, %253 : vector<2x16xi32>
    %255 = arith.extui %254 : vector<2x16xi1> to vector<2x16xi32>
    %256 = arith.sitofp %255 : vector<2x16xi32> to vector<2x16xf32>
    %257 = vector.broadcast %246 : vector<2x1xf32> to vector<2x16xf32>
    %258 = arith.subf %244, %257 : vector<2x16xf32>
    %259 = math.exp %258 : vector<2x16xf32>
    %cst_65 = arith.constant dense<0.000000e+00> : vector<2xf32>
    %260 = vector.multi_reduction <add>, %259, %cst_65 [1] : vector<2x16xf32> to vector<2xf32>
    %261 = vector.shape_cast %260 : vector<2xf32> to vector<2x1xf32>
    %262 = math.log %261 : vector<2x1xf32>
    %263 = vector.broadcast %246 : vector<2x1xf32> to vector<2x16xf32>
    %264 = arith.subf %244, %263 : vector<2x16xf32>
    %265 = vector.broadcast %262 : vector<2x1xf32> to vector<2x16xf32>
    %266 = arith.subf %264, %265 : vector<2x16xf32>
    %c0_66 = arith.constant 0 : index
    %c0_67 = arith.constant 0 : index
    %267 = vector.load %arg2[%c0_66, %c0_67] : memref<32x144xf32, #tpu.memory_space<vmem>>, vector<32x128xf32>
    %cst_68 = arith.constant dense<0.000000e+00> : vector<2x128xf32>
    %268 = tpu.matmul %240, %267, %cst_68 {dimension_numbers = #tpu.dot_dimension_numbers<[1], [0], [0], [1], [0, 0, 1, 1], [], []>, precision = #tpu.contract_precision<fp32>} : vector<2x32xf32>, vector<32x128xf32>, vector<2x128xf32> -> vector<2x128xf32>
    %269 = vector.extract_strided_slice %268 {offsets = [0, 0], sizes = [2, 32], strides = [1, 1]} : vector<2x128xf32> to vector<2x32xf32>
    %270 = vector.extract_strided_slice %268 {offsets = [0, 32], sizes = [2, 96], strides = [1, 1]} : vector<2x128xf32> to vector<2x96xf32>
    %271 = vector.shape_cast %269 : vector<2x32xf32> to vector<2x1x32xf32>
    %272 = vector.broadcast %271 : vector<2x1x32xf32> to vector<2x8x32xf32>
    %273 = arith.addf %272, %11 : vector<2x8x32xf32>
    %274 = math.tanh %273 : vector<2x8x32xf32>
    %275 = vector.shape_cast %3 : vector<1x32xf32> to vector<1x1x32xf32>
    %276 = vector.broadcast %275 : vector<1x1x32xf32> to vector<2x8x32xf32>
    %277 = arith.mulf %274, %276 : vector<2x8x32xf32>
    %cst_69 = arith.constant dense<0.000000e+00> : vector<2x8xf32>
    %278 = vector.multi_reduction <add>, %277, %cst_69 [2] : vector<2x8x32xf32> to vector<2x8xf32>
    %cst_70 = arith.constant dense<0xFF800000> : vector<2xf32>
    %279 = vector.multi_reduction <maximumf>, %278, %cst_70 [1] : vector<2x8xf32> to vector<2xf32>
    %280 = vector.shape_cast %279 : vector<2xf32> to vector<2x1xf32>
    %281 = vector.broadcast %280 : vector<2x1xf32> to vector<2x8xf32>
    %282 = arith.subf %278, %281 : vector<2x8xf32>
    %283 = math.exp %282 : vector<2x8xf32>
    %cst_71 = arith.constant dense<0.000000e+00> : vector<2xf32>
    %284 = vector.multi_reduction <add>, %283, %cst_71 [1] : vector<2x8xf32> to vector<2xf32>
    %285 = vector.shape_cast %284 : vector<2xf32> to vector<2x1xf32>
    %286 = tpu.reciprocal %285 {approx = true} : vector<2x1xf32> -> vector<2x1xf32>
    %287 = arith.mulf %285, %286 : vector<2x1xf32>
    %cst_72 = arith.constant 2.000000e+00 : f32
    %288 = vector.broadcast %cst_72 : f32 to vector<2x1xf32>
    %289 = arith.subf %288, %287 : vector<2x1xf32>
    %290 = arith.mulf %286, %289 : vector<2x1xf32>
    %291 = vector.broadcast %290 : vector<2x1xf32> to vector<2x8xf32>
    %292 = arith.mulf %283, %291 : vector<2x8xf32>
    %293 = vector.shape_cast %292 : vector<2x8xf32> to vector<2x8x1xf32>
    %294 = vector.broadcast %293 : vector<2x8x1xf32> to vector<2x8x32xf32>
    %295 = arith.mulf %294, %0 : vector<2x8x32xf32>
    %cst_73 = arith.constant dense<0.000000e+00> : vector<2x32xf32>
    %296 = vector.multi_reduction <add>, %295, %cst_73 [1] : vector<2x8x32xf32> to vector<2x32xf32>
    %297 = tpu.concatenate %256, %296 in 1 : vector<2x16xf32>, vector<2x32xf32> -> vector<2x48xf32>
    %c0_74 = arith.constant 0 : index
    %c0_75 = arith.constant 0 : index
    %298 = vector.load %arg3[%c0_74, %c0_75] : memref<48x96xf32, #tpu.memory_space<vmem>>, vector<48x96xf32>
    %cst_76 = arith.constant dense<0.000000e+00> : vector<2x96xf32>
    %299 = tpu.matmul %297, %298, %cst_76 {dimension_numbers = #tpu.dot_dimension_numbers<[1], [0], [0], [1], [0, 0, 1, 1], [], []>, precision = #tpu.contract_precision<fp32>} : vector<2x48xf32>, vector<48x96xf32>, vector<2x96xf32> -> vector<2x96xf32>
    %300 = vector.broadcast %4 : vector<1x96xf32> to vector<2x96xf32>
    %301 = arith.addf %299, %300 : vector<2x96xf32>
    %302 = vector.extract_strided_slice %301 {offsets = [0, 0], sizes = [2, 64], strides = [1, 1]} : vector<2x96xf32> to vector<2x64xf32>
    %303 = vector.extract_strided_slice %270 {offsets = [0, 0], sizes = [2, 64], strides = [1, 1]} : vector<2x96xf32> to vector<2x64xf32>
    %304 = arith.addf %302, %303 : vector<2x64xf32>
    %305 = arith.negf %304 : vector<2x64xf32>
    %306 = math.exp %305 : vector<2x64xf32>
    %cst_77 = arith.constant 1.000000e+00 : f32
    %307 = vector.broadcast %cst_77 : f32 to vector<2x64xf32>
    %308 = arith.addf %307, %306 : vector<2x64xf32>
    %309 = arith.divf %307, %308 : vector<2x64xf32>
    %310 = vector.extract_strided_slice %309 {offsets = [0, 0], sizes = [2, 32], strides = [1, 1]} : vector<2x64xf32> to vector<2x32xf32>
    %311 = vector.extract_strided_slice %309 {offsets = [0, 32], sizes = [2, 32], strides = [1, 1]} : vector<2x64xf32> to vector<2x32xf32>
    %312 = vector.extract_strided_slice %301 {offsets = [0, 64], sizes = [2, 32], strides = [1, 1]} : vector<2x96xf32> to vector<2x32xf32>
    %313 = vector.extract_strided_slice %270 {offsets = [0, 64], sizes = [2, 32], strides = [1, 1]} : vector<2x96xf32> to vector<2x32xf32>
    %314 = vector.broadcast %5 : vector<1x32xf32> to vector<2x32xf32>
    %315 = arith.addf %313, %314 : vector<2x32xf32>
    %316 = arith.mulf %310, %315 : vector<2x32xf32>
    %317 = arith.addf %312, %316 : vector<2x32xf32>
    %318 = math.tanh %317 : vector<2x32xf32>
    %cst_78 = arith.constant 1.000000e+00 : f32
    %319 = vector.broadcast %cst_78 : f32 to vector<2x32xf32>
    %320 = arith.subf %319, %311 : vector<2x32xf32>
    %321 = arith.mulf %320, %318 : vector<2x32xf32>
    %322 = arith.mulf %311, %240 : vector<2x32xf32>
    %323 = arith.addf %321, %322 : vector<2x32xf32>
    %c0_79 = arith.constant 0 : index
    %c128_80 = arith.constant 128 : index
    %324 = vector.load %arg2[%c0_79, %c128_80] : memref<32x144xf32, #tpu.memory_space<vmem>>, vector<32x16xf32>
    %cst_81 = arith.constant dense<0.000000e+00> : vector<2x16xf32>
    %325 = tpu.matmul %323, %324, %cst_81 {dimension_numbers = #tpu.dot_dimension_numbers<[1], [0], [0], [1], [0, 0, 1, 1], [], []>, precision = #tpu.contract_precision<fp32>} : vector<2x32xf32>, vector<32x16xf32>, vector<2x16xf32> -> vector<2x16xf32>
    %326 = vector.broadcast %6 : vector<1x16xf32> to vector<2x16xf32>
    %327 = arith.addf %325, %326 : vector<2x16xf32>
    %cst_82 = arith.constant dense<0xFF800000> : vector<2xf32>
    %328 = vector.multi_reduction <maximumf>, %327, %cst_82 [1] : vector<2x16xf32> to vector<2xf32>
    %329 = vector.shape_cast %328 : vector<2xf32> to vector<2x1xf32>
    %330 = vector.broadcast %329 : vector<2x1xf32> to vector<2x16xf32>
    %331 = arith.cmpf oeq, %327, %330 : vector<2x16xf32>
    %c16_i32_83 = arith.constant 16 : i32
    %332 = vector.broadcast %c16_i32_83 : i32 to vector<2x16xi32>
    %333 = arith.select %331, %13, %332 : vector<2x16xi1>, vector<2x16xi32>
    %cst_84 = arith.constant dense<2147483647> : vector<2xi32>
    %334 = vector.multi_reduction <minsi>, %333, %cst_84 [1] : vector<2x16xi32> to vector<2xi32>
    %335 = vector.shape_cast %334 : vector<2xi32> to vector<2x1xi32>
    %336 = vector.broadcast %335 : vector<2x1xi32> to vector<2x16xi32>
    %337 = arith.cmpi eq, %13, %336 : vector<2x16xi32>
    %338 = arith.extui %337 : vector<2x16xi1> to vector<2x16xi32>
    %339 = arith.sitofp %338 : vector<2x16xi32> to vector<2x16xf32>
    %340 = vector.broadcast %329 : vector<2x1xf32> to vector<2x16xf32>
    %341 = arith.subf %327, %340 : vector<2x16xf32>
    %342 = math.exp %341 : vector<2x16xf32>
    %cst_85 = arith.constant dense<0.000000e+00> : vector<2xf32>
    %343 = vector.multi_reduction <add>, %342, %cst_85 [1] : vector<2x16xf32> to vector<2xf32>
    %344 = vector.shape_cast %343 : vector<2xf32> to vector<2x1xf32>
    %345 = math.log %344 : vector<2x1xf32>
    %346 = vector.broadcast %329 : vector<2x1xf32> to vector<2x16xf32>
    %347 = arith.subf %327, %346 : vector<2x16xf32>
    %348 = vector.broadcast %345 : vector<2x1xf32> to vector<2x16xf32>
    %349 = arith.subf %347, %348 : vector<2x16xf32>
    %c0_86 = arith.constant 0 : index
    %c0_87 = arith.constant 0 : index
    %350 = vector.load %arg2[%c0_86, %c0_87] : memref<32x144xf32, #tpu.memory_space<vmem>>, vector<32x128xf32>
    %cst_88 = arith.constant dense<0.000000e+00> : vector<2x128xf32>
    %351 = tpu.matmul %323, %350, %cst_88 {dimension_numbers = #tpu.dot_dimension_numbers<[1], [0], [0], [1], [0, 0, 1, 1], [], []>, precision = #tpu.contract_precision<fp32>} : vector<2x32xf32>, vector<32x128xf32>, vector<2x128xf32> -> vector<2x128xf32>
    %352 = vector.extract_strided_slice %351 {offsets = [0, 0], sizes = [2, 32], strides = [1, 1]} : vector<2x128xf32> to vector<2x32xf32>
    %353 = vector.extract_strided_slice %351 {offsets = [0, 32], sizes = [2, 96], strides = [1, 1]} : vector<2x128xf32> to vector<2x96xf32>
    %354 = vector.shape_cast %352 : vector<2x32xf32> to vector<2x1x32xf32>
    %355 = vector.broadcast %354 : vector<2x1x32xf32> to vector<2x8x32xf32>
    %356 = arith.addf %355, %11 : vector<2x8x32xf32>
    %357 = math.tanh %356 : vector<2x8x32xf32>
    %358 = vector.shape_cast %3 : vector<1x32xf32> to vector<1x1x32xf32>
    %359 = vector.broadcast %358 : vector<1x1x32xf32> to vector<2x8x32xf32>
    %360 = arith.mulf %357, %359 : vector<2x8x32xf32>
    %cst_89 = arith.constant dense<0.000000e+00> : vector<2x8xf32>
    %361 = vector.multi_reduction <add>, %360, %cst_89 [2] : vector<2x8x32xf32> to vector<2x8xf32>
    %cst_90 = arith.constant dense<0xFF800000> : vector<2xf32>
    %362 = vector.multi_reduction <maximumf>, %361, %cst_90 [1] : vector<2x8xf32> to vector<2xf32>
    %363 = vector.shape_cast %362 : vector<2xf32> to vector<2x1xf32>
    %364 = vector.broadcast %363 : vector<2x1xf32> to vector<2x8xf32>
    %365 = arith.subf %361, %364 : vector<2x8xf32>
    %366 = math.exp %365 : vector<2x8xf32>
    %cst_91 = arith.constant dense<0.000000e+00> : vector<2xf32>
    %367 = vector.multi_reduction <add>, %366, %cst_91 [1] : vector<2x8xf32> to vector<2xf32>
    %368 = vector.shape_cast %367 : vector<2xf32> to vector<2x1xf32>
    %369 = tpu.reciprocal %368 {approx = true} : vector<2x1xf32> -> vector<2x1xf32>
    %370 = arith.mulf %368, %369 : vector<2x1xf32>
    %cst_92 = arith.constant 2.000000e+00 : f32
    %371 = vector.broadcast %cst_92 : f32 to vector<2x1xf32>
    %372 = arith.subf %371, %370 : vector<2x1xf32>
    %373 = arith.mulf %369, %372 : vector<2x1xf32>
    %374 = vector.broadcast %373 : vector<2x1xf32> to vector<2x8xf32>
    %375 = arith.mulf %366, %374 : vector<2x8xf32>
    %376 = vector.shape_cast %375 : vector<2x8xf32> to vector<2x8x1xf32>
    %377 = vector.broadcast %376 : vector<2x8x1xf32> to vector<2x8x32xf32>
    %378 = arith.mulf %377, %0 : vector<2x8x32xf32>
    %cst_93 = arith.constant dense<0.000000e+00> : vector<2x32xf32>
    %379 = vector.multi_reduction <add>, %378, %cst_93 [1] : vector<2x8x32xf32> to vector<2x32xf32>
    %380 = tpu.concatenate %339, %379 in 1 : vector<2x16xf32>, vector<2x32xf32> -> vector<2x48xf32>
    %c0_94 = arith.constant 0 : index
    %c0_95 = arith.constant 0 : index
    %381 = vector.load %arg3[%c0_94, %c0_95] : memref<48x96xf32, #tpu.memory_space<vmem>>, vector<48x96xf32>
    %cst_96 = arith.constant dense<0.000000e+00> : vector<2x96xf32>
    %382 = tpu.matmul %380, %381, %cst_96 {dimension_numbers = #tpu.dot_dimension_numbers<[1], [0], [0], [1], [0, 0, 1, 1], [], []>, precision = #tpu.contract_precision<fp32>} : vector<2x48xf32>, vector<48x96xf32>, vector<2x96xf32> -> vector<2x96xf32>
    %383 = vector.broadcast %4 : vector<1x96xf32> to vector<2x96xf32>
    %384 = arith.addf %382, %383 : vector<2x96xf32>
    %385 = vector.extract_strided_slice %384 {offsets = [0, 0], sizes = [2, 64], strides = [1, 1]} : vector<2x96xf32> to vector<2x64xf32>
    %386 = vector.extract_strided_slice %353 {offsets = [0, 0], sizes = [2, 64], strides = [1, 1]} : vector<2x96xf32> to vector<2x64xf32>
    %387 = arith.addf %385, %386 : vector<2x64xf32>
    %388 = arith.negf %387 : vector<2x64xf32>
    %389 = math.exp %388 : vector<2x64xf32>
    %cst_97 = arith.constant 1.000000e+00 : f32
    %390 = vector.broadcast %cst_97 : f32 to vector<2x64xf32>
    %391 = arith.addf %390, %389 : vector<2x64xf32>
    %392 = arith.divf %390, %391 : vector<2x64xf32>
    %393 = vector.extract_strided_slice %392 {offsets = [0, 0], sizes = [2, 32], strides = [1, 1]} : vector<2x64xf32> to vector<2x32xf32>
    %394 = vector.extract_strided_slice %392 {offsets = [0, 32], sizes = [2, 32], strides = [1, 1]} : vector<2x64xf32> to vector<2x32xf32>
    %395 = vector.extract_strided_slice %384 {offsets = [0, 64], sizes = [2, 32], strides = [1, 1]} : vector<2x96xf32> to vector<2x32xf32>
    %396 = vector.extract_strided_slice %353 {offsets = [0, 64], sizes = [2, 32], strides = [1, 1]} : vector<2x96xf32> to vector<2x32xf32>
    %397 = vector.broadcast %5 : vector<1x32xf32> to vector<2x32xf32>
    %398 = arith.addf %396, %397 : vector<2x32xf32>
    %399 = arith.mulf %393, %398 : vector<2x32xf32>
    %400 = arith.addf %395, %399 : vector<2x32xf32>
    %401 = math.tanh %400 : vector<2x32xf32>
    %cst_98 = arith.constant 1.000000e+00 : f32
    %402 = vector.broadcast %cst_98 : f32 to vector<2x32xf32>
    %403 = arith.subf %402, %394 : vector<2x32xf32>
    %404 = arith.mulf %403, %401 : vector<2x32xf32>
    %405 = arith.mulf %394, %323 : vector<2x32xf32>
    %406 = arith.addf %404, %405 : vector<2x32xf32>
    %c0_99 = arith.constant 0 : index
    %c128_100 = arith.constant 128 : index
    %407 = vector.load %arg2[%c0_99, %c128_100] : memref<32x144xf32, #tpu.memory_space<vmem>>, vector<32x16xf32>
    %cst_101 = arith.constant dense<0.000000e+00> : vector<2x16xf32>
    %408 = tpu.matmul %406, %407, %cst_101 {dimension_numbers = #tpu.dot_dimension_numbers<[1], [0], [0], [1], [0, 0, 1, 1], [], []>, precision = #tpu.contract_precision<fp32>} : vector<2x32xf32>, vector<32x16xf32>, vector<2x16xf32> -> vector<2x16xf32>
    %409 = vector.broadcast %6 : vector<1x16xf32> to vector<2x16xf32>
    %410 = arith.addf %408, %409 : vector<2x16xf32>
    %cst_102 = arith.constant dense<0xFF800000> : vector<2xf32>
    %411 = vector.multi_reduction <maximumf>, %410, %cst_102 [1] : vector<2x16xf32> to vector<2xf32>
    %412 = vector.shape_cast %411 : vector<2xf32> to vector<2x1xf32>
    %413 = vector.broadcast %412 : vector<2x1xf32> to vector<2x16xf32>
    %414 = arith.cmpf oeq, %410, %413 : vector<2x16xf32>
    %c16_i32_103 = arith.constant 16 : i32
    %415 = vector.broadcast %c16_i32_103 : i32 to vector<2x16xi32>
    %416 = arith.select %414, %13, %415 : vector<2x16xi1>, vector<2x16xi32>
    %cst_104 = arith.constant dense<2147483647> : vector<2xi32>
    %417 = vector.multi_reduction <minsi>, %416, %cst_104 [1] : vector<2x16xi32> to vector<2xi32>
    %418 = vector.shape_cast %417 : vector<2xi32> to vector<2x1xi32>
    %419 = vector.broadcast %418 : vector<2x1xi32> to vector<2x16xi32>
    %420 = arith.cmpi eq, %13, %419 : vector<2x16xi32>
    %421 = arith.extui %420 : vector<2x16xi1> to vector<2x16xi32>
    %422 = arith.sitofp %421 : vector<2x16xi32> to vector<2x16xf32>
    %423 = vector.broadcast %412 : vector<2x1xf32> to vector<2x16xf32>
    %424 = arith.subf %410, %423 : vector<2x16xf32>
    %425 = math.exp %424 : vector<2x16xf32>
    %cst_105 = arith.constant dense<0.000000e+00> : vector<2xf32>
    %426 = vector.multi_reduction <add>, %425, %cst_105 [1] : vector<2x16xf32> to vector<2xf32>
    %427 = vector.shape_cast %426 : vector<2xf32> to vector<2x1xf32>
    %428 = math.log %427 : vector<2x1xf32>
    %429 = vector.broadcast %412 : vector<2x1xf32> to vector<2x16xf32>
    %430 = arith.subf %410, %429 : vector<2x16xf32>
    %431 = vector.broadcast %428 : vector<2x1xf32> to vector<2x16xf32>
    %432 = arith.subf %430, %431 : vector<2x16xf32>
    %c0_106 = arith.constant 0 : index
    %c0_107 = arith.constant 0 : index
    %433 = vector.load %arg2[%c0_106, %c0_107] : memref<32x144xf32, #tpu.memory_space<vmem>>, vector<32x128xf32>
    %cst_108 = arith.constant dense<0.000000e+00> : vector<2x128xf32>
    %434 = tpu.matmul %406, %433, %cst_108 {dimension_numbers = #tpu.dot_dimension_numbers<[1], [0], [0], [1], [0, 0, 1, 1], [], []>, precision = #tpu.contract_precision<fp32>} : vector<2x32xf32>, vector<32x128xf32>, vector<2x128xf32> -> vector<2x128xf32>
    %435 = vector.extract_strided_slice %434 {offsets = [0, 0], sizes = [2, 32], strides = [1, 1]} : vector<2x128xf32> to vector<2x32xf32>
    %436 = vector.extract_strided_slice %434 {offsets = [0, 32], sizes = [2, 96], strides = [1, 1]} : vector<2x128xf32> to vector<2x96xf32>
    %437 = vector.shape_cast %435 : vector<2x32xf32> to vector<2x1x32xf32>
    %438 = vector.broadcast %437 : vector<2x1x32xf32> to vector<2x8x32xf32>
    %439 = arith.addf %438, %11 : vector<2x8x32xf32>
    %440 = math.tanh %439 : vector<2x8x32xf32>
    %441 = vector.shape_cast %3 : vector<1x32xf32> to vector<1x1x32xf32>
    %442 = vector.broadcast %441 : vector<1x1x32xf32> to vector<2x8x32xf32>
    %443 = arith.mulf %440, %442 : vector<2x8x32xf32>
    %cst_109 = arith.constant dense<0.000000e+00> : vector<2x8xf32>
    %444 = vector.multi_reduction <add>, %443, %cst_109 [2] : vector<2x8x32xf32> to vector<2x8xf32>
    %cst_110 = arith.constant dense<0xFF800000> : vector<2xf32>
    %445 = vector.multi_reduction <maximumf>, %444, %cst_110 [1] : vector<2x8xf32> to vector<2xf32>
    %446 = vector.shape_cast %445 : vector<2xf32> to vector<2x1xf32>
    %447 = vector.broadcast %446 : vector<2x1xf32> to vector<2x8xf32>
    %448 = arith.subf %444, %447 : vector<2x8xf32>
    %449 = math.exp %448 : vector<2x8xf32>
    %cst_111 = arith.constant dense<0.000000e+00> : vector<2xf32>
    %450 = vector.multi_reduction <add>, %449, %cst_111 [1] : vector<2x8xf32> to vector<2xf32>
    %451 = vector.shape_cast %450 : vector<2xf32> to vector<2x1xf32>
    %452 = tpu.reciprocal %451 {approx = true} : vector<2x1xf32> -> vector<2x1xf32>
    %453 = arith.mulf %451, %452 : vector<2x1xf32>
    %cst_112 = arith.constant 2.000000e+00 : f32
    %454 = vector.broadcast %cst_112 : f32 to vector<2x1xf32>
    %455 = arith.subf %454, %453 : vector<2x1xf32>
    %456 = arith.mulf %452, %455 : vector<2x1xf32>
    %457 = vector.broadcast %456 : vector<2x1xf32> to vector<2x8xf32>
    %458 = arith.mulf %449, %457 : vector<2x8xf32>
    %459 = vector.shape_cast %458 : vector<2x8xf32> to vector<2x8x1xf32>
    %460 = vector.broadcast %459 : vector<2x8x1xf32> to vector<2x8x32xf32>
    %461 = arith.mulf %460, %0 : vector<2x8x32xf32>
    %cst_113 = arith.constant dense<0.000000e+00> : vector<2x32xf32>
    %462 = vector.multi_reduction <add>, %461, %cst_113 [1] : vector<2x8x32xf32> to vector<2x32xf32>
    %463 = tpu.concatenate %422, %462 in 1 : vector<2x16xf32>, vector<2x32xf32> -> vector<2x48xf32>
    %c0_114 = arith.constant 0 : index
    %c0_115 = arith.constant 0 : index
    %464 = vector.load %arg3[%c0_114, %c0_115] : memref<48x96xf32, #tpu.memory_space<vmem>>, vector<48x96xf32>
    %cst_116 = arith.constant dense<0.000000e+00> : vector<2x96xf32>
    %465 = tpu.matmul %463, %464, %cst_116 {dimension_numbers = #tpu.dot_dimension_numbers<[1], [0], [0], [1], [0, 0, 1, 1], [], []>, precision = #tpu.contract_precision<fp32>} : vector<2x48xf32>, vector<48x96xf32>, vector<2x96xf32> -> vector<2x96xf32>
    %466 = vector.broadcast %4 : vector<1x96xf32> to vector<2x96xf32>
    %467 = arith.addf %465, %466 : vector<2x96xf32>
    %468 = vector.extract_strided_slice %467 {offsets = [0, 0], sizes = [2, 64], strides = [1, 1]} : vector<2x96xf32> to vector<2x64xf32>
    %469 = vector.extract_strided_slice %436 {offsets = [0, 0], sizes = [2, 64], strides = [1, 1]} : vector<2x96xf32> to vector<2x64xf32>
    %470 = arith.addf %468, %469 : vector<2x64xf32>
    %471 = arith.negf %470 : vector<2x64xf32>
    %472 = math.exp %471 : vector<2x64xf32>
    %cst_117 = arith.constant 1.000000e+00 : f32
    %473 = vector.broadcast %cst_117 : f32 to vector<2x64xf32>
    %474 = arith.addf %473, %472 : vector<2x64xf32>
    %475 = arith.divf %473, %474 : vector<2x64xf32>
    %476 = vector.extract_strided_slice %475 {offsets = [0, 0], sizes = [2, 32], strides = [1, 1]} : vector<2x64xf32> to vector<2x32xf32>
    %477 = vector.extract_strided_slice %475 {offsets = [0, 32], sizes = [2, 32], strides = [1, 1]} : vector<2x64xf32> to vector<2x32xf32>
    %478 = vector.extract_strided_slice %467 {offsets = [0, 64], sizes = [2, 32], strides = [1, 1]} : vector<2x96xf32> to vector<2x32xf32>
    %479 = vector.extract_strided_slice %436 {offsets = [0, 64], sizes = [2, 32], strides = [1, 1]} : vector<2x96xf32> to vector<2x32xf32>
    %480 = vector.broadcast %5 : vector<1x32xf32> to vector<2x32xf32>
    %481 = arith.addf %479, %480 : vector<2x32xf32>
    %482 = arith.mulf %476, %481 : vector<2x32xf32>
    %483 = arith.addf %478, %482 : vector<2x32xf32>
    %484 = math.tanh %483 : vector<2x32xf32>
    %cst_118 = arith.constant 1.000000e+00 : f32
    %485 = vector.broadcast %cst_118 : f32 to vector<2x32xf32>
    %486 = arith.subf %485, %477 : vector<2x32xf32>
    %487 = arith.mulf %486, %484 : vector<2x32xf32>
    %488 = arith.mulf %477, %406 : vector<2x32xf32>
    %489 = arith.addf %487, %488 : vector<2x32xf32>
    %c0_119 = arith.constant 0 : index
    %c128_120 = arith.constant 128 : index
    %490 = vector.load %arg2[%c0_119, %c128_120] : memref<32x144xf32, #tpu.memory_space<vmem>>, vector<32x16xf32>
    %cst_121 = arith.constant dense<0.000000e+00> : vector<2x16xf32>
    %491 = tpu.matmul %489, %490, %cst_121 {dimension_numbers = #tpu.dot_dimension_numbers<[1], [0], [0], [1], [0, 0, 1, 1], [], []>, precision = #tpu.contract_precision<fp32>} : vector<2x32xf32>, vector<32x16xf32>, vector<2x16xf32> -> vector<2x16xf32>
    %492 = vector.broadcast %6 : vector<1x16xf32> to vector<2x16xf32>
    %493 = arith.addf %491, %492 : vector<2x16xf32>
    %cst_122 = arith.constant dense<0xFF800000> : vector<2xf32>
    %494 = vector.multi_reduction <maximumf>, %493, %cst_122 [1] : vector<2x16xf32> to vector<2xf32>
    %495 = vector.shape_cast %494 : vector<2xf32> to vector<2x1xf32>
    %496 = vector.broadcast %495 : vector<2x1xf32> to vector<2x16xf32>
    %497 = arith.cmpf oeq, %493, %496 : vector<2x16xf32>
    %c16_i32_123 = arith.constant 16 : i32
    %498 = vector.broadcast %c16_i32_123 : i32 to vector<2x16xi32>
    %499 = arith.select %497, %13, %498 : vector<2x16xi1>, vector<2x16xi32>
    %cst_124 = arith.constant dense<2147483647> : vector<2xi32>
    %500 = vector.multi_reduction <minsi>, %499, %cst_124 [1] : vector<2x16xi32> to vector<2xi32>
    %501 = vector.shape_cast %500 : vector<2xi32> to vector<2x1xi32>
    %502 = vector.broadcast %501 : vector<2x1xi32> to vector<2x16xi32>
    %503 = arith.cmpi eq, %13, %502 : vector<2x16xi32>
    %504 = arith.extui %503 : vector<2x16xi1> to vector<2x16xi32>
    %505 = arith.sitofp %504 : vector<2x16xi32> to vector<2x16xf32>
    %506 = vector.broadcast %495 : vector<2x1xf32> to vector<2x16xf32>
    %507 = arith.subf %493, %506 : vector<2x16xf32>
    %508 = math.exp %507 : vector<2x16xf32>
    %cst_125 = arith.constant dense<0.000000e+00> : vector<2xf32>
    %509 = vector.multi_reduction <add>, %508, %cst_125 [1] : vector<2x16xf32> to vector<2xf32>
    %510 = vector.shape_cast %509 : vector<2xf32> to vector<2x1xf32>
    %511 = math.log %510 : vector<2x1xf32>
    %512 = vector.broadcast %495 : vector<2x1xf32> to vector<2x16xf32>
    %513 = arith.subf %493, %512 : vector<2x16xf32>
    %514 = vector.broadcast %511 : vector<2x1xf32> to vector<2x16xf32>
    %515 = arith.subf %513, %514 : vector<2x16xf32>
    %c0_126 = arith.constant 0 : index
    %c0_127 = arith.constant 0 : index
    %516 = vector.load %arg2[%c0_126, %c0_127] : memref<32x144xf32, #tpu.memory_space<vmem>>, vector<32x128xf32>
    %cst_128 = arith.constant dense<0.000000e+00> : vector<2x128xf32>
    %517 = tpu.matmul %489, %516, %cst_128 {dimension_numbers = #tpu.dot_dimension_numbers<[1], [0], [0], [1], [0, 0, 1, 1], [], []>, precision = #tpu.contract_precision<fp32>} : vector<2x32xf32>, vector<32x128xf32>, vector<2x128xf32> -> vector<2x128xf32>
    %518 = vector.extract_strided_slice %517 {offsets = [0, 0], sizes = [2, 32], strides = [1, 1]} : vector<2x128xf32> to vector<2x32xf32>
    %519 = vector.extract_strided_slice %517 {offsets = [0, 32], sizes = [2, 96], strides = [1, 1]} : vector<2x128xf32> to vector<2x96xf32>
    %520 = vector.shape_cast %518 : vector<2x32xf32> to vector<2x1x32xf32>
    %521 = vector.broadcast %520 : vector<2x1x32xf32> to vector<2x8x32xf32>
    %522 = arith.addf %521, %11 : vector<2x8x32xf32>
    %523 = math.tanh %522 : vector<2x8x32xf32>
    %524 = vector.shape_cast %3 : vector<1x32xf32> to vector<1x1x32xf32>
    %525 = vector.broadcast %524 : vector<1x1x32xf32> to vector<2x8x32xf32>
    %526 = arith.mulf %523, %525 : vector<2x8x32xf32>
    %cst_129 = arith.constant dense<0.000000e+00> : vector<2x8xf32>
    %527 = vector.multi_reduction <add>, %526, %cst_129 [2] : vector<2x8x32xf32> to vector<2x8xf32>
    %cst_130 = arith.constant dense<0xFF800000> : vector<2xf32>
    %528 = vector.multi_reduction <maximumf>, %527, %cst_130 [1] : vector<2x8xf32> to vector<2xf32>
    %529 = vector.shape_cast %528 : vector<2xf32> to vector<2x1xf32>
    %530 = vector.broadcast %529 : vector<2x1xf32> to vector<2x8xf32>
    %531 = arith.subf %527, %530 : vector<2x8xf32>
    %532 = math.exp %531 : vector<2x8xf32>
    %cst_131 = arith.constant dense<0.000000e+00> : vector<2xf32>
    %533 = vector.multi_reduction <add>, %532, %cst_131 [1] : vector<2x8xf32> to vector<2xf32>
    %534 = vector.shape_cast %533 : vector<2xf32> to vector<2x1xf32>
    %535 = tpu.reciprocal %534 {approx = true} : vector<2x1xf32> -> vector<2x1xf32>
    %536 = arith.mulf %534, %535 : vector<2x1xf32>
    %cst_132 = arith.constant 2.000000e+00 : f32
    %537 = vector.broadcast %cst_132 : f32 to vector<2x1xf32>
    %538 = arith.subf %537, %536 : vector<2x1xf32>
    %539 = arith.mulf %535, %538 : vector<2x1xf32>
    %540 = vector.broadcast %539 : vector<2x1xf32> to vector<2x8xf32>
    %541 = arith.mulf %532, %540 : vector<2x8xf32>
    %542 = vector.shape_cast %541 : vector<2x8xf32> to vector<2x8x1xf32>
    %543 = vector.broadcast %542 : vector<2x8x1xf32> to vector<2x8x32xf32>
    %544 = arith.mulf %543, %0 : vector<2x8x32xf32>
    %cst_133 = arith.constant dense<0.000000e+00> : vector<2x32xf32>
    %545 = vector.multi_reduction <add>, %544, %cst_133 [1] : vector<2x8x32xf32> to vector<2x32xf32>
    %546 = tpu.concatenate %505, %545 in 1 : vector<2x16xf32>, vector<2x32xf32> -> vector<2x48xf32>
    %c0_134 = arith.constant 0 : index
    %c0_135 = arith.constant 0 : index
    %547 = vector.load %arg3[%c0_134, %c0_135] : memref<48x96xf32, #tpu.memory_space<vmem>>, vector<48x96xf32>
    %cst_136 = arith.constant dense<0.000000e+00> : vector<2x96xf32>
    %548 = tpu.matmul %546, %547, %cst_136 {dimension_numbers = #tpu.dot_dimension_numbers<[1], [0], [0], [1], [0, 0, 1, 1], [], []>, precision = #tpu.contract_precision<fp32>} : vector<2x48xf32>, vector<48x96xf32>, vector<2x96xf32> -> vector<2x96xf32>
    %549 = vector.broadcast %4 : vector<1x96xf32> to vector<2x96xf32>
    %550 = arith.addf %548, %549 : vector<2x96xf32>
    %551 = vector.extract_strided_slice %550 {offsets = [0, 0], sizes = [2, 64], strides = [1, 1]} : vector<2x96xf32> to vector<2x64xf32>
    %552 = vector.extract_strided_slice %519 {offsets = [0, 0], sizes = [2, 64], strides = [1, 1]} : vector<2x96xf32> to vector<2x64xf32>
    %553 = arith.addf %551, %552 : vector<2x64xf32>
    %554 = arith.negf %553 : vector<2x64xf32>
    %555 = math.exp %554 : vector<2x64xf32>
    %cst_137 = arith.constant 1.000000e+00 : f32
    %556 = vector.broadcast %cst_137 : f32 to vector<2x64xf32>
    %557 = arith.addf %556, %555 : vector<2x64xf32>
    %558 = arith.divf %556, %557 : vector<2x64xf32>
    %559 = vector.extract_strided_slice %558 {offsets = [0, 0], sizes = [2, 32], strides = [1, 1]} : vector<2x64xf32> to vector<2x32xf32>
    %560 = vector.extract_strided_slice %558 {offsets = [0, 32], sizes = [2, 32], strides = [1, 1]} : vector<2x64xf32> to vector<2x32xf32>
    %561 = vector.extract_strided_slice %550 {offsets = [0, 64], sizes = [2, 32], strides = [1, 1]} : vector<2x96xf32> to vector<2x32xf32>
    %562 = vector.extract_strided_slice %519 {offsets = [0, 64], sizes = [2, 32], strides = [1, 1]} : vector<2x96xf32> to vector<2x32xf32>
    %563 = vector.broadcast %5 : vector<1x32xf32> to vector<2x32xf32>
    %564 = arith.addf %562, %563 : vector<2x32xf32>
    %565 = arith.mulf %559, %564 : vector<2x32xf32>
    %566 = arith.addf %561, %565 : vector<2x32xf32>
    %567 = math.tanh %566 : vector<2x32xf32>
    %cst_138 = arith.constant 1.000000e+00 : f32
    %568 = vector.broadcast %cst_138 : f32 to vector<2x32xf32>
    %569 = arith.subf %568, %560 : vector<2x32xf32>
    %570 = arith.mulf %569, %567 : vector<2x32xf32>
    %571 = arith.mulf %560, %489 : vector<2x32xf32>
    %572 = arith.addf %570, %571 : vector<2x32xf32>
    %c0_139 = arith.constant 0 : index
    %c128_140 = arith.constant 128 : index
    %573 = vector.load %arg2[%c0_139, %c128_140] : memref<32x144xf32, #tpu.memory_space<vmem>>, vector<32x16xf32>
    %cst_141 = arith.constant dense<0.000000e+00> : vector<2x16xf32>
    %574 = tpu.matmul %572, %573, %cst_141 {dimension_numbers = #tpu.dot_dimension_numbers<[1], [0], [0], [1], [0, 0, 1, 1], [], []>, precision = #tpu.contract_precision<fp32>} : vector<2x32xf32>, vector<32x16xf32>, vector<2x16xf32> -> vector<2x16xf32>
    %575 = vector.broadcast %6 : vector<1x16xf32> to vector<2x16xf32>
    %576 = arith.addf %574, %575 : vector<2x16xf32>
    %cst_142 = arith.constant dense<0xFF800000> : vector<2xf32>
    %577 = vector.multi_reduction <maximumf>, %576, %cst_142 [1] : vector<2x16xf32> to vector<2xf32>
    %578 = vector.shape_cast %577 : vector<2xf32> to vector<2x1xf32>
    %579 = vector.broadcast %578 : vector<2x1xf32> to vector<2x16xf32>
    %580 = arith.cmpf oeq, %576, %579 : vector<2x16xf32>
    %c16_i32_143 = arith.constant 16 : i32
    %581 = vector.broadcast %c16_i32_143 : i32 to vector<2x16xi32>
    %582 = arith.select %580, %13, %581 : vector<2x16xi1>, vector<2x16xi32>
    %cst_144 = arith.constant dense<2147483647> : vector<2xi32>
    %583 = vector.multi_reduction <minsi>, %582, %cst_144 [1] : vector<2x16xi32> to vector<2xi32>
    %584 = vector.shape_cast %583 : vector<2xi32> to vector<2x1xi32>
    %585 = vector.broadcast %584 : vector<2x1xi32> to vector<2x16xi32>
    %586 = arith.cmpi eq, %13, %585 : vector<2x16xi32>
    %587 = arith.extui %586 : vector<2x16xi1> to vector<2x16xi32>
    %588 = arith.sitofp %587 : vector<2x16xi32> to vector<2x16xf32>
    %589 = vector.broadcast %578 : vector<2x1xf32> to vector<2x16xf32>
    %590 = arith.subf %576, %589 : vector<2x16xf32>
    %591 = math.exp %590 : vector<2x16xf32>
    %cst_145 = arith.constant dense<0.000000e+00> : vector<2xf32>
    %592 = vector.multi_reduction <add>, %591, %cst_145 [1] : vector<2x16xf32> to vector<2xf32>
    %593 = vector.shape_cast %592 : vector<2xf32> to vector<2x1xf32>
    %594 = math.log %593 : vector<2x1xf32>
    %595 = vector.broadcast %578 : vector<2x1xf32> to vector<2x16xf32>
    %596 = arith.subf %576, %595 : vector<2x16xf32>
    %597 = vector.broadcast %594 : vector<2x1xf32> to vector<2x16xf32>
    %598 = arith.subf %596, %597 : vector<2x16xf32>
    %c0_146 = arith.constant 0 : index
    %c0_147 = arith.constant 0 : index
    %599 = vector.load %arg2[%c0_146, %c0_147] : memref<32x144xf32, #tpu.memory_space<vmem>>, vector<32x128xf32>
    %cst_148 = arith.constant dense<0.000000e+00> : vector<2x128xf32>
    %600 = tpu.matmul %572, %599, %cst_148 {dimension_numbers = #tpu.dot_dimension_numbers<[1], [0], [0], [1], [0, 0, 1, 1], [], []>, precision = #tpu.contract_precision<fp32>} : vector<2x32xf32>, vector<32x128xf32>, vector<2x128xf32> -> vector<2x128xf32>
    %601 = vector.extract_strided_slice %600 {offsets = [0, 0], sizes = [2, 32], strides = [1, 1]} : vector<2x128xf32> to vector<2x32xf32>
    %602 = vector.extract_strided_slice %600 {offsets = [0, 32], sizes = [2, 96], strides = [1, 1]} : vector<2x128xf32> to vector<2x96xf32>
    %603 = vector.shape_cast %601 : vector<2x32xf32> to vector<2x1x32xf32>
    %604 = vector.broadcast %603 : vector<2x1x32xf32> to vector<2x8x32xf32>
    %605 = arith.addf %604, %11 : vector<2x8x32xf32>
    %606 = math.tanh %605 : vector<2x8x32xf32>
    %607 = vector.shape_cast %3 : vector<1x32xf32> to vector<1x1x32xf32>
    %608 = vector.broadcast %607 : vector<1x1x32xf32> to vector<2x8x32xf32>
    %609 = arith.mulf %606, %608 : vector<2x8x32xf32>
    %cst_149 = arith.constant dense<0.000000e+00> : vector<2x8xf32>
    %610 = vector.multi_reduction <add>, %609, %cst_149 [2] : vector<2x8x32xf32> to vector<2x8xf32>
    %cst_150 = arith.constant dense<0xFF800000> : vector<2xf32>
    %611 = vector.multi_reduction <maximumf>, %610, %cst_150 [1] : vector<2x8xf32> to vector<2xf32>
    %612 = vector.shape_cast %611 : vector<2xf32> to vector<2x1xf32>
    %613 = vector.broadcast %612 : vector<2x1xf32> to vector<2x8xf32>
    %614 = arith.subf %610, %613 : vector<2x8xf32>
    %615 = math.exp %614 : vector<2x8xf32>
    %cst_151 = arith.constant dense<0.000000e+00> : vector<2xf32>
    %616 = vector.multi_reduction <add>, %615, %cst_151 [1] : vector<2x8xf32> to vector<2xf32>
    %617 = vector.shape_cast %616 : vector<2xf32> to vector<2x1xf32>
    %618 = tpu.reciprocal %617 {approx = true} : vector<2x1xf32> -> vector<2x1xf32>
    %619 = arith.mulf %617, %618 : vector<2x1xf32>
    %cst_152 = arith.constant 2.000000e+00 : f32
    %620 = vector.broadcast %cst_152 : f32 to vector<2x1xf32>
    %621 = arith.subf %620, %619 : vector<2x1xf32>
    %622 = arith.mulf %618, %621 : vector<2x1xf32>
    %623 = vector.broadcast %622 : vector<2x1xf32> to vector<2x8xf32>
    %624 = arith.mulf %615, %623 : vector<2x8xf32>
    %625 = vector.shape_cast %624 : vector<2x8xf32> to vector<2x8x1xf32>
    %626 = vector.broadcast %625 : vector<2x8x1xf32> to vector<2x8x32xf32>
    %627 = arith.mulf %626, %0 : vector<2x8x32xf32>
    %cst_153 = arith.constant dense<0.000000e+00> : vector<2x32xf32>
    %628 = vector.multi_reduction <add>, %627, %cst_153 [1] : vector<2x8x32xf32> to vector<2x32xf32>
    %629 = tpu.concatenate %588, %628 in 1 : vector<2x16xf32>, vector<2x32xf32> -> vector<2x48xf32>
    %c0_154 = arith.constant 0 : index
    %c0_155 = arith.constant 0 : index
    %630 = vector.load %arg3[%c0_154, %c0_155] : memref<48x96xf32, #tpu.memory_space<vmem>>, vector<48x96xf32>
    %cst_156 = arith.constant dense<0.000000e+00> : vector<2x96xf32>
    %631 = tpu.matmul %629, %630, %cst_156 {dimension_numbers = #tpu.dot_dimension_numbers<[1], [0], [0], [1], [0, 0, 1, 1], [], []>, precision = #tpu.contract_precision<fp32>} : vector<2x48xf32>, vector<48x96xf32>, vector<2x96xf32> -> vector<2x96xf32>
    %632 = vector.broadcast %4 : vector<1x96xf32> to vector<2x96xf32>
    %633 = arith.addf %631, %632 : vector<2x96xf32>
    %634 = vector.extract_strided_slice %633 {offsets = [0, 0], sizes = [2, 64], strides = [1, 1]} : vector<2x96xf32> to vector<2x64xf32>
    %635 = vector.extract_strided_slice %602 {offsets = [0, 0], sizes = [2, 64], strides = [1, 1]} : vector<2x96xf32> to vector<2x64xf32>
    %636 = arith.addf %634, %635 : vector<2x64xf32>
    %637 = arith.negf %636 : vector<2x64xf32>
    %638 = math.exp %637 : vector<2x64xf32>
    %cst_157 = arith.constant 1.000000e+00 : f32
    %639 = vector.broadcast %cst_157 : f32 to vector<2x64xf32>
    %640 = arith.addf %639, %638 : vector<2x64xf32>
    %641 = arith.divf %639, %640 : vector<2x64xf32>
    %642 = vector.extract_strided_slice %641 {offsets = [0, 0], sizes = [2, 32], strides = [1, 1]} : vector<2x64xf32> to vector<2x32xf32>
    %643 = vector.extract_strided_slice %641 {offsets = [0, 32], sizes = [2, 32], strides = [1, 1]} : vector<2x64xf32> to vector<2x32xf32>
    %644 = vector.extract_strided_slice %633 {offsets = [0, 64], sizes = [2, 32], strides = [1, 1]} : vector<2x96xf32> to vector<2x32xf32>
    %645 = vector.extract_strided_slice %602 {offsets = [0, 64], sizes = [2, 32], strides = [1, 1]} : vector<2x96xf32> to vector<2x32xf32>
    %646 = vector.broadcast %5 : vector<1x32xf32> to vector<2x32xf32>
    %647 = arith.addf %645, %646 : vector<2x32xf32>
    %648 = arith.mulf %642, %647 : vector<2x32xf32>
    %649 = arith.addf %644, %648 : vector<2x32xf32>
    %650 = math.tanh %649 : vector<2x32xf32>
    %cst_158 = arith.constant 1.000000e+00 : f32
    %651 = vector.broadcast %cst_158 : f32 to vector<2x32xf32>
    %652 = arith.subf %651, %643 : vector<2x32xf32>
    %653 = arith.mulf %652, %650 : vector<2x32xf32>
    %654 = arith.mulf %643, %572 : vector<2x32xf32>
    %655 = arith.addf %653, %654 : vector<2x32xf32>
    %c0_159 = arith.constant 0 : index
    %c128_160 = arith.constant 128 : index
    %656 = vector.load %arg2[%c0_159, %c128_160] : memref<32x144xf32, #tpu.memory_space<vmem>>, vector<32x16xf32>
    %cst_161 = arith.constant dense<0.000000e+00> : vector<2x16xf32>
    %657 = tpu.matmul %655, %656, %cst_161 {dimension_numbers = #tpu.dot_dimension_numbers<[1], [0], [0], [1], [0, 0, 1, 1], [], []>, precision = #tpu.contract_precision<fp32>} : vector<2x32xf32>, vector<32x16xf32>, vector<2x16xf32> -> vector<2x16xf32>
    %658 = vector.broadcast %6 : vector<1x16xf32> to vector<2x16xf32>
    %659 = arith.addf %657, %658 : vector<2x16xf32>
    %cst_162 = arith.constant dense<0xFF800000> : vector<2xf32>
    %660 = vector.multi_reduction <maximumf>, %659, %cst_162 [1] : vector<2x16xf32> to vector<2xf32>
    %661 = vector.shape_cast %660 : vector<2xf32> to vector<2x1xf32>
    %662 = vector.broadcast %661 : vector<2x1xf32> to vector<2x16xf32>
    %663 = arith.subf %659, %662 : vector<2x16xf32>
    %664 = math.exp %663 : vector<2x16xf32>
    %cst_163 = arith.constant dense<0.000000e+00> : vector<2xf32>
    %665 = vector.multi_reduction <add>, %664, %cst_163 [1] : vector<2x16xf32> to vector<2xf32>
    %666 = vector.shape_cast %665 : vector<2xf32> to vector<2x1xf32>
    %667 = math.log %666 : vector<2x1xf32>
    %668 = vector.broadcast %661 : vector<2x1xf32> to vector<2x16xf32>
    %669 = arith.subf %659, %668 : vector<2x16xf32>
    %670 = vector.broadcast %667 : vector<2x1xf32> to vector<2x16xf32>
    %671 = arith.subf %669, %670 : vector<2x16xf32>
    %c0_164 = arith.constant 0 : index
    %c0_165 = arith.constant 0 : index
    %672 = vector.load %arg7[%c0_164, %c0_165] : memref<2x32xf32, #tpu.memory_space<vmem>>, vector<2x32xf32>
    tpu.vector_store %arg7[%c0_164, %c0_165], %655 {strides = array<i32>} : memref<2x32xf32, #tpu.memory_space<vmem>>, vector<2x32xf32>,
    %673 = tpu.concatenate %100, %183, %266, %349, %432, %515, %598, %671 in 1 : vector<2x16xf32>, vector<2x16xf32>, vector<2x16xf32>, vector<2x16xf32>, vector<2x16xf32>, vector<2x16xf32>, vector<2x16xf32>, vector<2x16xf32> -> vector<2x128xf32>
    %c0_166 = arith.constant 0 : index
    %c0_167 = arith.constant 0 : index
    %674 = vector.load %arg6[%c0_166, %c0_167] : memref<2x128xf32, #tpu.memory_space<vmem>>, vector<2x128xf32>
    tpu.vector_store %arg6[%c0_166, %c0_167], %673 {strides = array<i32>} : memref<2x128xf32, #tpu.memory_space<vmem>>, vector<2x128xf32>,
    %675 = tpu.concatenate %43, %126, %209, %292, %375, %458, %541, %624 in 1 : vector<2x8xf32>, vector<2x8xf32>, vector<2x8xf32>, vector<2x8xf32>, vector<2x8xf32>, vector<2x8xf32>, vector<2x8xf32>, vector<2x8xf32> -> vector<2x64xf32>
    %c0_168 = arith.constant 0 : index
    %c0_169 = arith.constant 0 : index
    %676 = vector.load %arg8[%c0_168, %c0_169] : memref<2x64xf32, #tpu.memory_space<vmem>>, vector<2x64xf32>
    tpu.vector_store %arg8[%c0_168, %c0_169], %675 {strides = array<i32>} : memref<2x64xf32, #tpu.memory_space<vmem>>, vector<2x64xf32>,
    return
  }
}

</mosaic_0001>

<bundles_post_ra>
// kernel: tpu_custom_call.1
= control target key start
LH: loop header
LB: loop body
LE: loop exit
PB: predicated region body
PF: predicated region fallthrough
CT: control target
= control target key end

     0   :  { %14 = vsyncpa [#allocation3], 0  ;;  %s8597_s0 = inlined_call_operand.hbm [shape: f32[2,8,32], index: 0, kind: input, shape index: {}]   ;;  %s8598_s1 = inlined_call_operand.hbm [shape: f32[2,32], index: 1, kind: input, shape index: {}]   ;;  %s8599_s2 = inlined_call_operand.hbm [shape: f32[32,144], index: 2, kind: input, shape index: {}]   ;;  %s8600_s3 = inlined_call_operand.hbm [shape: f32[48,96], index: 3, kind: input, shape index: {}]   ;;  %s8601_s4 = inlined_call_operand.hbm [shape: f32[32,32], index: 4, kind: input, shape index: {}]   ;;  %s8602_s5 = inlined_call_operand.hbm [shape: f32[5,96], index: 5, kind: input, shape index: {}]   ;;  %s8603_s6 = inlined_call_operand.hbm [shape: f32[2,128], index: 6, kind: output, shape index: {0}]   ;;  %s8604_s7 = inlined_call_operand.hbm [shape: f32[2,32], index: 7, kind: output, shape index: {1}]   ;;  %s8605_s8 = inlined_call_operand.hbm [shape: f32[2,64], index: 8, kind: output, shape index: {2}]  }
   0x1   :  { %15 = vsyncpa [#allocation6], 0 }
   0x2   :  { %16 = vsyncpa [#allocation9], 0 }
   0x3   :  { %17 = vsyncpa [#allocation12], 0 }
   0x4   :  { %18 = vsyncpa [#allocation4], 0  ;;  %s38_s29 = sshll.u32 %s8598_s1, 4  ;;  %s39_s29 = int_to_ptr.hbm [resolvable:$true] %s38_s29 }
   0x5   :  { %19 = vsyncpa [#allocation15], 0  ;;  %s7038_s30 = smov [#allocation5]   ;;  %s61_s12 = sshll.u32 %s8600_s3, 4  ;;  %s62_s12 = int_to_ptr.hbm [resolvable:$true] %s61_s12 }
   0x6   :  { %s40_s9 = sshll.u32 %s7038_s30, 4  ;;  %s7039_s13 = smov [#allocation8]   ;;  %s41_s9 = int_to_ptr.vmem [resolvable:$true] %s40_s9 }
   0x7   :  { %43 = dma.hbm_to_vmem [thread:$0]  %s39_s29, 32, %s41_s9, [#allocation6]  }
   0x8   :  { %s63_s14 = sshll.u32 %s7039_s13, 4  ;;  %s24_s17 = sshll.u32 %s8597_s0, 4  ;;  %s64_s14 = int_to_ptr.vmem [resolvable:$true] %s63_s14  ;;  %s25_s17 = int_to_ptr.hbm [resolvable:$true] %s24_s17 }
   0x9   :  { %s7040_s1 = smov 128   ;;  %s7041_s18 = smov 8  }
   0xa   :  { %69 = dma.hbm_to_vmem [thread:$0]  %s62_s12, 768, %s64_s14, [#allocation9], %s7040_s1, %s7040_s1, %s7041_s18  }
   0xb   :  { %s48_s21 = sshll.u32 %s8599_s2, 4  ;;  %s7042_s22 = smov [#allocation2]   ;;  %s49_s21 = int_to_ptr.hbm [resolvable:$true] %s48_s21 }
   0xc   :  { %s26_s23 = sshll.u32 %s7042_s22, 4  ;;  %s7043_s3 = smov [#allocation7]   ;;  %s27_s23 = int_to_ptr.vmem [resolvable:$true] %s26_s23 }
   0xd   :  { %32 = dma.hbm_to_vmem [thread:$0]  %s25_s17, 256, %s27_s23, [#allocation3], %s7040_s1, %s7040_s1, %s7041_s18  }
   0xe   :  { %s50_s24 = sshll.u32 %s7043_s3, 4  ;;  %s7044_s25 = smov 256   ;;  %s51_s24 = int_to_ptr.vmem [resolvable:$true] %s50_s24 }
   0xf   :  { %s7045_s26 = smov 16   ;;  %s74_s28 = sshll.u32 %s8601_s4, 4  ;;  %s75_s28 = int_to_ptr.hbm [resolvable:$true] %s74_s28 }
  0x10   :  { %56 = dma.hbm_to_vmem [thread:$0]  %s49_s21, 1024, %s51_s24, [#allocation6], %s7044_s25, %s7044_s25, %s7045_s26  }
  0x11   :  { %s7046_s29 = smov [#allocation10]   ;;  %s88_s10 = sshll.u32 %s8602_s5, 4  ;;  %s89_s10 = int_to_ptr.hbm [resolvable:$true] %s88_s10 }
  0x12   :  { %s76_s30 = sshll.u32 %s7046_s29, 4  ;;  %s7047_s11 = smov [#allocation11]   ;;  %s77_s30 = int_to_ptr.vmem [resolvable:$true] %s76_s30 }
  0x13   :  { %82 = dma.hbm_to_vmem [thread:$0]  %s75_s28, 512, %s77_s30, [#allocation9], %s7040_s1, %s7040_s1, %s7041_s18  }
  0x14   :  { %s90_s12 = sshll.u32 %s7047_s11, 4  ;;  %s91_s12 = int_to_ptr.vmem [resolvable:$true] %s90_s12 }
  0x15   :  { %93 = dma.hbm_to_vmem [thread:$0]  %s89_s10, 128, %s91_s12, [#allocation12]  }
  0x16   :  { %7026 = dma.done.wait [#allocation3], 256  }
  0x17   :  { %7027 = vsyncadd [#allocation3], 4294967040 }
  0x18   :  { %7028 = dma.done.wait [#allocation6], 1056  }
  0x19   :  { %7029 = vsyncadd [#allocation6], 4294966240 }
  0x1a   :  { %7030 = dma.done.wait [#allocation9], 1280  }
  0x1b   :  { %7031 = vsyncadd [#allocation9], 4294966016 }
  0x1c   :  { %7032 = dma.done.wait [#allocation12], 128  }
  0x1d   :  { %7033 = vsyncadd [#allocation12], 4294967168  ;;  %vm126_vm0 = vcmask 261120   ;;  %v124_v0 = vld [vmem:[#allocation10 + $0x18] sm:$0xff]  ;;  %v123_v1 = vld [vmem:[#allocation10 + $0x10] sm:$0xff]  ;;  %vm570_vm1 = vcmask 1041409  }
  0x1e   :  { %v122_v2 = vld [vmem:[#allocation10 + $0x8] sm:$0xff]  ;;  %v7123_v3 = vand.u32 4294901760, %v124_v0  ;;  %v7125_v4 = vand.u32 4294901760, %v123_v1  ;;  %v121_v6 = vld [vmem:[#allocation10] sm:$0xff]  ;;  %v357_v12 = vld [vmem:[#allocation7 + $0x20] sm:$0xff]  ;;  %vm573_vm2 = vcmask 58368  }
  0x1f   :  { %v7127_v5 = vand.u32 4294901760, %v122_v2  ;;  %v7129_v7 = vld [vmem:[#allocation2] sm:$0xff]  ;;  %v7131_v9 = vand.u32 4294901760, %v121_v6  ;;  %v7137_v13 = vld [vmem:[#allocation2 + $0x8] sm:$0xff]  ;;  %v7156_v20 = vand.u32 4294901760, %v357_v12  ;;  %v355_v38 = vld [vmem:[#allocation7] sm:$0xff] }
  0x20   :  { %v358_v8 = vld [vmem:[#allocation7 + $0x30] sm:$0xff]  ;;  %v128_v10 = vsel %vm126_vm0, %v7129_v7, 0  ;;  %146 = vmatpush.msra.mxu0 %v7123_v3  ;;  %v183_v14 = vsub.f32 %v124_v0, %v7123_v3  ;;  %v7142_v15 = vsub.f32 %v123_v1, %v7125_v4  ;;  %263 = vmatpush.msra.mxu3 %v7123_v3  ;;  %v131_v21 = vsel %vm126_vm0, %v7137_v13, 0  ;;  %v7185_v39 = vld [vmem:[#allocation5] sm:$0x3]  ;;  %s7049_s4 = smov 96  }
  0x21   :  { %v7135_v11 = vand.u32 4294901760, %v358_v8  ;;  %v7146_v16 = vsub.f32 %v122_v2, %v7127_v5  ;;  %v7148_v17 = vand.u32 4294901760, %v128_v10  ;;  %v7151_v18 = vsub.f32 %v121_v6, %v7131_v9  ;;  %v356_v37 = vld [vmem:[#allocation7 + $0x10] sm:$0xff]  ;;  %s7051_s5 = smov 32   ;;  %s7052_s13 = smov 64  }
  0x22   :  { %229 = vmatpush.msra.mxu2 %v183_v14  ;;  %148 = vmatpush.msra.mxu0 %v7125_v4  ;;  %v184_v22 = vand.u32 4294901760, %v183_v14  ;;  %v190_v24 = vand.u32 4294901760, %v7142_v15  ;;  %v7169_v28 = vand.u32 4294901760, %v131_v21  ;;  %v7172_v29 = vsub.f32 %v357_v12, %v7156_v20  ;;  %s7053_s14 = smov 48   ;;  %s7054_s15 = smov 80  }
  0x23   :  { %v7154_v19 = vsub.f32 %v358_v8, %v7135_v11  ;;  %v154_v23 = vsub.f32 %v128_v10, %v7148_v17  ;;  %v196_v25 = vand.u32 4294901760, %v7146_v16  ;;  %265 = vmatpush.msra.mxu3 %v7125_v4  ;;  %v202_v27 = vand.u32 4294901760, %v7151_v18  ;;  %s7055_s16 = smov [#allocation14]   ;;  %s6569_s19 = sshll.u32 %s8604_s7, 4  ;;  %s6570_s19 = int_to_ptr.hbm [resolvable:$true] %s6569_s19 }
  0x24   :  { %232 = vmatpush.msra.mxu2 %v7142_v15  ;;  %150 = vmatpush.msra.mxu0 %v7127_v5  ;;  %v185_v30 = vsub.f32 %v183_v14, %v184_v22  ;;  %v191_v32 = vsub.f32 %v7142_v15, %v190_v24  ;;  %v162_v35 = vsub.f32 %v131_v21, %v7169_v28  ;;  %v7183_v36 = vand.u32 4294901760, %v7172_v29  ;;  %s6567_s17 = sshll.u32 %s7055_s16, 4  ;;  %s7056_s20 = smov [#allocation16]   ;;  %s6568_s17 = int_to_ptr.vmem [resolvable:$true] %s6567_s17 }
  0x25   :  { %v7166_v26 = vand.u32 4294901760, %v7154_v19  ;;  %v155_v31 = vand.u32 4294901760, %v154_v23  ;;  %v197_v33 = vsub.f32 %v7146_v16, %v196_v25  ;;  %267 = vmatpush.msra.mxu3 %v7127_v5  ;;  %v203_v43 = vsub.f32 %v7151_v18, %v202_v27  ;;  %s6578_s21 = sshll.u32 %s7056_s20, 4  ;;  %s6580_s3 = sshll.u32 %s8605_s8, 4  ;;  %s6579_s21 = int_to_ptr.vmem [resolvable:$true] %s6578_s21  ;;  %s6581_s3 = int_to_ptr.hbm [resolvable:$true] %s6580_s3 }
  0x26   :  { %235 = vmatpush.msra.mxu2 %v7146_v16  ;;  %152 = vmatpush.msra.mxu0 %v7131_v9  ;;  %v186_v40 = vand.u32 4294901760, %v185_v30  ;;  %v192_v42 = vand.u32 4294901760, %v191_v32  ;;  %v163_v46 = vand.u32 4294901760, %v162_v35  ;;  %v412_v47 = vsub.f32 %v7172_v29, %v7183_v36  ;;  %s7057_s24 = smov 112   ;;  %s7058_s7 = smov [#allocation13]  }
  0x27   :  { %v406_v34 = vsub.f32 %v7154_v19, %v7166_v26  ;;  %v156_v41 = vsub.f32 %v154_v23, %v155_v31  ;;  %269 = vmatpush.msra.mxu3 %v7131_v9  ;;  %v198_v44 = vand.u32 4294901760, %v197_v33  ;;  %v7196_v49 = vand.u32 4294901760, %v356_v37  ;;  %s6556_s8 = sshll.u32 %s7058_s7, 4  ;;  %s6558_s0 = sshll.u32 %s8603_s6, 4  ;;  %s6557_s8 = int_to_ptr.vmem [resolvable:$true] %s6556_s8  ;;  %s6559_s0 = int_to_ptr.hbm [resolvable:$true] %s6558_s0 }
  0x28   :  { %298 = vmatpush.msrb.mxu0 %v184_v22  ;;  %187 = vmatpush.msra.mxu1 %v186_v40  ;;  %v7198_v50 = vand.u32 4294901760, %v355_v38  ;;  %v360_v51 = vsel %vm126_vm0, %v7185_v39, 0  ;;  %v7202_v52 = vand.u32 4294901760, %v412_v47  ;;  %v204_v54 = vand.u32 4294901760, %v203_v43 }
  0x29   :  { %v7191_v45 = vand.u32 4294901760, %v406_v34  ;;  %238 = vmatpush.msra.mxu2 %v7151_v18  ;;  %v157_v48 = vand.u32 4294901760, %v156_v41  ;;  %273 = vmatmul.f32.vlgmr.msra.gmra.mxu3 %v155_v31  ;;  %v7204_v53 = vand.u32 4294901760, %v360_v51  ;;  %v164_v55 = vsub.f32 %v162_v35, %v163_v46 }
  0x2a   :  { %241 = vmatmul.f32.vlgmr.msra.gmra.mxu2 %v154_v23  ;;  %193 = vmatpush.msra.mxu1 %v192_v42  ;;  %v7207_v56 = vsub.f32 %v356_v37, %v7196_v49  ;;  %v7210_v57 = vsub.f32 %v355_v38, %v7198_v50  ;;  %vm646_vm4 = vcmask 130048   ;;  %vm655_vm5 = vcmask 392192  }
  0x2b   :  { %158 = vmatmul.f32.vlgmr.msra.gmra.mxu0 %v157_v48  ;;  %375 = vmatpush.msrb.mxu2 %v7135_v11  ;;  %v383_v58 = vsub.f32 %v360_v51, %v7204_v53  ;;  %v165_v62 = vand.u32 4294901760, %v164_v55  ;;  %vm1116_vm10 = vcmask 123904  }
  0x2c   :  { %8729 = vst [vmem:[#allocation23_spill] sm:$0xff] %v7210_v57  ;;  %408 = vmatpush.msrb.mxu3 %v7191_v45  ;;  %199 = vmatpush.msra.mxu1 %v198_v44  ;;  %v7216_v59 = vand.u32 4294901760, %v7207_v56  ;;  %v7219_v60 = vand.u32 4294901760, %v7210_v57 }
  0x2d   :  { %302 = vmatpush.msrb.mxu0 %v190_v24  ;;  %377 = vmatpush.msrb.mxu2 %v7156_v20  ;;  %v384_v61 = vand.u32 4294901760, %v383_v58 }
  0x2e   :  { %414 = vmatpush.msrb.mxu3 %v7202_v52  ;;  %205 = vmatpush.msra.mxu1 %v204_v54  ;;  %v418_v63 = vsub.f32 %v7207_v56, %v7216_v59  ;;  %v424_v0 = vsub.f32 %v7210_v57, %v7219_v60 }
  0x2f   :  { %306 = vmatpush.msrb.mxu0 %v196_v25  ;;  %207 = vmatmul.f32.vlgmr.msra.gmra.mxu1 %v7148_v17  ;;  %v385_v2 = vsub.f32 %v383_v58, %v384_v61 }
  0x30   :  { %379 = vmatpush.msrb.mxu2 %v7196_v49  ;;  %333 = vmatpush.msrb.mxu1 %v7123_v3  ;;  %v7230_v1 = vand.u32 4294901760, %v418_v63  ;;  %v7232_v6 = vand.u32 4294901760, %v424_v0 }
  0x31   :  { %310 = vmatpush.msrb.mxu0 %v202_v27  ;;  %279 = vmatmul.f32.gmra.mxu3 %v163_v46  ;;  %v386_v3 = vand.u32 4294901760, %v385_v2 }
  0x32   :  { %246 = vmatmul.f32.gmra.mxu2 %v162_v35  ;;  %8730 = vst [vmem:[#allocation24_spill] sm:$0xff] %v7232_v6  ;;  %335 = vmatpush.msrb.mxu1 %v7125_v4 }
  0x33   :  { %166 = vmatmul.f32.gmra.mxu0 %v165_v62  ;;  %420 = vmatpush.msrb.mxu3 %v7230_v1 }
  0x34   :  { %381 = vmatpush.msrb.mxu2 %v7198_v50  ;;  %337 = vmatpush.msrb.mxu1 %v7127_v5 }
  0x35   :  { %426 = vmatpush.msrb.mxu3 %v7232_v6  ;;  %504 = vmatpush.msra.mxu0 %v7166_v26 }
  0x36   :  { %446 = vmatpush.msra.mxu2 %v7154_v19  ;;  %339 = vmatpush.msrb.mxu1 %v7131_v9 }
  0x37   :  { %211 = vmatmul.f32.gmra.mxu1 %v7169_v28  ;;  %475 = vmatpush.msra.mxu3 %v7135_v11 }
  0x38   :  { %449 = vmatpush.msra.mxu2 %v7172_v29  ;;  %535 = vmatpush.msra.mxu1 %v7135_v11 }
  0x39   :  { %428 = vmatmul.f32.vlgmr.msrb.gmra.mxu3 %v7204_v53  ;;  %508 = vmatpush.msra.mxu0 %v7183_v36 }
  0x3a   :  { %452 = vmatpush.msra.mxu2 %v7207_v56  ;;  %477 = vmatpush.msra.mxu3 %v7156_v20 }
  0x3b   :  { %387 = vmatmul.f32.vlgmr.msrb.gmra.mxu2 %v386_v3  ;;  %312 = vmatmul.f32.vlgmr.msrb.gmra.mxu0 %v7148_v17 }
  0x3c   :  { %455 = vmatpush.msra.mxu2 %v7210_v57  ;;  %479 = vmatpush.msra.mxu3 %v7196_v49 }
  0x3d   :  { %537 = vmatpush.msra.mxu1 %v7156_v20  ;;  %512 = vmatpush.msra.mxu0 %v7216_v59 }
  0x3e   :  { %481 = vmatpush.msra.mxu3 %v7198_v50 }
  0x3f   :  { %539 = vmatpush.msra.mxu1 %v7196_v49  ;;  %516 = vmatpush.msra.mxu0 %v7219_v60 }
  0x40   :  { %341 = vmatmul.f32.vlgmr.msrb.gmra.mxu1 %v7148_v17  ;;  %v7264_v17 = vld [vmem:[#allocation11] sm:$0x1f] }
  0x41   :  { %541 = vmatpush.msra.mxu1 %v7198_v50  ;;  %485 = vmatmul.f32.vlgmr.msra.gmra.mxu3 %v384_v61  ;;  %8731 = vst [vmem:[#allocation25_spill] sm:$0xff] %v7264_v17  ;;  %v125_v18 = vperm.slane %v7264_v17, 0  ;;  %v7278_v0 = vperm.slane %v7264_v17, 1 }
  0x43   :  { %458 = vmatmul.f32.vlgmr.msra.gmra.mxu2 %v383_v58  ;;  %316 = vmatmul.f32.gmra.mxu0 %v7169_v28  ;;  %8734 = vst [vmem:[#allocation28_spill] sm:$0xff] %v7278_v0 }
  0x48   :  { %345 = vmatmul.f32.gmra.mxu1 %v7169_v28 }
  0x4b   :  { %518 = vmatmul.f32.vlgmr.msra.gmra.mxu0 %v7204_v53 }
  0x50   :  { %543 = vmatmul.f32.vlgmr.msra.gmra.mxu1 %v7204_v53 }
  0xa8   :  { %v159_v4 = vpop.f32.mrf.mxu0 }
  0xa9   :  { %v160_v24 = vadd.f32 %v159_v4, %v125_v18 }
  0xac   :  { %v208_v5 = vpop.f32.mrf.mxu1  ;;  %v274_v9 = vpop.f32.mrf.mxu3 }
  0xad   :  { %v242_v8 = vpop.f32.mrf.mxu2  ;;  %v209_v28 = vadd.f32 %v208_v5, %v160_v24 }
  0xaf   :  { %v243_v37 = vadd.f32 %v242_v8, %v209_v28 }
  0xb0   :  { %v167_v10 = vpop.f32.mrf.mxu0 }
  0xb1   :  { %v168_v27 = vadd.f32 %v167_v10, %v125_v18  ;;  %v275_v42 = vadd.f32 %v274_v9, %v243_v37 }
  0xb4   :  { %v212_v12 = vpop.f32.mrf.mxu1  ;;  %v280_v15 = vpop.f32.mrf.mxu3 }
  0xb5   :  { %v247_v14 = vpop.f32.mrf.mxu2  ;;  %v213_v33 = vadd.f32 %v212_v12, %v168_v27  ;;  %v350_v12 = vlaneseq }
  0xb7   :  { %v248_v41 = vadd.f32 %v247_v14, %v213_v33  ;;  %v7284_v14 = vand.u32 127, %v350_v12 }
  0xb8   :  { %v313_v16 = vpop.f32.mrf.mxu0 }
  0xb9   :  { %v281_v46 = vadd.f32 %v280_v15, %v248_v41  ;;  %v314_v47 = vadd.f32 %v313_v16, %v275_v42  ;;  %8735 = vst [vmem:[#allocation29_spill] sm:$0xff] %v7284_v14  ;;  %vm352_vm3 = vcmp.eq.s32.totalorder %v7284_v14, 1 }
  0xbc   :  { %v429_v23 = vpop.f32.mrf.mxu3 }
  0xbd   :  { %v342_v21 = vpop.f32.mrf.mxu1 }
  0xbe   :  { %v388_v22 = vpop.f32.mrf.mxu2  ;;  %v7269_v51 = vadd.f32 %v342_v21, %v314_v47 }
  0xbf   :  { %v430_v30 = vadd.f32 %v429_v23, %v388_v22  ;;  %v7048_v23 = vmov 0  }
  0xc0   :  { %v317_v25 = vpop.f32.mrf.mxu0  ;;  %8732 = vst [vmem:[#allocation26_spill] sm:$0xff] %v7269_v51  ;;  %6640 = vset.pattern.permute.xlu2 %v7048_v23  ;;  %6639 = vset.pattern.permute.xlu1 %v7048_v23 }
  0xc1   :  { %v318_v53 = vadd.f32 %v317_v25, %v281_v46  ;;  %6641 = vset.pattern.permute.xlu0 %v7048_v23 }
  0xc4   :  { %v486_v35 = vpop.f32.mrf.mxu3 }
  0xc5   :  { %v346_v31 = vpop.f32.mrf.mxu1 }
  0xc6   :  { %v459_v32 = vpop.f32.mrf.mxu2  ;;  %v7273_v58 = vadd.f32 %v346_v31, %v318_v53 }
  0xc7   :  { %v460_v34 = vadd.f32 %v459_v32, %v430_v30 }
  0xc8   :  { %v519_v40 = vpop.f32.mrf.mxu0  ;;  %8733 = vst [vmem:[#allocation27_spill] sm:$0xff] %v7273_v58 }
  0xc9   :  { %v487_v38 = vadd.f32 %v486_v35, %v460_v34 }
  0xcb   :  { %v520_v43 = vadd.f32 %v519_v40, %v487_v38 }
  0xcd   :  { %v544_v44 = vpop.f32.mrf.mxu1 }
  0xce   :  { %v7267_v48 = vadd.f32 %v544_v44, %v520_v43 }
  0xd0   :  { %v548_v54 = vrot.slane %v7267_v48, 1  ;;  %v549_v55 = vperm.slane %v7267_v48, 0 }
  0xd2   :  { %v550_v61 = vperm.slane %v548_v54, 0  ;;  %v553_v62 = vadd.f32 %v549_v55, %v7269_v51 }
  0xd4   :  { %6642 = vtanh.f32 %v553_v62  ;;  %v554_v63 = vadd.f32 %v550_v61, %v7273_v58 }
  0xd6   :  { %6644 = vtanh.f32 %v554_v63  ;;  %v653_v63 = vld [vmem:[#allocation8 + $0x28] sm:$0xff] }
  0xda   :  { %v6643_v2 = vpop.eup %6642 }
  0xdb   :  { %v558_v3 = vmul.f32 %v6643_v2, %v7278_v0  ;;  %v652_v2 = vld [vmem:[#allocation8 + $0x20] sm:$0xff] }
  0xdc   :  { %v6645_v5 = vpop.eup %6644 }
  0xdd   :  { %v560_v4 = vsel %vm126_vm0, %v558_v3, 0.0  ;;  %v559_v8 = vmul.f32 %v6645_v5, %v7278_v0  ;;  %v651_v3 = vld [vmem:[#allocation8 + $0x18] sm:$0xff]  ;;  %v7298_v5 = vand.u32 4294901760, %v652_v2 }
  0xde   :  { %561 = vadd.xlane.f32.xlu0 %v560_v4  ;;  %v7296_v4 = vand.u32 4294901760, %v653_v63 }
  0xdf   :  { %v563_v9 = vsel %vm126_vm0, %v559_v8, 0.0  ;;  %8736 = vst [vmem:[#allocation30_spill] sm:$0xff] %v7298_v5  ;;  %v7300_v8 = vand.u32 4294901760, %v651_v3 }
  0xe0   :  { %786 = vmatpush.msrb.mxu1 %v7296_v4  ;;  %670 = vmatpush.msrb.mxu2 %v7296_v4 }
  0xe1   :  { %8737 = vst [vmem:[#allocation31_spill] sm:$0xff] %v7300_v8 }
  0xe2   :  { %788 = vmatpush.msrb.mxu1 %v7298_v5  ;;  %672 = vmatpush.msrb.mxu2 %v7298_v5 }
  0xe4   :  { %790 = vmatpush.msrb.mxu1 %v7300_v8  ;;  %674 = vmatpush.msrb.mxu2 %v7300_v8 }
  0xe6   :  { %564 = vadd.xlane.f32.xlu0 %v563_v9  ;;  %v650_v9 = vld [vmem:[#allocation8 + $0x10] sm:$0xff] }
  0xe7   :  { %v7302_v12 = vand.u32 4294901760, %v650_v9 }
  0xe9   :  { %8738 = vst [vmem:[#allocation32_spill] sm:$0xff] %v7302_v12  ;;  %792 = vmatpush.msrb.mxu1 %v7302_v12  ;;  %676 = vmatpush.msrb.mxu2 %v7302_v12 }
 0x151   :  { %v562_v10 = vpop.xlane.xlu0 %561 }
 0x152   :  { %v568_v16 = vperm.slane %v562_v10, %v7284_v14 }
 0x159   :  { %v565_v15 = vpop.xlane.xlu0 %564 }
 0x15a   :  { %v569_v18 = vperm.slane %v565_v15, %v7284_v14 }
 0x15c   :  { %v571_v21 = vsel %vm570_vm1, %v569_v18, %v568_v16  ;;  %v7307_v16 = vsub.f32 %v653_v63, %v7296_v4  ;;  %v7310_v18 = vsub.f32 %v652_v2, %v7298_v5 }
 0x15d   :  { %v574_v22 = vsel %vm573_vm2, %v571_v21, -inf  ;;  %v7313_v21 = vsub.f32 %v651_v3, %v7300_v8 }
 0x15e   :  { %575 = vmax.xlane.f32.xlu1 %v574_v22  ;;  %8740 = vst [vmem:[#allocation34_spill] sm:$0xff] %v7310_v18  ;;  %v7318_v22 = vsub.f32 %v650_v9, %v7302_v12  ;;  %753 = vmatpush.msrb.mxu0 %v7307_v16 }
 0x15f   :  { %8741 = vst [vmem:[#allocation35_spill] sm:$0xff] %v7313_v21 }
 0x160   :  { %8742 = vst [vmem:[#allocation36_spill] sm:$0xff] %v7318_v22  ;;  %756 = vmatpush.msrb.mxu0 %v7310_v18 }
 0x162   :  { %759 = vmatpush.msrb.mxu0 %v7313_v21 }
 0x164   :  { %762 = vmatpush.msrb.mxu0 %v7318_v22 }
 0x1d1   :  { %v576_v24 = vpop.xlane.xlu1 %575 }
 0x1d2   :  { %v578_v25 = vperm.slane %v576_v24, 0  ;;  %v579_v27 = vperm.slane %v576_v24, 1  ;;  %v7324_v24 = vand.u32 4294901760, %v7307_v16 }
 0x1d4   :  { %v582_v28 = vsub.f32 %v562_v10, %v578_v25  ;;  %v583_v30 = vsub.f32 %v565_v15, %v579_v27  ;;  %v649_v10 = vld [vmem:[#allocation8 + $0x8] sm:$0xff]  ;;  %8744 = vst [vmem:[#allocation38_spill] sm:$0xff] %v7324_v24  ;;  %v7327_v25 = vand.u32 4294901760, %v7310_v18  ;;  %v7330_v27 = vand.u32 4294901760, %v7313_v21 }
 0x1d5   :  { %v7304_v15 = vand.u32 4294901760, %v649_v10 }
 0x1d6   :  { %v584_v31 = vmul.f32 1.442695, %v582_v28  ;;  %v586_v32 = vmul.f32 1.442695, %v583_v30  ;;  %8745 = vst [vmem:[#allocation39_spill] sm:$0xff] %v7327_v25  ;;  %v7335_v28 = vand.u32 4294901760, %v7318_v22 }
 0x1d7   :  { %8739 = vst [vmem:[#allocation33_spill] sm:$0xff] %v7304_v15  ;;  %v7321_v23 = vsub.f32 %v649_v10, %v7304_v15  ;;  %794 = vmatpush.msrb.mxu1 %v7304_v15  ;;  %678 = vmatpush.msrb.mxu2 %v7304_v15 }
 0x1d8   :  { %6646 = vpow2.f32 %v584_v31  ;;  %8746 = vst [vmem:[#allocation40_spill] sm:$0xff] %v7330_v27 }
 0x1d9   :  { %6648 = vpow2.f32 %v586_v32  ;;  %8743 = vst [vmem:[#allocation37_spill] sm:$0xff] %v7321_v23  ;;  %v703_v32 = vsub.f32 %v7307_v16, %v7324_v24  ;;  %765 = vmatpush.msrb.mxu0 %v7321_v23 }
 0x1da   :  { %8747 = vst [vmem:[#allocation41_spill] sm:$0xff] %v7335_v28 }
 0x1de   :  { %v6647_v33 = vpop.eup %6646 }
 0x1df   :  { %v6649_v34 = vpop.eup %6648  ;;  %591 = vperm.xlu1 %6639, %v6647_v33  }
 0x1e0   :  { %594 = vperm.xlu2 %6640, %v6649_v34  }
 0x23a   :  { %v595_v35 = vpop.permute.xlu2 %594 }
 0x23b   :  { %v597_v38 = vperm.slane %v595_v35, %v7284_v14  ;;  %v7350_v35 = vand.u32 4294901760, %v7321_v23 }
 0x23d   :  { %8750 = vst [vmem:[#allocation44_spill] sm:$0xff] %v7350_v35 }
 0x251   :  { %v592_v37 = vpop.permute.xlu1 %591 }
 0x252   :  { %v596_v40 = vperm.slane %v592_v37, %v7284_v14 }
 0x254   :  { %v598_v41 = vsel %vm570_vm1, %v597_v38, %v596_v40  ;;  %v7358_v40 = vand.u32 4294901760, %v703_v32 }
 0x255   :  { %v600_v42 = vsel %vm573_vm2, %v598_v41, 0.0 }
 0x256   :  { %601 = vadd.xlane.f32.xlu2 %v600_v42  ;;  %v721_v42 = vsub.f32 %v7318_v22, %v7335_v28  ;;  %705 = vmatpush.msrb.mxu3 %v7358_v40 }
 0x26e   :  { %870 = vrot.lane.b32.xlu2 %v7267_v48, %s7049_s4 }
 0x2c9   :  { %v602_v43 = vpop.xlane.xlu2 %601 }
 0x2ca   :  { %6650 = vrcp.f32 %v602_v43 }
 0x2d0   :  { %v6651_v44 = vpop.eup %6650 }
 0x2d1   :  { %v604_v46 = vmul.f32 %v6651_v44, %v602_v43 }
 0x2d3   :  { %v605_v47 = vsub.f32 2.0, %v604_v46 }
 0x2d5   :  { %v606_v53 = vmul.f32 %v6651_v44, %v605_v47  ;;  %v727_v47 = vsub.f32 %v7321_v23, %v7350_v35 }
 0x2d7   :  { %v609_v54 = vperm.slane %v606_v53, 1  ;;  %v608_v55 = vperm.slane %v606_v53, 0  ;;  %v7382_v63 = vand.u32 4294901760, %v727_v47  ;;  %v8606_v47 = vmov 0.0  }
 0x2d9   :  { %v613_v61 = vmul.f32 %v6649_v34, %v609_v54  ;;  %v612_v62 = vmul.f32 %v6647_v33, %v608_v55  ;;  %v709_v33 = vsub.f32 %v7310_v18, %v7327_v25  ;;  %v715_v34 = vsub.f32 %v7313_v21, %v7330_v27  ;;  %8752 = vst [vmem:[#allocation46_spill] sm:$0xff] %v7382_v63 }
 0x2da   :  { %v7378_v55 = vand.u32 4294901760, %v721_v42 }
 0x2db   :  { %621 = vperm.xlu1 %6639, %v613_v61   ;;  %616 = vperm.xlu0 %6641, %v612_v62   ;;  %v7360_v41 = vand.u32 4294901760, %v709_v33  ;;  %v7370_v46 = vand.u32 4294901760, %v715_v34 }
 0x2dc   :  { %8751 = vst [vmem:[#allocation45_spill] sm:$0xff] %v7378_v55 }
 0x2dd   :  { %711 = vmatpush.msrb.mxu3 %v7360_v41 }
 0x2df   :  { %717 = vmatpush.msrb.mxu3 %v7370_v46 }
 0x2e1   :  { %723 = vmatpush.msrb.mxu3 %v7378_v55 }
 0x2e3   :  { %729 = vmatpush.msrb.mxu3 %v7382_v63 }
 0x34d   :  { %v7338_v30 = vpop.permute.xlu1 %621  ;;  %v7340_v31 = vpop.permute.xlu0 %616 }
 0x34e   :  { %8748 = vst [vmem:[#allocation42_spill] sm:$0xff] %v7338_v30  ;;  %v625_v37 = vmul.f32 %v7338_v30, %v7137_v13  ;;  %v624_v38 = vmul.f32 %v7340_v31, %v7129_v7 }
 0x34f   :  { %8749 = vst [vmem:[#allocation43_spill] sm:$0xff] %v7340_v31 }
 0x350   :  { %v633_v43 = vsel %vm126_vm0, %v625_v37, 0.0  ;;  %v626_v13 = vsel %vm126_vm0, %v624_v38, 0.0  ;;  %v893_v37 = vperm.slane %v7264_v17, 3  ;;  %v648_v38 = vld [vmem:[#allocation8] sm:$0xff] }
 0x351   :  { %v634_v7 = vrot.slane %v633_v43, 4  ;;  %v627_v44 = vrot.slane %v626_v13, 4  ;;  %v7390_v42 = vand.u32 4294901760, %v648_v38 }
 0x353   :  { %v635_v53 = vadd.f32 %v634_v7, %v633_v43  ;;  %v628_v54 = vadd.f32 %v627_v44, %v626_v13  ;;  %8753 = vst [vmem:[#allocation47_spill] sm:$0xff] %v7390_v42  ;;  %v7393_v43 = vsub.f32 %v648_v38, %v7390_v42  ;;  %796 = vmatpush.msrb.mxu1 %v7390_v42 }
 0x354   :  { %680 = vmatpush.msrb.mxu2 %v7390_v42 }
 0x355   :  { %v636_v61 = vrot.slane %v635_v53, 2  ;;  %v629_v62 = vrot.slane %v628_v54, 2  ;;  %8754 = vst [vmem:[#allocation48_spill] sm:$0xff] %v7393_v43  ;;  %v7399_v13 = vand.u32 4294901760, %v7393_v43  ;;  %768 = vmatpush.msrb.mxu0 %v7393_v43 }
 0x356   :  { %817 = vmatpush.msra.mxu2 %v7324_v24 }
 0x357   :  { %v630_v2 = vadd.f32 %v629_v62, %v628_v54  ;;  %v637_v3 = vadd.f32 %v636_v61, %v635_v53  ;;  %8755 = vst [vmem:[#allocation49_spill] sm:$0xff] %v7399_v13  ;;  %v733_v7 = vsub.f32 %v7393_v43, %v7399_v13  ;;  %v6602_v53 = vsel %vm352_vm3, 1.0, %v8606_v47 }
 0x358   :  { %821 = vmatpush.msra.mxu2 %v7327_v25 }
 0x359   :  { %v631_v9 = vrot.slane %v630_v2, 1  ;;  %v638_v10 = vrot.slane %v637_v3, 1  ;;  %v7406_v44 = vand.u32 4294901760, %v733_v7 }
 0x35a   :  { %825 = vmatpush.msra.mxu2 %v7330_v27 }
 0x35b   :  { %v632_v32 = vadd.f32 %v631_v9, %v630_v2  ;;  %v639_v33 = vadd.f32 %v638_v10, %v637_v3  ;;  %8756 = vst [vmem:[#allocation50_spill] sm:$0xff] %v7406_v44  ;;  %735 = vmatpush.msrb.mxu3 %v7406_v44 }
 0x35c   :  { %829 = vmatpush.msra.mxu2 %v7335_v28 }
 0x35d   :  { %v642_v34 = vsel %vm570_vm1, %v639_v33, %v632_v32  ;;  %854 = vmatpush.msra.mxu3 %v7296_v4 }
 0x35e   :  { %643 = vrot.lane.b32.xlu1 %v642_v34, %s7045_s26  ;;  %833 = vmatpush.msra.mxu2 %v7350_v35 }
 0x35f   :  { %856 = vmatpush.msra.mxu3 %v7298_v5 }
 0x360   :  { %837 = vmatpush.msra.mxu2 %v7399_v13 }
 0x361   :  { %858 = vmatpush.msra.mxu3 %v7300_v8 }
 0x363   :  { %860 = vmatpush.msra.mxu3 %v7302_v12 }
 0x365   :  { %862 = vmatpush.msra.mxu3 %v7304_v15 }
 0x366   :  { %895 = vrot.lane.b32.xlu1 %v893_v37, %s7049_s4  ;;  %v7428_v37 = vperm.slane %v7264_v17, 2 }
 0x367   :  { %864 = vmatpush.msra.mxu3 %v7390_v42 }
 0x368   :  { %8758 = vst [vmem:[#allocation52_spill] sm:$0xff] %v7428_v37 }
 0x3d0   :  { %v644_v54 = vpop.permute.xlu1 %643 }
 0x3d1   :  { %v647_v61 = vsel %vm646_vm4, %v6602_v53, %v644_v54 }
 0x3d2   :  { %v657_v62 = vsel %vm655_vm5, %v647_v61, 0 }
 0x3d3   :  { %v681_v2 = vand.u32 4294901760, %v657_v62 }
 0x3d5   :  { %v682_v3 = vsub.f32 %v657_v62, %v681_v2  ;;  %737 = vmatmul.f32.vlgmr.msrb.gmra.mxu3 %v681_v2 }
 0x3d7   :  { %771 = vmatmul.f32.vlgmr.msrb.gmra.mxu0 %v682_v3  ;;  %v683_v9 = vand.u32 4294901760, %v682_v3 }
 0x3d8   :  { %v7422_v10 = vpop.permute.xlu1 %895 }
 0x3d9   :  { %8757 = vst [vmem:[#allocation51_spill] sm:$0xff] %v7422_v10  ;;  %800 = vmatmul.f32.vlgmr.msrb.gmra.mxu1 %v683_v9  ;;  %v898_v32 = vadd.f32 %v7422_v10, %v7267_v48  ;;  %v684_v33 = vsub.f32 %v682_v3, %v683_v9 }
 0x3db   :  { %900 = vrot.lane.b32.xlu0 %v898_v32, %s7051_s5  ;;  %v685_v34 = vand.u32 4294901760, %v684_v33  ;;  %v871_v33 = vpop.permute.xlu2 %870 }
 0x3dd   :  { %686 = vmatmul.f32.vlgmr.msrb.gmra.mxu2 %v685_v34  ;;  %866 = vmatmul.f32.vlgmr.msra.gmra.mxu3 %v681_v2 }
 0x3e5   :  { %839 = vmatmul.f32.vlgmr.msra.gmra.mxu2 %v681_v2 }
 0x454   :  { %v772_v61 = vpop.f32.mrf.mxu0 }
 0x456   :  { %v801_v47 = vpop.f32.mrf.mxu1 }
 0x458   :  { %v738_v38 = vpop.f32.mrf.mxu3 }
 0x460   :  { %v687_v7 = vpop.f32.mrf.mxu2  ;;  %v867_v31 = vpop.f32.mrf.mxu3 }
 0x461   :  { %v688_v53 = vadd.f32 %v687_v7, %v7428_v37 }
 0x463   :  { %v739_v54 = vadd.f32 %v738_v38, %v688_v53 }
 0x465   :  { %v773_v62 = vadd.f32 %v772_v61, %v739_v54 }
 0x467   :  { %v802_v48 = vadd.f32 %v801_v47, %v773_v62 }
 0x468   :  { %v840_v3 = vpop.f32.mrf.mxu2 }
 0x469   :  { %v841_v9 = vadd.f32 %v840_v3, %v802_v48  ;;  %v923_v3 = vld [vmem:[#allocation7 + $0x28] sm:$0xff] }
 0x46b   :  { %v868_v32 = vadd.f32 %v867_v31, %v841_v9  ;;  %v901_v31 = vpop.permute.xlu0 %900 }
 0x46d   :  { %v873_v34 = vadd.f32 %v871_v33, %v868_v32 }
 0x46f   :  { %v6603_v30 = vmul.f32 -1.442695, %v873_v34 }
 0x471   :  { %6652 = vpow2.f32 %v6603_v30 }
 0x477   :  { %v6653_v2 = vpop.eup %6652 }
 0x478   :  { %v877_v10 = vadd.f32 1.0, %v6653_v2 }
 0x47a   :  { %6654 = vrcp.f32 %v877_v10  ;;  %v889_v7 = vand.u32 2147483648, %v877_v10  ;;  %v887_v53 = vand.u32 2147483647, %v877_v10  ;;  %vm883_vm7 = vweird.f32 %v877_v10 }
 0x47c   :  { %v890_v47 = vor.u32 1.1754944e-38, %v889_v7  ;;  %vm888_vm9 = vcmp.eq.f32.partialorder %v887_v53, 8.507059e+37 }
 0x480   :  { %v6655_v17 = vpop.eup %6654 }
 0x481   :  { %v879_v14 = vmul.f32 %v6655_v17, %v877_v10  ;;  %vm884_vm6 = vweird.f32 %v6655_v17  ;;  %v924_v10 = vld [vmem:[#allocation7 + $0x38] sm:$0xff] }
 0x482   :  { %vm885_vm8 = vmor %vm883_vm7, %vm884_vm6  ;;  %v7435_v9 = vand.u32 4294901760, %v924_v10 }
 0x483   :  { %v880_v0 = vsub.f32 1.0, %v879_v14 }
 0x484   :  { %v7440_v33 = vsub.f32 %v924_v10, %v7435_v9  ;;  %1044 = vmatpush.msrb.mxu3 %v7435_v9  ;;  %944 = vmatpush.msra.mxu0 %v7435_v9  ;;  %v921_v10 = vld [vmem:[#allocation7 + $0x8] sm:$0xff] }
 0x485   :  { %v881_v38 = vmul.f32 %v6655_v17, %v880_v0 }
 0x486   :  { %1015 = vmatpush.msrb.mxu2 %v7440_v33 }
 0x487   :  { %v882_v54 = vadd.f32 %v6655_v17, %v881_v38 }
 0x489   :  { %v886_v61 = vsel %vm885_vm8, %v6655_v17, %v882_v54  ;;  %v7437_v17 = vand.u32 4294901760, %v923_v3 }
 0x48a   :  { %v891_v62 = vsel %vm888_vm9, %v890_v47, %v886_v61 }
 0x48b   :  { %v903_v48 = vmul.f32 %v901_v31, %v891_v62  ;;  %v7443_v34 = vsub.f32 %v923_v3, %v7437_v17  ;;  %1046 = vmatpush.msrb.mxu3 %v7437_v17  ;;  %946 = vmatpush.msra.mxu0 %v7437_v17  ;;  %v910_v47 = vsub.f32 1.0, %v891_v62 }
 0x48d   :  { %905 = vrot.lane.b32.xlu1 %v903_v48, %s7052_s13  ;;  %1018 = vmatpush.msrb.mxu2 %v7443_v34 }
 0x495   :  { %916 = vrot.lane.b32.xlu1 %v7185_v39, %s7051_s5  ;;  %v7448_v39 = vand.u32 4294901760, %v7440_v33 }
 0x497   :  { %v975_v2 = vsub.f32 %v7440_v33, %v7448_v39 }
 0x499   :  { %v7461_v38 = vand.u32 4294901760, %v975_v2  ;;  %v7476_v2 = vand.u32 4294901760, %v921_v10 }
 0x49b   :  { %8759 = vst [vmem:[#allocation53_spill] sm:$0xff] %v7461_v38  ;;  %977 = vmatpush.msra.mxu1 %v7461_v38 }
 0x4ff   :  { %v906_v14 = vpop.permute.xlu1 %905 }
 0x500   :  { %v908_v30 = vadd.f32 %v906_v14, %v868_v32  ;;  %v7451_v32 = vand.u32 4294901760, %v7443_v34 }
 0x502   :  { %6656 = vtanh.f32 %v908_v30  ;;  %v981_v7 = vsub.f32 %v7443_v34, %v7451_v32  ;;  %v922_v30 = vld [vmem:[#allocation7 + $0x18] sm:$0xff] }
 0x504   :  { %v7463_v53 = vand.u32 4294901760, %v981_v7  ;;  %v7484_v7 = vsub.f32 %v921_v10, %v7476_v2 }
 0x506   :  { %8760 = vst [vmem:[#allocation54_spill] sm:$0xff] %v7463_v53  ;;  %983 = vmatpush.msra.mxu1 %v7463_v53 }
 0x507   :  { %v917_v54 = vpop.permute.xlu1 %916  ;;  %8762 = vst [vmem:[#allocation56_spill] sm:$0xff] %v7484_v7 }
 0x508   :  { %v6657_v0 = vpop.eup %6656  ;;  %v919_v31 = vmul.f32 %v917_v54, %v891_v62 }
 0x509   :  { %912 = vrot.lane.b32.xlu0 %v6657_v0, %s7049_s4  ;;  %v7471_v0 = vand.u32 4294901760, %v922_v30 }
 0x50b   :  { %v7474_v3 = vsub.f32 %v922_v30, %v7471_v0  ;;  %1048 = vmatpush.msrb.mxu3 %v7471_v0  ;;  %948 = vmatpush.msra.mxu0 %v7471_v0 }
 0x50d   :  { %v7481_v62 = vand.u32 4294901760, %v7474_v3  ;;  %1021 = vmatpush.msrb.mxu2 %v7474_v3  ;;  %1050 = vmatpush.msrb.mxu3 %v7476_v2 }
 0x50e   :  { %950 = vmatpush.msra.mxu0 %v7476_v2 }
 0x50f   :  { %1195 = vmatpush.msra.mxu3 %v7191_v45  ;;  %v987_v54 = vsub.f32 %v7474_v3, %v7481_v62  ;;  %1024 = vmatpush.msrb.mxu2 %v7484_v7 }
 0x510   :  { %1073 = vmatpush.msrb.mxu0 %v7448_v39 }
 0x511   :  { %1162 = vmatpush.msra.mxu2 %v7135_v11  ;;  %1201 = vmatpush.msra.mxu3 %v7202_v52 }
 0x512   :  { %1077 = vmatpush.msrb.mxu0 %v7451_v32 }
 0x513   :  { %1164 = vmatpush.msra.mxu2 %v7156_v20  ;;  %1207 = vmatpush.msra.mxu3 %v7230_v1 }
 0x514   :  { %1081 = vmatpush.msrb.mxu0 %v7481_v62 }
 0x515   :  { %1166 = vmatpush.msra.mxu2 %v7196_v49  ;;  %1213 = vmatpush.msra.mxu3 %v7232_v6 }
 0x517   :  { %1168 = vmatpush.msra.mxu2 %v7198_v50 }
 0x57b   :  { %v913_v61 = vpop.permute.xlu0 %912 }
 0x57c   :  { %v915_v48 = vmul.f32 %v913_v61, %v910_v47  ;;  %v7493_v47 = vand.u32 4294901760, %v7484_v7  ;;  %v7499_v61 = vand.u32 4294901760, %v987_v54 }
 0x57e   :  { %v7467_v14 = vadd.f32 %v919_v31, %v915_v48  ;;  %8763 = vst [vmem:[#allocation57_spill] sm:$0xff] %v7499_v61  ;;  %v993_v31 = vsub.f32 %v7484_v7, %v7493_v47  ;;  %989 = vmatpush.msra.mxu1 %v7499_v61  ;;  %1085 = vmatpush.msrb.mxu0 %v7493_v47 }
 0x580   :  { %8761 = vst [vmem:[#allocation55_spill] sm:$0xff] %v7467_v14  ;;  %927 = vrot.lane.b32.xlu0 %v7467_v14, %s7049_s4  ;;  %v7507_v48 = vand.u32 4294901760, %v993_v31 }
 0x582   :  { %8764 = vst [vmem:[#allocation58_spill] sm:$0xff] %v7507_v48  ;;  %995 = vmatpush.msra.mxu1 %v7507_v48 }
 0x584   :  { %1104 = vmatpush.msrb.mxu1 %v7435_v9 }
 0x586   :  { %1106 = vmatpush.msrb.mxu1 %v7437_v17 }
 0x588   :  { %1108 = vmatpush.msrb.mxu1 %v7471_v0 }
 0x58a   :  { %1110 = vmatpush.msrb.mxu1 %v7476_v2 }
 0x5f2   :  { %v928_v30 = vpop.permute.xlu0 %927 }
 0x5f3   :  { %v929_v10 = vsel %vm126_vm0, %v928_v30, 0 }
 0x5f4   :  { %v951_v54 = vand.u32 4294901760, %v929_v10 }
 0x5f6   :  { %v952_v31 = vsub.f32 %v929_v10, %v951_v54  ;;  %997 = vmatmul.f32.vlgmr.msra.gmra.mxu1 %v951_v54 }
 0x5f7   :  { %1262 = vmatpush.msra.mxu1 %v7135_v11 }
 0x5f8   :  { %1027 = vmatmul.f32.vlgmr.msrb.gmra.mxu2 %v952_v31  ;;  %v953_v14 = vand.u32 4294901760, %v952_v31 }
 0x5f9   :  { %1264 = vmatpush.msra.mxu1 %v7156_v20  ;;  %1291 = vmatpush.msrb.mxu2 %v7166_v26 }
 0x5fa   :  { %1054 = vmatmul.f32.vlgmr.msrb.gmra.mxu3 %v953_v14  ;;  %v954_v37 = vsub.f32 %v952_v31, %v953_v14 }
 0x5fb   :  { %1266 = vmatpush.msra.mxu1 %v7196_v49  ;;  %1295 = vmatpush.msrb.mxu2 %v7183_v36 }
 0x5fc   :  { %v955_v6 = vand.u32 4294901760, %v954_v37  ;;  %1322 = vmatpush.msrb.mxu3 %v7135_v11 }
 0x5fd   :  { %1268 = vmatpush.msra.mxu1 %v7198_v50  ;;  %1299 = vmatpush.msrb.mxu2 %v7216_v59 }
 0x5fe   :  { %956 = vmatmul.f32.vlgmr.msra.gmra.mxu0 %v955_v6  ;;  %1112 = vmatmul.f32.vlgmr.msrb.gmra.mxu1 %v951_v54 }
 0x5ff   :  { %1324 = vmatpush.msrb.mxu3 %v7156_v20  ;;  %1233 = vmatpush.msra.mxu0 %v7154_v19 }
 0x600   :  { %1174 = vmatmul.f32.vlgmr.msra.gmra.mxu2 %v955_v6  ;;  %1480 = vmatpush.msrb.mxu1 %v7358_v40 }
 0x601   :  { %1303 = vmatpush.msrb.mxu2 %v7219_v60  ;;  %1326 = vmatpush.msrb.mxu3 %v7196_v49 }
 0x602   :  { %1215 = vmatmul.f32.vlgmr.msra.gmra.mxu3 %v951_v54  ;;  %1236 = vmatpush.msra.mxu0 %v7172_v29 }
 0x603   :  { %1328 = vmatpush.msrb.mxu3 %v7198_v50  ;;  %1486 = vmatpush.msrb.mxu1 %v7360_v41 }
 0x604   :  { %1239 = vmatpush.msra.mxu0 %v7207_v56  ;;  %1528 = vmatpush.msra.mxu2 %v7307_v16 }
 0x605   :  { %1492 = vmatpush.msrb.mxu1 %v7370_v46  ;;  %1561 = vmatpush.msra.mxu3 %v7296_v4 }
 0x606   :  { %1087 = vmatmul.f32.vlgmr.msrb.gmra.mxu0 %v951_v54  ;;  %1272 = vmatmul.f32.vlgmr.msra.gmra.mxu1 %v953_v14 }
 0x607   :  { %1242 = vmatpush.msra.mxu0 %v7210_v57  ;;  %1498 = vmatpush.msrb.mxu1 %v7378_v55 }
 0x608   :  { %1305 = vmatmul.f32.vlgmr.msrb.gmra.mxu2 %v951_v54  ;;  %1563 = vmatpush.msra.mxu3 %v7298_v5 }
 0x609   :  { %1445 = vmatpush.msrb.mxu0 %v7296_v4  ;;  %1531 = vmatpush.msra.mxu2 %v7310_v18 }
 0x60a   :  { %1504 = vmatpush.msrb.mxu1 %v7382_v63  ;;  %1330 = vmatmul.f32.vlgmr.msrb.gmra.mxu3 %v951_v54 }
 0x60b   :  { %1447 = vmatpush.msrb.mxu0 %v7298_v5  ;;  %1534 = vmatpush.msra.mxu2 %v7313_v21 }
 0x60c   :  { %1510 = vmatpush.msrb.mxu1 %v7406_v44  ;;  %1565 = vmatpush.msra.mxu3 %v7300_v8 }
 0x60d   :  { %1449 = vmatpush.msrb.mxu0 %v7300_v8  ;;  %1537 = vmatpush.msra.mxu2 %v7318_v22 }
 0x60e   :  { %1245 = vmatmul.f32.vlgmr.msra.gmra.mxu0 %v952_v31  ;;  %1629 = vmatpush.msra.mxu1 %v7296_v4 }
 0x60f   :  { %1540 = vmatpush.msra.mxu2 %v7321_v23  ;;  %1567 = vmatpush.msra.mxu3 %v7302_v12 }
 0x610   :  { %1631 = vmatpush.msra.mxu1 %v7298_v5  ;;  %1451 = vmatpush.msrb.mxu0 %v7302_v12 }
 0x611   :  { %1543 = vmatpush.msra.mxu2 %v7393_v43  ;;  %1569 = vmatpush.msra.mxu3 %v7304_v15 }
 0x612   :  { %1633 = vmatpush.msra.mxu1 %v7300_v8  ;;  %1453 = vmatpush.msrb.mxu0 %v7304_v15 }
 0x613   :  { %1571 = vmatpush.msra.mxu3 %v7390_v42  ;;  %1706 = vmatpush.msrb.mxu2 %v7435_v9 }
 0x614   :  { %1635 = vmatpush.msra.mxu1 %v7302_v12  ;;  %1455 = vmatpush.msrb.mxu0 %v7390_v42 }
 0x615   :  { %1739 = vmatpush.msrb.mxu3 %v7461_v38  ;;  %1708 = vmatpush.msrb.mxu2 %v7437_v17 }
 0x616   :  { %1592 = vmatpush.msra.mxu0 %v7324_v24  ;;  %1637 = vmatpush.msra.mxu1 %v7304_v15 }
 0x617   :  { %1745 = vmatpush.msrb.mxu3 %v7463_v53  ;;  %1710 = vmatpush.msrb.mxu2 %v7471_v0 }
 0x618   :  { %1596 = vmatpush.msra.mxu0 %v7327_v25  ;;  %1639 = vmatpush.msra.mxu1 %v7390_v42 }
 0x619   :  { %1751 = vmatpush.msrb.mxu3 %v7499_v61  ;;  %1712 = vmatpush.msrb.mxu2 %v7476_v2 }
 0x61a   :  { %1600 = vmatpush.msra.mxu0 %v7330_v27 }
 0x61b   :  { %1757 = vmatpush.msrb.mxu3 %v7507_v48 }
 0x61c   :  { %1604 = vmatpush.msra.mxu0 %v7335_v28 }
 0x61e   :  { %1608 = vmatpush.msra.mxu0 %v7350_v35 }
 0x620   :  { %1612 = vmatpush.msra.mxu0 %v7399_v13 }
 0x673   :  { %v998_v6 = vpop.f32.mrf.mxu1 }
 0x67b   :  { %v957_v37 = vpop.f32.mrf.mxu0  ;;  %v1028_v14 = vpop.f32.mrf.mxu2 }
 0x67c   :  { %v1113_v10 = vpop.f32.mrf.mxu1 }
 0x67d   :  { %v1055_v30 = vpop.f32.mrf.mxu3 }
 0x683   :  { %v1088_v54 = vpop.f32.mrf.mxu0  ;;  %v1175_v31 = vpop.f32.mrf.mxu2 }
 0x684   :  { %v1273_v38 = vpop.f32.mrf.mxu1 }
 0x685   :  { %v1216_v27 = vpop.f32.mrf.mxu3 }
 0x686   :  { %v1217_v53 = vadd.f32 %v1216_v27, %v1175_v31 }
 0x68b   :  { %v1246_v61 = vpop.f32.mrf.mxu0  ;;  %v1306_v28 = vpop.f32.mrf.mxu2 }
 0x68c   :  { %v1247_v25 = vadd.f32 %v1246_v61, %v1217_v53  ;;  %v8765_v53 = vld [vmem:[#allocation28_spill] sm:$0xff] }
 0x68d   :  { %v1331_v48 = vpop.f32.mrf.mxu3 }
 0x68e   :  { %v1274_v24 = vadd.f32 %v1273_v38, %v1247_v25 }
 0x690   :  { %v1307_v42 = vadd.f32 %v1306_v28, %v1274_v24 }
 0x692   :  { %v7580_v15 = vadd.f32 %v1331_v48, %v1307_v42  ;;  %v8766_v48 = vld [vmem:[#allocation29_spill] sm:$0xff] }
 0x694   :  { %v1335_v13 = vrot.slane %v7580_v15, 1  ;;  %v1336_v35 = vperm.slane %v7580_v15, 0 }
 0x696   :  { %v1337_v43 = vperm.slane %v1335_v13, 0  ;;  %v1340_v12 = vadd.f32 %v1336_v35, %v7269_v51  ;;  %v8767_v51 = vld [vmem:[#allocation25_spill] sm:$0xff] }
 0x697   :  { %v7595_v22 = vperm.slane %v8767_v51, 4 }
 0x698   :  { %6658 = vtanh.f32 %v1340_v12  ;;  %v1341_v23 = vadd.f32 %v1337_v43, %v7273_v58 }
 0x69a   :  { %6660 = vtanh.f32 %v1341_v23 }
 0x69e   :  { %v6659_v27 = vpop.eup %6658 }
 0x69f   :  { %v1344_v61 = vmul.f32 %v6659_v27, %v8765_v53 }
 0x6a0   :  { %v6661_v25 = vpop.eup %6660 }
 0x6a1   :  { %v1346_v24 = vsel %vm126_vm0, %v1344_v61, 0.0  ;;  %v1345_v28 = vmul.f32 %v6661_v25, %v8765_v53 }
 0x6a2   :  { %1347 = vadd.xlane.f32.xlu1 %v1346_v24 }
 0x6a3   :  { %v1349_v42 = vsel %vm126_vm0, %v1345_v28, 0.0 }
 0x6a4   :  { %1350 = vadd.xlane.f32.xlu2 %v1349_v42 }
 0x715   :  { %v1348_v38 = vpop.xlane.xlu1 %1347 }
 0x716   :  { %v1354_v35 = vperm.slane %v1348_v38, %v8766_v48 }
 0x717   :  { %v1351_v13 = vpop.xlane.xlu2 %1350 }
 0x718   :  { %v1355_v12 = vperm.slane %v1351_v13, %v8766_v48 }
 0x71a   :  { %v1356_v23 = vsel %vm570_vm1, %v1355_v12, %v1354_v35  ;;  %v958_v35 = vadd.f32 %v957_v37, %v7595_v22 }
 0x71b   :  { %v1358_v43 = vsel %vm573_vm2, %v1356_v23, -inf }
 0x71c   :  { %1359 = vmax.xlane.f32.xlu0 %v1358_v43  ;;  %v999_v12 = vadd.f32 %v998_v6, %v958_v35 }
 0x71e   :  { %v1029_v23 = vadd.f32 %v1028_v14, %v999_v12 }
 0x720   :  { %v1056_v8 = vadd.f32 %v1055_v30, %v1029_v23 }
 0x78f   :  { %v1360_v31 = vpop.xlane.xlu0 %1359 }
 0x790   :  { %v1362_v27 = vperm.slane %v1360_v31, 0  ;;  %v1363_v61 = vperm.slane %v1360_v31, 1 }
 0x792   :  { %v1366_v58 = vsub.f32 %v1348_v38, %v1362_v27  ;;  %v1367_v25 = vsub.f32 %v1351_v13, %v1363_v61  ;;  %v1089_v13 = vadd.f32 %v1088_v54, %v1056_v8 }
 0x794   :  { %v1368_v24 = vmul.f32 1.442695, %v1366_v58  ;;  %v1370_v53 = vmul.f32 1.442695, %v1367_v25  ;;  %v7602_v61 = vadd.f32 %v1113_v10, %v1089_v13 }
 0x796   :  { %6662 = vpow2.f32 %v1368_v24  ;;  %8768 = vst [vmem:[#allocation29_spill] sm:$0xff] %v7602_v61  ;;  %v1117_v51 = vsel %vm1116_vm10, %v7602_v61, -inf }
 0x797   :  { %6664 = vpow2.f32 %v1370_v53 }
 0x79c   :  { %v6663_v28 = vpop.eup %6662 }
 0x79d   :  { %v6665_v42 = vpop.eup %6664  ;;  %1375 = vperm.xlu2 %6640, %v6663_v28  }
 0x79e   :  { %1378 = vperm.xlu1 %6639, %v6665_v42  }
 0x7f7   :  { %v1376_v43 = vpop.permute.xlu2 %1375 }
 0x7f8   :  { %v1380_v38 = vperm.slane %v1376_v43, %v8766_v48 }
 0x810   :  { %v1379_v31 = vpop.permute.xlu1 %1378 }
 0x811   :  { %v1381_v58 = vperm.slane %v1379_v31, %v8766_v48 }
 0x813   :  { %v1382_v53 = vsel %vm570_vm1, %v1381_v58, %v1380_v38  ;;  %v7614_v58 = vld [vmem:[#allocation2 + $0x8] sm:$0xff] }
 0x814   :  { %v1384_v27 = vsel %vm573_vm2, %v1382_v53, 0.0 }
 0x815   :  { %1385 = vadd.xlane.f32.xlu0 %v1384_v27 }
 0x81d   :  { %1118 = vmax.xlane.f32.xlu0 %v1117_v51 }
 0x888   :  { %v1386_v6 = vpop.xlane.xlu0 %1385 }
 0x889   :  { %6666 = vrcp.f32 %v1386_v6 }
 0x88f   :  { %v6667_v37 = vpop.eup %6666 }
 0x890   :  { %v1388_v14 = vmul.f32 %v6667_v37, %v1386_v6  ;;  %v7606_v30 = vpop.xlane.xlu0 %1118 }
 0x891   :  { %8769 = vst [vmem:[#allocation25_spill] sm:$0xff] %v7606_v30  ;;  %vm1120_vm11 = vcmp.eq.f32.partialorder %v7602_v61, %v7606_v30 }
 0x892   :  { %v1389_v8 = vsub.f32 2.0, %v1388_v14  ;;  %v1121_v54 = vsel %vm1120_vm11, %v8766_v48, 16 }
 0x893   :  { %v1122_v10 = vsel %vm1116_vm10, %v1121_v54, 2147483647 }
 0x894   :  { %v1390_v25 = vmul.f32 %v6667_v37, %v1389_v8  ;;  %v1124_v24 = vshra.s32 %v1122_v10, 16  ;;  %v1123_v51 = vand.u32 65535, %v1122_v10 }
 0x896   :  { %v1126_v35 = vcvt.s32.f32 %v1124_v24  ;;  %v1393_v12 = vperm.slane %v1390_v25, 1  ;;  %v1392_v23 = vperm.slane %v1390_v25, 0  ;;  %v1125_v14 = vcvt.s32.f32 %v1123_v51 }
 0x898   :  { %1127 = vmin.xlane.f32.xlu1 %v1126_v35  ;;  %v1397_v43 = vmul.f32 %v6665_v42, %v1393_v12  ;;  %v1396_v31 = vmul.f32 %v6663_v28, %v1392_v23  ;;  %v7621_v28 = vld [vmem:[#allocation2] sm:$0xff] }
 0x89a   :  { %1405 = vperm.xlu2 %6640, %v1397_v43   ;;  %1400 = vperm.xlu0 %6641, %v1396_v31  }
 0x8f4   :  { %v7612_v38 = vpop.permute.xlu2 %1405 }
 0x8f5   :  { %8770 = vst [vmem:[#allocation59_spill] sm:$0xff] %v7612_v38  ;;  %v1409_v53 = vmul.f32 %v7614_v58, %v7612_v38 }
 0x8f7   :  { %v1417_v13 = vsel %vm126_vm0, %v1409_v53, 0.0 }
 0x8f8   :  { %v1418_v27 = vrot.slane %v1417_v13, 4 }
 0x8fa   :  { %v1419_v6 = vadd.f32 %v1418_v27, %v1417_v13 }
 0x8fc   :  { %v1420_v25 = vrot.slane %v1419_v6, 2 }
 0x8fe   :  { %v1421_v23 = vadd.f32 %v1420_v25, %v1419_v6 }
 0x900   :  { %v1422_v53 = vrot.slane %v1421_v23, 1 }
 0x902   :  { %v1423_v51 = vadd.f32 %v1422_v53, %v1421_v23  ;;  %v8773_v23 = vmov 0.0  }
 0x90b   :  { %v1128_v37 = vpop.xlane.xlu1 %1127 }
 0x90c   :  { %v7619_v8 = vpop.permute.xlu0 %1400  ;;  %vm1129_vm12 = vcmp.eq.f32.partialorder %v1126_v35, %v1128_v37 }
 0x90d   :  { %8771 = vst [vmem:[#allocation60_spill] sm:$0xff] %v7619_v8  ;;  %v1408_v42 = vmul.f32 %v7621_v28, %v7619_v8  ;;  %v1130_v54 = vsel %vm1129_vm12, %v1125_v14, inf  ;;  %v8772_v14 = vld [vmem:[#allocation51_spill] sm:$0xff] }
 0x90e   :  { %1131 = vmin.xlane.f32.xlu2 %v1130_v54  ;;  %v1668_v54 = vadd.f32 %v7580_v15, %v8772_v14 }
 0x90f   :  { %v1410_v24 = vsel %vm126_vm0, %v1408_v42, 0.0  ;;  %v1134_v42 = vcvt.f32.s32 %v1128_v37 }
 0x910   :  { %v1411_v12 = vrot.slane %v1410_v24, 4 }
 0x912   :  { %v1412_v43 = vadd.f32 %v1411_v12, %v1410_v24  ;;  %v1135_v24 = vshll.u32 %v1134_v42, 16  ;;  %v8775_v42 = vld [vmem:[#allocation52_spill] sm:$0xff] }
 0x914   :  { %v1413_v10 = vrot.slane %v1412_v43, 2 }
 0x916   :  { %v1414_v31 = vadd.f32 %v1413_v10, %v1412_v43 }
 0x918   :  { %v1415_v13 = vrot.slane %v1414_v31, 1 }
 0x91a   :  { %v1416_v27 = vadd.f32 %v1415_v13, %v1414_v31 }
 0x91c   :  { %v1426_v35 = vsel %vm570_vm1, %v1423_v51, %v1416_v27 }
 0x91d   :  { %1427 = vrot.lane.b32.xlu0 %v1426_v35, %s7045_s26  ;;  %v8774_v35 = vld [vmem:[#allocation24_spill] sm:$0xff] }
 0x925   :  { %1645 = vrot.lane.b32.xlu0 %v7580_v15, %s7049_s4 }
 0x92d   :  { %1670 = vrot.lane.b32.xlu0 %v1668_v54, %s7051_s5 }
 0x981   :  { %v1132_v6 = vpop.xlane.xlu2 %1131 }
 0x982   :  { %v1133_v25 = vcvt.f32.s32 %v1132_v6 }
 0x984   :  { %v1136_v12 = vadd.s32 %v1135_v24, %v1133_v25 }
 0x986   :  { %vm1137_vm13 = vcmp.eq.s32.totalorder %v8766_v48, %v1136_v12 }
 0x987   :  { %v6604_v43 = vsel %vm1137_vm13, 1.0, %v8773_v23 }
 0x98f   :  { %v1428_v10 = vpop.permute.xlu0 %1427 }
 0x990   :  { %v1430_v31 = vsel %vm646_vm4, %v6604_v43, %v1428_v10 }
 0x991   :  { %v1432_v53 = vsel %vm655_vm5, %v1430_v31, 0 }
 0x992   :  { %v1456_v13 = vand.u32 4294901760, %v1432_v53 }
 0x994   :  { %v1457_v27 = vsub.f32 %v1432_v53, %v1456_v13  ;;  %1512 = vmatmul.f32.vlgmr.msrb.gmra.mxu1 %v1456_v13 }
 0x995   :  { %1806 = vmatpush.msrb.mxu1 %v7435_v9 }
 0x996   :  { %1546 = vmatmul.f32.vlgmr.msra.gmra.mxu2 %v1457_v27  ;;  %v1458_v15 = vand.u32 4294901760, %v1457_v27 }
 0x997   :  { %1808 = vmatpush.msrb.mxu1 %v7437_v17  ;;  %1835 = vmatpush.msra.mxu2 %v7448_v39 }
 0x998   :  { %1575 = vmatmul.f32.vlgmr.msra.gmra.mxu3 %v1458_v15  ;;  %v1459_v37 = vsub.f32 %v1457_v27, %v1458_v15 }
 0x999   :  { %1810 = vmatpush.msrb.mxu1 %v7471_v0  ;;  %1866 = vmatpush.msra.mxu3 %v7435_v9 }
 0x99a   :  { %v1460_v51 = vand.u32 4294901760, %v1459_v37  ;;  %1839 = vmatpush.msra.mxu2 %v7451_v32  ;;  %v1646_v37 = vpop.permute.xlu0 %1645 }
 0x99b   :  { %1812 = vmatpush.msrb.mxu1 %v7476_v2  ;;  %1868 = vmatpush.msra.mxu3 %v7437_v17 }
 0x99c   :  { %1461 = vmatmul.f32.vlgmr.msrb.gmra.mxu0 %v1460_v51  ;;  %1641 = vmatmul.f32.vlgmr.msra.gmra.mxu1 %v1456_v13 }
 0x99d   :  { %1777 = vmatpush.msrb.mxu0 %v7440_v33  ;;  %1870 = vmatpush.msra.mxu3 %v7471_v0 }
 0x99e   :  { %1956 = vmatpush.msra.mxu1 %v7191_v45  ;;  %1843 = vmatpush.msra.mxu2 %v7481_v62 }
 0x99f   :  { %1780 = vmatpush.msrb.mxu0 %v7443_v34  ;;  %1872 = vmatpush.msra.mxu3 %v7476_v2 }
 0x9a0   :  { %1962 = vmatpush.msra.mxu1 %v7202_v52  ;;  %1847 = vmatpush.msra.mxu2 %v7493_v47 }
 0x9a1   :  { %1783 = vmatpush.msrb.mxu0 %v7474_v3 }
 0x9a2   :  { %1968 = vmatpush.msra.mxu1 %v7230_v1 }
 0x9a3   :  { %1786 = vmatpush.msrb.mxu0 %v7484_v7 }
 0x9a4   :  { %1614 = vmatmul.f32.vlgmr.msra.gmra.mxu0 %v1456_v13  ;;  %1974 = vmatpush.msra.mxu1 %v8774_v35 }
 0x9a5   :  { %1923 = vmatpush.msra.mxu0 %v7135_v11 }
 0x9a7   :  { %1925 = vmatpush.msra.mxu0 %v7156_v20 }
 0x9a9   :  { %1927 = vmatpush.msra.mxu0 %v7196_v49 }
 0x9ab   :  { %1929 = vmatpush.msra.mxu0 %v7198_v50 }
 0xa11   :  { %v1513_v54 = vpop.f32.mrf.mxu1 }
 0xa19   :  { %v1462_v6 = vpop.f32.mrf.mxu0  ;;  %v1547_v12 = vpop.f32.mrf.mxu2 }
 0xa1a   :  { %v1463_v25 = vadd.f32 %v1462_v6, %v8775_v42  ;;  %v1642_v27 = vpop.f32.mrf.mxu1 }
 0xa1b   :  { %v1576_v10 = vpop.f32.mrf.mxu3 }
 0xa1c   :  { %v1514_v24 = vadd.f32 %v1513_v54, %v1463_v25 }
 0xa1e   :  { %v1548_v43 = vadd.f32 %v1547_v12, %v1514_v24 }
 0xa20   :  { %v1577_v31 = vadd.f32 %v1576_v10, %v1548_v43  ;;  %v1671_v10 = vpop.permute.xlu0 %1670 }
 0xa21   :  { %v1615_v53 = vpop.f32.mrf.mxu0 }
 0xa22   :  { %v1616_v13 = vadd.f32 %v1615_v53, %v1577_v31 }
 0xa24   :  { %v1643_v15 = vadd.f32 %v1642_v27, %v1616_v13  ;;  %v8776_v27 = vld [vmem:[#allocation55_spill] sm:$0xff] }
 0xa26   :  { %v1648_v51 = vadd.f32 %v1646_v37, %v1643_v15 }
 0xa28   :  { %v6605_v61 = vmul.f32 -1.442695, %v1648_v51 }
 0xa2a   :  { %6668 = vpow2.f32 %v6605_v61 }
 0xa30   :  { %v6669_v30 = vpop.eup %6668 }
 0xa31   :  { %v1652_v38 = vadd.f32 1.0, %v6669_v30 }
 0xa33   :  { %6670 = vrcp.f32 %v1652_v38  ;;  %v1664_v6 = vand.u32 2147483648, %v1652_v38  ;;  %v1662_v25 = vand.u32 2147483647, %v1652_v38  ;;  %vm1658_vm15 = vweird.f32 %v1652_v38 }
 0xa35   :  { %v1665_v12 = vor.u32 1.1754944e-38, %v1664_v6  ;;  %vm1663_vm6 = vcmp.eq.f32.partialorder %v1662_v25, 8.507059e+37 }
 0xa39   :  { %v6671_v8 = vpop.eup %6670 }
 0xa3a   :  { %v1654_v35 = vmul.f32 %v6671_v8, %v1652_v38  ;;  %vm1659_vm14 = vweird.f32 %v6671_v8 }
 0xa3b   :  { %vm1660_vm3 = vmor %vm1658_vm15, %vm1659_vm14 }
 0xa3c   :  { %v1655_v7 = vsub.f32 1.0, %v1654_v35 }
 0xa3e   :  { %v1656_v54 = vmul.f32 %v6671_v8, %v1655_v7 }
 0xa40   :  { %v1657_v24 = vadd.f32 %v6671_v8, %v1656_v54 }
 0xa42   :  { %v1661_v43 = vsel %vm1660_vm3, %v6671_v8, %v1657_v24  ;;  %vm6538_vm3 = vcmask 64512  }
 0xa43   :  { %v1666_v31 = vsel %vm1663_vm6, %v1665_v12, %v1661_v43  ;;  %v8777_v43 = vld [vmem:[#allocation31_spill] sm:$0xff]  ;;  %vm6541_vm6 = vcmask 195584  }
 0xa44   :  { %v1673_v53 = vmul.f32 %v1671_v10, %v1666_v31  ;;  %v1680_v7 = vsub.f32 1.0, %v1666_v31  ;;  %v1686_v37 = vmul.f32 %v1666_v31, %v8776_v27  ;;  %v8778_v10 = vld [vmem:[#allocation36_spill] sm:$0xff]  ;;  %v8779_v31 = vld [vmem:[#allocation37_spill] sm:$0xff]  ;;  %v8786_v27 = vld [vmem:[#allocation39_spill] sm:$0xff] }
 0xa46   :  { %1675 = vrot.lane.b32.xlu0 %v1673_v53, %s7052_s13  ;;  %v8780_v53 = vld [vmem:[#allocation32_spill] sm:$0xff] }
 0xab8   :  { %v1676_v61 = vpop.permute.xlu0 %1675 }
 0xab9   :  { %v1678_v30 = vadd.f32 %v1676_v61, %v1643_v15  ;;  %v8781_v61 = vld [vmem:[#allocation48_spill] sm:$0xff] }
 0xabb   :  { %6672 = vtanh.f32 %v1678_v30  ;;  %v8782_v30 = vld [vmem:[#allocation33_spill] sm:$0xff] }
 0xac1   :  { %v6673_v13 = vpop.eup %6672 }
 0xac2   :  { %1682 = vrot.lane.b32.xlu1 %v6673_v13, %s7049_s4  ;;  %v8783_v13 = vld [vmem:[#allocation47_spill] sm:$0xff] }
 0xb34   :  { %v1683_v35 = vpop.permute.xlu1 %1682 }
 0xb35   :  { %v1685_v38 = vmul.f32 %v1683_v35, %v1680_v7  ;;  %v8784_v7 = vld [vmem:[#allocation38_spill] sm:$0xff]  ;;  %v8785_v35 = vld [vmem:[#allocation53_spill] sm:$0xff] }
 0xb37   :  { %v7665_v51 = vadd.f32 %v1686_v37, %v1685_v38  ;;  %v8787_v37 = vld [vmem:[#allocation54_spill] sm:$0xff]  ;;  %v8788_v38 = vld [vmem:[#allocation40_spill] sm:$0xff] }
 0xb39   :  { %1689 = vrot.lane.b32.xlu2 %v7665_v51, %s7049_s4 }
 0xb93   :  { %v1690_v8 = vpop.permute.xlu2 %1689 }
 0xb94   :  { %v1691_v6 = vsel %vm126_vm0, %v1690_v8, 0  ;;  %v8789_v8 = vld [vmem:[#allocation57_spill] sm:$0xff] }
 0xb95   :  { %v1713_v54 = vand.u32 4294901760, %v1691_v6 }
 0xb97   :  { %v1714_v25 = vsub.f32 %v1691_v6, %v1713_v54  ;;  %1759 = vmatmul.f32.vlgmr.msrb.gmra.mxu3 %v1713_v54  ;;  %v8790_v6 = vld [vmem:[#allocation41_spill] sm:$0xff] }
 0xb98   :  { %2023 = vmatpush.msrb.mxu3 %v7135_v11 }
 0xb99   :  { %1789 = vmatmul.f32.vlgmr.msrb.gmra.mxu0 %v1714_v25  ;;  %v1715_v15 = vand.u32 4294901760, %v1714_v25 }
 0xb9a   :  { %2025 = vmatpush.msrb.mxu3 %v7156_v20  ;;  %2052 = vmatpush.msrb.mxu0 %v7166_v26 }
 0xb9b   :  { %1816 = vmatmul.f32.vlgmr.msrb.gmra.mxu1 %v1715_v15  ;;  %v1716_v24 = vsub.f32 %v1714_v25, %v1715_v15 }
 0xb9c   :  { %2027 = vmatpush.msrb.mxu3 %v7196_v49  ;;  %2056 = vmatpush.msrb.mxu0 %v7183_v36 }
 0xb9d   :  { %v1717_v12 = vand.u32 4294901760, %v1716_v24  ;;  %2083 = vmatpush.msrb.mxu1 %v7135_v11 }
 0xb9e   :  { %2029 = vmatpush.msrb.mxu3 %v7198_v50  ;;  %2060 = vmatpush.msrb.mxu0 %v7216_v59 }
 0xb9f   :  { %1718 = vmatmul.f32.vlgmr.msrb.gmra.mxu2 %v1717_v12  ;;  %1874 = vmatmul.f32.vlgmr.msra.gmra.mxu3 %v1713_v54 }
 0xba0   :  { %2085 = vmatpush.msrb.mxu1 %v7156_v20  ;;  %1994 = vmatpush.msrb.mxu2 %v7154_v19 }
 0xba1   :  { %1935 = vmatmul.f32.vlgmr.msra.gmra.mxu0 %v1717_v12  ;;  %2241 = vmatpush.msra.mxu3 %v7358_v40 }
 0xba2   :  { %2064 = vmatpush.msrb.mxu0 %v7219_v60  ;;  %2087 = vmatpush.msrb.mxu1 %v7196_v49 }
 0xba3   :  { %1976 = vmatmul.f32.vlgmr.msra.gmra.mxu1 %v1713_v54  ;;  %1997 = vmatpush.msrb.mxu2 %v7172_v29 }
 0xba4   :  { %2089 = vmatpush.msrb.mxu1 %v7198_v50  ;;  %2247 = vmatpush.msra.mxu3 %v7360_v41 }
 0xba5   :  { %2000 = vmatpush.msrb.mxu2 %v7207_v56  ;;  %2289 = vmatpush.msra.mxu0 %v7307_v16 }
 0xba6   :  { %2253 = vmatpush.msra.mxu3 %v7370_v46  ;;  %2322 = vmatpush.msra.mxu1 %v7296_v4 }
 0xba7   :  { %1849 = vmatmul.f32.vlgmr.msra.gmra.mxu2 %v1713_v54  ;;  %2033 = vmatmul.f32.vlgmr.msrb.gmra.mxu3 %v1715_v15  ;;  %v8793_v15 = vld [vmem:[#allocation49_spill] sm:$0xff] }
 0xba8   :  { %2003 = vmatpush.msrb.mxu2 %v7210_v57  ;;  %2259 = vmatpush.msra.mxu3 %v7378_v55 }
 0xba9   :  { %2066 = vmatmul.f32.vlgmr.msrb.gmra.mxu0 %v1713_v54  ;;  %2324 = vmatpush.msra.mxu1 %v7298_v5 }
 0xbaa   :  { %2206 = vmatpush.msra.mxu2 %v7296_v4  ;;  %2292 = vmatpush.msra.mxu0 %v7310_v18 }
 0xbab   :  { %2265 = vmatpush.msra.mxu3 %v7382_v63  ;;  %2091 = vmatmul.f32.vlgmr.msrb.gmra.mxu1 %v1713_v54  ;;  %v8791_v54 = vld [vmem:[#allocation58_spill] sm:$0xff]  ;;  %v8795_v63 = vld [vmem:[#allocation27_spill] sm:$0xff] }
 0xbac   :  { %2208 = vmatpush.msra.mxu2 %v7298_v5  ;;  %2295 = vmatpush.msra.mxu0 %v7313_v21 }
 0xbad   :  { %2271 = vmatpush.msra.mxu3 %v7406_v44  ;;  %2326 = vmatpush.msra.mxu1 %v8777_v43  ;;  %v8794_v44 = vld [vmem:[#allocation26_spill] sm:$0xff] }
 0xbae   :  { %2210 = vmatpush.msra.mxu2 %v8777_v43  ;;  %2298 = vmatpush.msra.mxu0 %v8778_v10 }
 0xbaf   :  { %2006 = vmatmul.f32.vlgmr.msrb.gmra.mxu2 %v1714_v25  ;;  %2390 = vmatpush.msrb.mxu3 %v7296_v4  ;;  %v8792_v25 = vld [vmem:[#allocation44_spill] sm:$0xff] }
 0xbb0   :  { %2301 = vmatpush.msra.mxu0 %v8779_v31  ;;  %2328 = vmatpush.msra.mxu1 %v8780_v53 }
 0xbb1   :  { %2392 = vmatpush.msrb.mxu3 %v7298_v5  ;;  %2212 = vmatpush.msra.mxu2 %v8780_v53 }
 0xbb2   :  { %2304 = vmatpush.msra.mxu0 %v8781_v61  ;;  %2330 = vmatpush.msra.mxu1 %v8782_v30 }
 0xbb3   :  { %2394 = vmatpush.msrb.mxu3 %v8777_v43  ;;  %2214 = vmatpush.msra.mxu2 %v8782_v30 }
 0xbb4   :  { %2332 = vmatpush.msra.mxu1 %v8783_v13  ;;  %2467 = vmatpush.msrb.mxu0 %v7435_v9 }
 0xbb5   :  { %2396 = vmatpush.msrb.mxu3 %v8780_v53  ;;  %2216 = vmatpush.msra.mxu2 %v8783_v13 }
 0xbb6   :  { %2500 = vmatpush.msrb.mxu1 %v8785_v35  ;;  %2469 = vmatpush.msrb.mxu0 %v7437_v17 }
 0xbb7   :  { %2353 = vmatpush.msrb.mxu2 %v8784_v7  ;;  %2398 = vmatpush.msrb.mxu3 %v8782_v30 }
 0xbb8   :  { %2506 = vmatpush.msrb.mxu1 %v8787_v37  ;;  %2471 = vmatpush.msrb.mxu0 %v7471_v0 }
 0xbb9   :  { %2357 = vmatpush.msrb.mxu2 %v8786_v27  ;;  %2400 = vmatpush.msrb.mxu3 %v8783_v13 }
 0xbba   :  { %2512 = vmatpush.msrb.mxu1 %v8789_v8  ;;  %2473 = vmatpush.msrb.mxu0 %v7476_v2 }
 0xbbb   :  { %2361 = vmatpush.msrb.mxu2 %v8788_v38 }
 0xbbc   :  { %2518 = vmatpush.msrb.mxu1 %v8791_v54 }
 0xbbd   :  { %2365 = vmatpush.msrb.mxu2 %v8790_v6 }
 0xbbf   :  { %2369 = vmatpush.msrb.mxu2 %v8792_v25 }
 0xbc1   :  { %2373 = vmatpush.msrb.mxu2 %v8793_v15 }
 0xc16   :  { %v1790_v12 = vpop.f32.mrf.mxu0 }
 0xc18   :  { %v1817_v27 = vpop.f32.mrf.mxu1 }
 0xc1a   :  { %v1760_v24 = vpop.f32.mrf.mxu3 }
 0xc1e   :  { %v1936_v13 = vpop.f32.mrf.mxu0 }
 0xc20   :  { %v1977_v38 = vpop.f32.mrf.mxu1 }
 0xc21   :  { %v1978_v30 = vadd.f32 %v1977_v38, %v1936_v13 }
 0xc22   :  { %v1719_v37 = vpop.f32.mrf.mxu2  ;;  %v1875_v35 = vpop.f32.mrf.mxu3 }
 0xc26   :  { %v2067_v6 = vpop.f32.mrf.mxu0 }
 0xc28   :  { %v2092_v54 = vpop.f32.mrf.mxu1 }
 0xc2a   :  { %v1850_v7 = vpop.f32.mrf.mxu2  ;;  %v2034_v53 = vpop.f32.mrf.mxu3 }
 0xc32   :  { %v2007_v8 = vpop.f32.mrf.mxu2 }
 0xc33   :  { %v2008_v61 = vadd.f32 %v2007_v8, %v1978_v30  ;;  %v8796_v30 = vld [vmem:[#allocation28_spill] sm:$0xff]  ;;  %v1720_v8 = vadd.f32 %v1719_v37, %v7595_v22 }
 0xc35   :  { %v2035_v31 = vadd.f32 %v2034_v53, %v2008_v61 }
 0xc37   :  { %v2068_v10 = vadd.f32 %v2067_v6, %v2035_v31  ;;  %v1761_v6 = vadd.f32 %v1760_v24, %v1720_v8 }
 0xc39   :  { %v7730_v43 = vadd.f32 %v2092_v54, %v2068_v10  ;;  %v1791_v54 = vadd.f32 %v1790_v12, %v1761_v6 }
 0xc3b   :  { %v2097_v15 = vperm.slane %v7730_v43, 0  ;;  %v2096_v25 = vrot.slane %v7730_v43, 1 }
 0xc3d   :  { %v2101_v21 = vadd.f32 %v2097_v15, %v8794_v44  ;;  %v2098_v5 = vperm.slane %v2096_v25, 0  ;;  %v1818_v25 = vadd.f32 %v1817_v27, %v1791_v54 }
 0xc3f   :  { %6674 = vtanh.f32 %v2101_v21  ;;  %v2102_v18 = vadd.f32 %v2098_v5, %v8795_v63 }
 0xc41   :  { %6676 = vtanh.f32 %v2102_v18 }
 0xc45   :  { %v6675_v13 = vpop.eup %6674 }
 0xc46   :  { %v2105_v38 = vmul.f32 %v6675_v13, %v8796_v30 }
 0xc47   :  { %v6677_v53 = vpop.eup %6676 }
 0xc48   :  { %v2107_v31 = vsel %vm126_vm0, %v2105_v38, 0.0  ;;  %v2106_v10 = vmul.f32 %v6677_v53, %v8796_v30  ;;  %v1851_v38 = vadd.f32 %v1850_v7, %v1818_v25 }
 0xc49   :  { %2108 = vadd.xlane.f32.xlu0 %v2107_v31 }
 0xc4a   :  { %v2110_v61 = vsel %vm126_vm0, %v2106_v10, 0.0  ;;  %v7745_v31 = vadd.f32 %v1875_v35, %v1851_v38 }
 0xc4b   :  { %2111 = vadd.xlane.f32.xlu1 %v2110_v61 }
 0xc4c   :  { %8797 = vst [vmem:[#allocation52_spill] sm:$0xff] %v7745_v31  ;;  %v1878_v37 = vsel %vm1116_vm10, %v7745_v31, -inf }
 0xcbc   :  { %v2109_v21 = vpop.xlane.xlu0 %2108 }
 0xcbd   :  { %v2115_v18 = vperm.slane %v2109_v21, %v8766_v48 }
 0xcbe   :  { %v2112_v5 = vpop.xlane.xlu1 %2111 }
 0xcbf   :  { %v2116_v15 = vperm.slane %v2112_v5, %v8766_v48 }
 0xcc1   :  { %v2117_v13 = vsel %vm570_vm1, %v2116_v15, %v2115_v18 }
 0xcc2   :  { %v2119_v53 = vsel %vm573_vm2, %v2117_v13, -inf }
 0xcc3   :  { %2120 = vmax.xlane.f32.xlu2 %v2119_v53 }
 0xccb   :  { %1879 = vmax.xlane.f32.xlu2 %v1878_v37 }
 0xd36   :  { %v2121_v24 = vpop.xlane.xlu2 %2120 }
 0xd37   :  { %v2123_v12 = vperm.slane %v2121_v24, 0  ;;  %v2124_v27 = vperm.slane %v2121_v24, 1 }
 0xd39   :  { %v2127_v10 = vsub.f32 %v2109_v21, %v2123_v12  ;;  %v2128_v61 = vsub.f32 %v2112_v5, %v2124_v27 }
 0xd3b   :  { %v2129_v8 = vmul.f32 1.442695, %v2127_v10  ;;  %v2131_v6 = vmul.f32 1.442695, %v2128_v61 }
 0xd3d   :  { %6678 = vpow2.f32 %v2129_v8 }
 0xd3e   :  { %6680 = vpow2.f32 %v2131_v6  ;;  %v7753_v8 = vpop.xlane.xlu2 %1879 }
 0xd3f   :  { %8798 = vst [vmem:[#allocation55_spill] sm:$0xff] %v7753_v8  ;;  %vm1881_vm7 = vcmp.eq.f32.partialorder %v7745_v31, %v7753_v8 }
 0xd40   :  { %v1882_v6 = vsel %vm1881_vm7, %v8766_v48, 16 }
 0xd43   :  { %v6679_v54 = vpop.eup %6678 }
 0xd44   :  { %v6681_v7 = vpop.eup %6680  ;;  %2136 = vperm.xlu0 %6641, %v6679_v54  }
 0xd45   :  { %2139 = vperm.xlu1 %6639, %v6681_v7  }
 0xdb6   :  { %v2137_v25 = vpop.permute.xlu0 %2136 }
 0xdb7   :  { %v2140_v35 = vpop.permute.xlu1 %2139  ;;  %v2141_v18 = vperm.slane %v2137_v25, %v8766_v48  ;;  %v1883_v25 = vsel %vm1116_vm10, %v1882_v6, 2147483647 }
 0xdb8   :  { %v2142_v15 = vperm.slane %v2140_v35, %v8766_v48  ;;  %v1885_v35 = vshra.s32 %v1883_v25, 16 }
 0xdba   :  { %v2143_v13 = vsel %vm570_vm1, %v2142_v15, %v2141_v18  ;;  %v1887_v18 = vcvt.s32.f32 %v1885_v35 }
 0xdbb   :  { %v2145_v38 = vsel %vm573_vm2, %v2143_v13, 0.0 }
 0xdbc   :  { %2146 = vadd.xlane.f32.xlu0 %v2145_v38 }
 0xe2f   :  { %v2147_v21 = vpop.xlane.xlu0 %2146 }
 0xe30   :  { %6682 = vrcp.f32 %v2147_v21 }
 0xe36   :  { %v6683_v5 = vpop.eup %6682 }
 0xe37   :  { %v2149_v53 = vmul.f32 %v6683_v5, %v2147_v21 }
 0xe39   :  { %v2150_v37 = vsub.f32 2.0, %v2149_v53 }
 0xe3b   :  { %v2151_v24 = vmul.f32 %v6683_v5, %v2150_v37 }
 0xe3d   :  { %v2154_v12 = vperm.slane %v2151_v24, 1  ;;  %v2153_v27 = vperm.slane %v2151_v24, 0 }
 0xe3f   :  { %v2158_v10 = vmul.f32 %v6681_v7, %v2154_v12  ;;  %v2157_v61 = vmul.f32 %v6679_v54, %v2153_v27 }
 0xe41   :  { %2166 = vperm.xlu1 %6639, %v2158_v10   ;;  %2161 = vperm.xlu2 %6640, %v2157_v61  }
 0xe6b   :  { %1888 = vmin.xlane.f32.xlu1 %v1887_v18 }
 0xe9b   :  { %v7759_v15 = vpop.permute.xlu2 %2161 }
 0xe9c   :  { %v2169_v7 = vmul.f32 %v7621_v28, %v7759_v15 }
 0xe9e   :  { %v2171_v54 = vsel %vm126_vm0, %v2169_v7, 0.0 }
 0xe9f   :  { %v2172_v13 = vrot.slane %v2171_v54, 4 }
 0xea1   :  { %v2173_v38 = vadd.f32 %v2172_v13, %v2171_v54  ;;  %v1884_v54 = vand.u32 65535, %v1883_v25 }
 0xea3   :  { %v2174_v53 = vrot.slane %v2173_v38, 2 }
 0xea5   :  { %v2175_v12 = vadd.f32 %v2174_v53, %v2173_v38  ;;  %v1886_v38 = vcvt.s32.f32 %v1884_v54 }
 0xea7   :  { %v2176_v6 = vrot.slane %v2175_v12, 1 }
 0xea9   :  { %v2177_v28 = vadd.f32 %v2176_v6, %v2175_v12 }
 0xeb3   :  { %v7764_v21 = vpop.permute.xlu1 %2166 }
 0xeb4   :  { %v2170_v5 = vmul.f32 %v7614_v58, %v7764_v21  ;;  %v2429_v58 = vadd.f32 %v7730_v43, %v8772_v14 }
 0xeb6   :  { %v2178_v37 = vsel %vm126_vm0, %v2170_v5, 0.0 }
 0xeb7   :  { %v2179_v24 = vrot.slane %v2178_v37, 4 }
 0xeb9   :  { %v2180_v27 = vadd.f32 %v2179_v24, %v2178_v37 }
 0xebb   :  { %v2181_v10 = vrot.slane %v2180_v27, 2 }
 0xebd   :  { %v2182_v61 = vadd.f32 %v2181_v10, %v2180_v27 }
 0xebf   :  { %v2183_v35 = vrot.slane %v2182_v61, 1 }
 0xec1   :  { %v2184_v31 = vadd.f32 %v2183_v35, %v2182_v61 }
 0xec3   :  { %v2187_v7 = vsel %vm570_vm1, %v2184_v31, %v2177_v28 }
 0xec4   :  { %2188 = vrot.lane.b32.xlu0 %v2187_v7, %s7045_s26  ;;  %v8799_v7 = vld [vmem:[#allocation56_spill] sm:$0xff] }
 0xecc   :  { %2406 = vrot.lane.b32.xlu0 %v7730_v43, %s7049_s4 }
 0xed4   :  { %2431 = vrot.lane.b32.xlu0 %v2429_v58, %s7051_s5  ;;  %v8800_v58 = vld [vmem:[#allocation24_spill] sm:$0xff] }
 0xede   :  { %v1889_v13 = vpop.xlane.xlu1 %1888 }
 0xedf   :  { %vm1890_vm8 = vcmp.eq.f32.partialorder %v1887_v18, %v1889_v13  ;;  %v1895_v53 = vcvt.f32.s32 %v1889_v13 }
 0xee0   :  { %v1891_v5 = vsel %vm1890_vm8, %v1886_v38, inf }
 0xee1   :  { %1892 = vmin.xlane.f32.xlu2 %v1891_v5  ;;  %v1896_v24 = vshll.u32 %v1895_v53, 16 }
 0xf36   :  { %v2189_v27 = vpop.permute.xlu0 %2188 }
 0xf54   :  { %v1893_v37 = vpop.xlane.xlu2 %1892 }
 0xf55   :  { %v1894_v31 = vcvt.f32.s32 %v1893_v37 }
 0xf57   :  { %v1897_v12 = vadd.s32 %v1896_v24, %v1894_v31 }
 0xf59   :  { %vm1898_vm9 = vcmp.eq.s32.totalorder %v8766_v48, %v1897_v12 }
 0xf5a   :  { %v6606_v10 = vsel %vm1898_vm9, 1.0, %v8773_v23 }
 0xf5b   :  { %v2191_v43 = vsel %vm646_vm4, %v6606_v10, %v2189_v27 }
 0xf5c   :  { %v2193_v61 = vsel %vm655_vm5, %v2191_v43, 0 }
 0xf5d   :  { %v2217_v25 = vand.u32 4294901760, %v2193_v61 }
 0xf5f   :  { %2273 = vmatmul.f32.vlgmr.msra.gmra.mxu3 %v2217_v25  ;;  %v2218_v6 = vsub.f32 %v2193_v61, %v2217_v25  ;;  %v2407_v61 = vpop.permute.xlu0 %2406 }
 0xf60   :  { %2567 = vmatpush.msra.mxu3 %v7435_v9 }
 0xf61   :  { %2307 = vmatmul.f32.vlgmr.msra.gmra.mxu0 %v2218_v6  ;;  %v2219_v18 = vand.u32 4294901760, %v2218_v6 }
 0xf62   :  { %2569 = vmatpush.msra.mxu3 %v7437_v17  ;;  %2596 = vmatpush.msra.mxu0 %v7448_v39 }
 0xf63   :  { %2336 = vmatmul.f32.vlgmr.msra.gmra.mxu1 %v2219_v18  ;;  %v2220_v35 = vsub.f32 %v2218_v6, %v2219_v18 }
 0xf64   :  { %2571 = vmatpush.msra.mxu3 %v7471_v0  ;;  %2627 = vmatpush.msra.mxu1 %v7435_v9 }
 0xf65   :  { %v2221_v28 = vand.u32 4294901760, %v2220_v35  ;;  %2600 = vmatpush.msra.mxu0 %v7451_v32 }
 0xf66   :  { %2573 = vmatpush.msra.mxu3 %v7476_v2  ;;  %2629 = vmatpush.msra.mxu1 %v7437_v17 }
 0xf67   :  { %2222 = vmatmul.f32.vlgmr.msra.gmra.mxu2 %v2221_v28  ;;  %2402 = vmatmul.f32.vlgmr.msrb.gmra.mxu3 %v2217_v25 }
 0xf68   :  { %2538 = vmatpush.msra.mxu2 %v7440_v33  ;;  %2631 = vmatpush.msra.mxu1 %v7471_v0 }
 0xf69   :  { %2717 = vmatpush.msrb.mxu3 %v7191_v45  ;;  %2604 = vmatpush.msra.mxu0 %v7481_v62 }
 0xf6a   :  { %2541 = vmatpush.msra.mxu2 %v7443_v34  ;;  %2633 = vmatpush.msra.mxu1 %v7476_v2 }
 0xf6b   :  { %2723 = vmatpush.msrb.mxu3 %v7202_v52  ;;  %2608 = vmatpush.msra.mxu0 %v7493_v47 }
 0xf6c   :  { %2544 = vmatpush.msra.mxu2 %v7474_v3 }
 0xf6d   :  { %2729 = vmatpush.msrb.mxu3 %v7230_v1 }
 0xf6e   :  { %2547 = vmatpush.msra.mxu2 %v8799_v7 }
 0xf6f   :  { %2375 = vmatmul.f32.vlgmr.msrb.gmra.mxu2 %v2217_v25  ;;  %2735 = vmatpush.msrb.mxu3 %v8800_v58 }
 0xf70   :  { %2684 = vmatpush.msrb.mxu2 %v7135_v11 }
 0xf72   :  { %2686 = vmatpush.msrb.mxu2 %v7156_v20 }
 0xf74   :  { %2688 = vmatpush.msrb.mxu2 %v7196_v49 }
 0xf76   :  { %2690 = vmatpush.msrb.mxu2 %v7198_v50 }
 0xfde   :  { %v2308_v53 = vpop.f32.mrf.mxu0 }
 0xfe0   :  { %v2337_v24 = vpop.f32.mrf.mxu1 }
 0xfe2   :  { %v2274_v54 = vpop.f32.mrf.mxu3 }
 0xfea   :  { %v2223_v13 = vpop.f32.mrf.mxu2  ;;  %v2403_v10 = vpop.f32.mrf.mxu3 }
 0xfeb   :  { %v2224_v38 = vadd.f32 %v2223_v13, %v8775_v42 }
 0xfed   :  { %v2275_v5 = vadd.f32 %v2274_v54, %v2224_v38 }
 0xfef   :  { %v2309_v37 = vadd.f32 %v2308_v53, %v2275_v5 }
 0xff1   :  { %v2338_v31 = vadd.f32 %v2337_v24, %v2309_v37  ;;  %v2432_v24 = vpop.permute.xlu0 %2431 }
 0xff2   :  { %v2376_v12 = vpop.f32.mrf.mxu2 }
 0xff3   :  { %v2377_v27 = vadd.f32 %v2376_v12, %v2338_v31 }
 0xff5   :  { %v2404_v43 = vadd.f32 %v2403_v10, %v2377_v27 }
 0xff7   :  { %v2409_v25 = vadd.f32 %v2407_v61, %v2404_v43 }
 0xff9   :  { %v6607_v6 = vmul.f32 -1.442695, %v2409_v25 }
 0xffb   :  { %6684 = vpow2.f32 %v6607_v6 }
0x1001   :  { %v6685_v18 = vpop.eup %6684 }
0x1002   :  { %v2413_v35 = vadd.f32 1.0, %v6685_v18 }
0x1004   :  { %6686 = vrcp.f32 %v2413_v35  ;;  %v2425_v13 = vand.u32 2147483648, %v2413_v35  ;;  %v2423_v38 = vand.u32 2147483647, %v2413_v35  ;;  %vm2419_vm12 = vweird.f32 %v2413_v35 }
0x1006   :  { %v2426_v53 = vor.u32 1.1754944e-38, %v2425_v13  ;;  %vm2424_vm14 = vcmp.eq.f32.partialorder %v2423_v38, 8.507059e+37 }
0x100a   :  { %v6687_v28 = vpop.eup %6686 }
0x100b   :  { %v2415_v8 = vmul.f32 %v6687_v28, %v2413_v35  ;;  %vm2420_vm11 = vweird.f32 %v6687_v28 }
0x100c   :  { %vm2421_vm13 = vmor %vm2419_vm12, %vm2420_vm11 }
0x100d   :  { %v2416_v58 = vsub.f32 1.0, %v2415_v8 }
0x100f   :  { %v2417_v54 = vmul.f32 %v6687_v28, %v2416_v58 }
0x1011   :  { %v2418_v5 = vadd.f32 %v6687_v28, %v2417_v54 }
0x1013   :  { %v2422_v37 = vsel %vm2421_vm13, %v6687_v28, %v2418_v5  ;;  %v8801_v5 = vld [vmem:[#allocation34_spill] sm:$0xff] }
0x1014   :  { %v2427_v31 = vsel %vm2424_vm14, %v2426_v53, %v2422_v37  ;;  %v8802_v53 = vld [vmem:[#allocation46_spill] sm:$0xff] }
0x1015   :  { %v2434_v12 = vmul.f32 %v2432_v24, %v2427_v31  ;;  %v2441_v8 = vsub.f32 1.0, %v2427_v31  ;;  %v2447_v25 = vmul.f32 %v2427_v31, %v7665_v51  ;;  %v8803_v37 = vld [vmem:[#allocation30_spill] sm:$0xff]  ;;  %v8804_v24 = vld [vmem:[#allocation35_spill] sm:$0xff] }
0x1016   :  { %v8805_v31 = vld [vmem:[#allocation50_spill] sm:$0xff] }
0x1017   :  { %2436 = vrot.lane.b32.xlu1 %v2434_v12, %s7052_s13  ;;  %v8806_v12 = vld [vmem:[#allocation31_spill] sm:$0xff] }
0x1089   :  { %v2437_v27 = vpop.permute.xlu1 %2436 }
0x108a   :  { %v2439_v10 = vadd.f32 %v2437_v27, %v2404_v43  ;;  %v8807_v27 = vld [vmem:[#allocation36_spill] sm:$0xff] }
0x108c   :  { %6688 = vtanh.f32 %v2439_v10  ;;  %v8808_v10 = vld [vmem:[#allocation37_spill] sm:$0xff] }
0x1092   :  { %v6689_v61 = vpop.eup %6688 }
0x1093   :  { %2443 = vrot.lane.b32.xlu2 %v6689_v61, %s7049_s4  ;;  %v8809_v61 = vld [vmem:[#allocation32_spill] sm:$0xff] }
0x10ed   :  { %v2444_v58 = vpop.permute.xlu2 %2443 }
0x10ee   :  { %v2446_v6 = vmul.f32 %v2444_v58, %v2441_v8  ;;  %v8810_v8 = vld [vmem:[#allocation48_spill] sm:$0xff]  ;;  %v8811_v58 = vld [vmem:[#allocation33_spill] sm:$0xff] }
0x10f0   :  { %v7808_v18 = vadd.f32 %v2447_v25, %v2446_v6  ;;  %v8812_v25 = vld [vmem:[#allocation47_spill] sm:$0xff]  ;;  %v8813_v6 = vld [vmem:[#allocation38_spill] sm:$0xff] }
0x10f2   :  { %2450 = vrot.lane.b32.xlu0 %v7808_v18, %s7049_s4 }
0x1164   :  { %v2451_v35 = vpop.permute.xlu0 %2450 }
0x1165   :  { %v2452_v28 = vsel %vm126_vm0, %v2451_v35, 0  ;;  %v8814_v35 = vld [vmem:[#allocation53_spill] sm:$0xff] }
0x1166   :  { %v2474_v13 = vand.u32 4294901760, %v2452_v28 }
0x1168   :  { %v2475_v54 = vsub.f32 %v2452_v28, %v2474_v13  ;;  %2520 = vmatmul.f32.vlgmr.msrb.gmra.mxu1 %v2474_v13  ;;  %v8815_v28 = vld [vmem:[#allocation39_spill] sm:$0xff] }
0x1169   :  { %2784 = vmatpush.msrb.mxu1 %v7135_v11 }
0x116a   :  { %2550 = vmatmul.f32.vlgmr.msra.gmra.mxu2 %v2475_v54  ;;  %v2476_v43 = vand.u32 4294901760, %v2475_v54 }
0x116b   :  { %2786 = vmatpush.msrb.mxu1 %v7156_v20  ;;  %2813 = vmatpush.msra.mxu2 %v7166_v26 }
0x116c   :  { %2577 = vmatmul.f32.vlgmr.msra.gmra.mxu3 %v2476_v43  ;;  %v2477_v51 = vsub.f32 %v2475_v54, %v2476_v43 }
0x116d   :  { %2788 = vmatpush.msrb.mxu1 %v7196_v49  ;;  %2817 = vmatpush.msra.mxu2 %v7183_v36 }
0x116e   :  { %v2478_v38 = vand.u32 4294901760, %v2477_v51  ;;  %2844 = vmatpush.msra.mxu3 %v7135_v11  ;;  %v8819_v51 = vld [vmem:[#allocation41_spill] sm:$0xff] }
0x116f   :  { %2790 = vmatpush.msrb.mxu1 %v7198_v50  ;;  %2821 = vmatpush.msra.mxu2 %v7216_v59 }
0x1170   :  { %2479 = vmatmul.f32.vlgmr.msrb.gmra.mxu0 %v2478_v38  ;;  %2635 = vmatmul.f32.vlgmr.msra.gmra.mxu1 %v2474_v13 }
0x1171   :  { %2846 = vmatpush.msra.mxu3 %v7156_v20  ;;  %2755 = vmatpush.msrb.mxu0 %v7154_v19 }
0x1172   :  { %2696 = vmatmul.f32.vlgmr.msrb.gmra.mxu2 %v2478_v38  ;;  %3002 = vmatpush.msra.mxu1 %v7358_v40  ;;  %v8820_v38 = vld [vmem:[#allocation58_spill] sm:$0xff] }
0x1173   :  { %2825 = vmatpush.msra.mxu2 %v7219_v60  ;;  %2848 = vmatpush.msra.mxu3 %v7196_v49 }
0x1174   :  { %2737 = vmatmul.f32.vlgmr.msrb.gmra.mxu3 %v2474_v13  ;;  %2758 = vmatpush.msrb.mxu0 %v7172_v29 }
0x1175   :  { %2850 = vmatpush.msra.mxu3 %v7198_v50  ;;  %3008 = vmatpush.msra.mxu1 %v7360_v41 }
0x1176   :  { %2761 = vmatpush.msrb.mxu0 %v7207_v56  ;;  %3050 = vmatpush.msrb.mxu2 %v7307_v16 }
0x1177   :  { %3014 = vmatpush.msra.mxu1 %v7370_v46  ;;  %3083 = vmatpush.msrb.mxu3 %v7296_v4 }
0x1178   :  { %2610 = vmatmul.f32.vlgmr.msra.gmra.mxu0 %v2474_v13  ;;  %2794 = vmatmul.f32.vlgmr.msrb.gmra.mxu1 %v2476_v43  ;;  %v8818_v43 = vld [vmem:[#allocation57_spill] sm:$0xff] }
0x1179   :  { %2764 = vmatpush.msrb.mxu0 %v7210_v57  ;;  %3020 = vmatpush.msra.mxu1 %v7378_v55 }
0x117a   :  { %2827 = vmatmul.f32.vlgmr.msra.gmra.mxu2 %v2474_v13  ;;  %3085 = vmatpush.msrb.mxu3 %v8803_v37 }
0x117b   :  { %2967 = vmatpush.msra.mxu0 %v7296_v4  ;;  %3053 = vmatpush.msrb.mxu2 %v8801_v5 }
0x117c   :  { %3026 = vmatpush.msra.mxu1 %v8802_v53  ;;  %2852 = vmatmul.f32.vlgmr.msra.gmra.mxu3 %v2474_v13  ;;  %v8816_v13 = vld [vmem:[#allocation54_spill] sm:$0xff] }
0x117d   :  { %2969 = vmatpush.msra.mxu0 %v8803_v37  ;;  %3056 = vmatpush.msrb.mxu2 %v8804_v24 }
0x117e   :  { %3032 = vmatpush.msra.mxu1 %v8805_v31  ;;  %3087 = vmatpush.msrb.mxu3 %v8806_v12 }
0x117f   :  { %2971 = vmatpush.msra.mxu0 %v8806_v12  ;;  %3059 = vmatpush.msrb.mxu2 %v8807_v27 }
0x1180   :  { %2767 = vmatmul.f32.vlgmr.msrb.gmra.mxu0 %v2475_v54  ;;  %3151 = vmatpush.msrb.mxu1 %v7296_v4  ;;  %v8817_v54 = vld [vmem:[#allocation40_spill] sm:$0xff] }
0x1181   :  { %3062 = vmatpush.msrb.mxu2 %v8808_v10  ;;  %3089 = vmatpush.msrb.mxu3 %v8809_v61 }
0x1182   :  { %3153 = vmatpush.msrb.mxu1 %v8803_v37  ;;  %2973 = vmatpush.msra.mxu0 %v8809_v61 }
0x1183   :  { %3065 = vmatpush.msrb.mxu2 %v8810_v8  ;;  %3091 = vmatpush.msrb.mxu3 %v8811_v58 }
0x1184   :  { %3155 = vmatpush.msrb.mxu1 %v8806_v12  ;;  %2975 = vmatpush.msra.mxu0 %v8811_v58 }
0x1185   :  { %3093 = vmatpush.msrb.mxu3 %v8812_v25  ;;  %3228 = vmatpush.msra.mxu2 %v7435_v9 }
0x1186   :  { %3157 = vmatpush.msrb.mxu1 %v8809_v61  ;;  %2977 = vmatpush.msra.mxu0 %v8812_v25 }
0x1187   :  { %3261 = vmatpush.msra.mxu3 %v8814_v35  ;;  %3230 = vmatpush.msra.mxu2 %v7437_v17  ;;  %v8821_v35 = vld [vmem:[#allocation44_spill] sm:$0xff] }
0x1188   :  { %3114 = vmatpush.msrb.mxu0 %v8813_v6  ;;  %3159 = vmatpush.msrb.mxu1 %v8811_v58  ;;  %v8822_v6 = vld [vmem:[#allocation49_spill] sm:$0xff] }
0x1189   :  { %3267 = vmatpush.msra.mxu3 %v8816_v13  ;;  %3232 = vmatpush.msra.mxu2 %v7471_v0 }
0x118a   :  { %3118 = vmatpush.msrb.mxu0 %v8815_v28  ;;  %3161 = vmatpush.msrb.mxu1 %v8812_v25 }
0x118b   :  { %3273 = vmatpush.msra.mxu3 %v8818_v43  ;;  %3234 = vmatpush.msra.mxu2 %v7476_v2 }
0x118c   :  { %3122 = vmatpush.msrb.mxu0 %v8817_v54 }
0x118d   :  { %3279 = vmatpush.msra.mxu3 %v8820_v38 }
0x118e   :  { %3126 = vmatpush.msrb.mxu0 %v8819_v51 }
0x1190   :  { %3130 = vmatpush.msrb.mxu0 %v8821_v35 }
0x1192   :  { %3134 = vmatpush.msrb.mxu0 %v8822_v6 }
0x11e5   :  { %v2521_v28 = vpop.f32.mrf.mxu1 }
0x11ed   :  { %v2480_v13 = vpop.f32.mrf.mxu0  ;;  %v2551_v58 = vpop.f32.mrf.mxu2 }
0x11ee   :  { %v2481_v25 = vadd.f32 %v2480_v13, %v7595_v22  ;;  %v2636_v43 = vpop.f32.mrf.mxu1 }
0x11ef   :  { %v2578_v8 = vpop.f32.mrf.mxu3 }
0x11f0   :  { %v2522_v61 = vadd.f32 %v2521_v28, %v2481_v25 }
0x11f2   :  { %v2552_v54 = vadd.f32 %v2551_v58, %v2522_v61 }
0x11f4   :  { %v2579_v10 = vadd.f32 %v2578_v8, %v2552_v54 }
0x11f5   :  { %v2611_v27 = vpop.f32.mrf.mxu0  ;;  %v2697_v31 = vpop.f32.mrf.mxu2 }
0x11f6   :  { %v2612_v12 = vadd.f32 %v2611_v27, %v2579_v10  ;;  %v2795_v6 = vpop.f32.mrf.mxu1 }
0x11f7   :  { %v2738_v38 = vpop.f32.mrf.mxu3 }
0x11f8   :  { %v7874_v51 = vadd.f32 %v2636_v43, %v2612_v12  ;;  %v2739_v24 = vadd.f32 %v2738_v38, %v2697_v31 }
0x11fa   :  { %8823 = vst [vmem:[#allocation26_spill] sm:$0xff] %v7874_v51 }
0x11fd   :  { %v2768_v35 = vpop.f32.mrf.mxu0  ;;  %v2828_v5 = vpop.f32.mrf.mxu2 }
0x11fe   :  { %v2769_v37 = vadd.f32 %v2768_v35, %v2739_v24 }
0x11ff   :  { %v2853_v57 = vpop.f32.mrf.mxu3 }
0x1200   :  { %v2796_v53 = vadd.f32 %v2795_v6, %v2769_v37 }
0x1202   :  { %v2829_v55 = vadd.f32 %v2828_v5, %v2796_v53 }
0x1204   :  { %v7876_v13 = vadd.f32 %v2853_v57, %v2829_v55 }
0x1206   :  { %v2857_v61 = vrot.slane %v7876_v13, 1  ;;  %v2858_v8 = vperm.slane %v7876_v13, 0 }
0x1208   :  { %v2859_v58 = vperm.slane %v2857_v61, 0  ;;  %v2862_v27 = vadd.f32 %v2858_v8, %v8794_v44 }
0x120a   :  { %6690 = vtanh.f32 %v2862_v27  ;;  %v2863_v12 = vadd.f32 %v2859_v58, %v8795_v63 }
0x120c   :  { %6692 = vtanh.f32 %v2863_v12 }
0x1210   :  { %v6691_v31 = vpop.eup %6690 }
0x1211   :  { %v2866_v24 = vmul.f32 %v6691_v31, %v8796_v30 }
0x1212   :  { %v6693_v37 = vpop.eup %6692 }
0x1213   :  { %v2868_v5 = vsel %vm126_vm0, %v2866_v24, 0.0  ;;  %v2867_v57 = vmul.f32 %v6693_v37, %v8796_v30 }
0x1214   :  { %2869 = vadd.xlane.f32.xlu0 %v2868_v5 }
0x1215   :  { %v2871_v55 = vsel %vm126_vm0, %v2867_v57, 0.0 }
0x1216   :  { %2872 = vadd.xlane.f32.xlu1 %v2871_v55 }
0x1287   :  { %v2870_v53 = vpop.xlane.xlu0 %2869 }
0x1288   :  { %v2876_v25 = vperm.slane %v2870_v53, %v8766_v48 }
0x1289   :  { %v2873_v10 = vpop.xlane.xlu1 %2872 }
0x128a   :  { %v2877_v6 = vperm.slane %v2873_v10, %v8766_v48 }
0x128c   :  { %v2878_v35 = vsel %vm570_vm1, %v2877_v6, %v2876_v25 }
0x128d   :  { %v2880_v28 = vsel %vm573_vm2, %v2878_v35, -inf }
0x128e   :  { %2881 = vmax.xlane.f32.xlu2 %v2880_v28 }
0x1301   :  { %v2882_v54 = vpop.xlane.xlu2 %2881 }
0x1302   :  { %v2884_v43 = vperm.slane %v2882_v54, 0  ;;  %v2885_v38 = vperm.slane %v2882_v54, 1 }
0x1304   :  { %v2888_v61 = vsub.f32 %v2870_v53, %v2884_v43  ;;  %v2889_v8 = vsub.f32 %v2873_v10, %v2885_v38  ;;  %v2639_v53 = vsel %vm1116_vm10, %v7874_v51, -inf }
0x1306   :  { %v2890_v58 = vmul.f32 1.442695, %v2888_v61  ;;  %v2892_v27 = vmul.f32 1.442695, %v2889_v8 }
0x1308   :  { %6694 = vpow2.f32 %v2890_v58 }
0x1309   :  { %6696 = vpow2.f32 %v2892_v27 }
0x130e   :  { %v6695_v12 = vpop.eup %6694 }
0x130f   :  { %v6697_v31 = vpop.eup %6696  ;;  %2897 = vperm.xlu0 %6641, %v6695_v12  }
0x1310   :  { %2900 = vperm.xlu2 %6640, %v6697_v31  }
0x136a   :  { %v2901_v24 = vpop.permute.xlu2 %2900 }
0x136b   :  { %v2903_v5 = vperm.slane %v2901_v24, %v8766_v48 }
0x1381   :  { %v2898_v37 = vpop.permute.xlu0 %2897 }
0x1382   :  { %v2902_v57 = vperm.slane %v2898_v37, %v8766_v48 }
0x1384   :  { %v2904_v55 = vsel %vm570_vm1, %v2903_v5, %v2902_v57  ;;  %v6503_v57 = vadd.s32 4294967288, %v8766_v48 }
0x1385   :  { %v2906_v25 = vsel %vm573_vm2, %v2904_v55, 0.0  ;;  %v6508_v55 = vadd.s32 4294967280, %v8766_v48 }
0x1386   :  { %2907 = vadd.xlane.f32.xlu1 %v2906_v25  ;;  %v8826_v25 = vld [vmem:[#allocation42_spill] sm:$0xff] }
0x138e   :  { %2640 = vmax.xlane.f32.xlu1 %v2639_v53  ;;  %v6500_v53 = vperm.slane %v8826_v25, %v8766_v48  ;;  %v7916_v25 = vld [vmem:[#allocation2] sm:$0xff] }
0x13f9   :  { %v2908_v10 = vpop.xlane.xlu1 %2907 }
0x13fa   :  { %6698 = vrcp.f32 %v2908_v10 }
0x1400   :  { %v6699_v6 = vpop.eup %6698 }
0x1401   :  { %v2910_v35 = vmul.f32 %v6699_v6, %v2908_v10  ;;  %v7896_v58 = vpop.xlane.xlu1 %2640  ;;  %v8827_v10 = vld [vmem:[#allocation43_spill] sm:$0xff] }
0x1402   :  { %8824 = vst [vmem:[#allocation56_spill] sm:$0xff] %v7896_v58  ;;  %vm2642_vm15 = vcmp.eq.f32.partialorder %v7874_v51, %v7896_v58 }
0x1403   :  { %v2911_v28 = vsub.f32 2.0, %v2910_v35  ;;  %v2643_v27 = vsel %vm2642_vm15, %v8766_v48, 16  ;;  %v6510_v35 = vperm.slane %v7764_v21, %v6508_v55 }
0x1404   :  { %v2644_v24 = vsel %vm1116_vm10, %v2643_v27, 2147483647 }
0x1405   :  { %v2912_v54 = vmul.f32 %v6699_v6, %v2911_v28  ;;  %v2646_v37 = vshra.s32 %v2644_v24, 16  ;;  %v6499_v6 = vperm.slane %v8827_v10, %v8766_v48  ;;  %v8828_v28 = vld [vmem:[#allocation59_spill] sm:$0xff] }
0x1407   :  { %v2914_v43 = vperm.slane %v2912_v54, 0  ;;  %v2915_v38 = vperm.slane %v2912_v54, 1  ;;  %v2648_v5 = vcvt.s32.f32 %v2646_v37  ;;  %v6505_v54 = vperm.slane %v8828_v28, %v6503_v57 }
0x1409   :  { %v2918_v61 = vmul.f32 %v6695_v12, %v2914_v43  ;;  %v2919_v8 = vmul.f32 %v6697_v31, %v2915_v38  ;;  %v8825_v12 = vld [vmem:[#allocation60_spill] sm:$0xff]  ;;  %v6513_v43 = vadd.s32 4294967272, %v8766_v48  ;;  %v6509_v38 = vperm.slane %v7759_v15, %v6508_v55 }
0x140a   :  { %v6504_v31 = vperm.slane %v8825_v12, %v6503_v57  ;;  %8829 = vst [vmem:[#allocation60_spill] sm:$0xff] %v7916_v25  ;;  %v7919_v57 = vld [vmem:[#allocation2 + $0x8] sm:$0xff] }
0x140b   :  { %2922 = vperm.xlu0 %6641, %v2918_v61   ;;  %2927 = vperm.xlu1 %6639, %v2919_v8   ;;  %v6501_v8 = vsel %vm570_vm1, %v6500_v53, %v6499_v6  ;;  %v6511_v27 = vsel %vm570_vm1, %v6510_v35, %v6509_v38  ;;  %8830 = vst [vmem:[#allocation42_spill] sm:$0xff] %v7919_v57 }
0x140c   :  { %v6506_v61 = vsel %vm570_vm1, %v6505_v54, %v6504_v31 }
0x140d   :  { %v6539_v55 = vsel %vm6538_vm3, %v6501_v8, %v6506_v61 }
0x140e   :  { %v6540_v31 = vsel %vm646_vm4, %v6539_v55, %v6511_v27 }
0x1435   :  { %2649 = vmin.xlane.f32.xlu0 %v2648_v5 }
0x147d   :  { %v2923_v37 = vpop.permute.xlu0 %2922  ;;  %v2928_v12 = vpop.permute.xlu1 %2927 }
0x147e   :  { %v2930_v21 = vmul.f32 %v7916_v25, %v2923_v37  ;;  %v6514_v10 = vperm.slane %v2923_v37, %v6513_v43  ;;  %v2931_v28 = vmul.f32 %v7919_v57, %v2928_v12  ;;  %v6515_v15 = vperm.slane %v2928_v12, %v6513_v43 }
0x1480   :  { %v2932_v53 = vsel %vm126_vm0, %v2930_v21, 0.0  ;;  %v2939_v6 = vsel %vm126_vm0, %v2931_v28, 0.0  ;;  %v6516_v35 = vsel %vm570_vm1, %v6515_v15, %v6514_v10  ;;  %v3190_v21 = vadd.f32 %v7876_v13, %v8772_v14 }
0x1481   :  { %v2933_v54 = vrot.slane %v2932_v53, 4  ;;  %v2940_v38 = vrot.slane %v2939_v6, 4  ;;  %v7926_v51 = vsel %vm6541_vm6, %v6540_v31, %v6516_v35  ;;  %v2645_v10 = vand.u32 65535, %v2644_v24 }
0x1482   :  { %8831 = vst [vmem:[#allocation43_spill] sm:$0xff] %v7926_v51 }
0x1483   :  { %v2934_v58 = vadd.f32 %v2933_v54, %v2932_v53  ;;  %v2941_v37 = vadd.f32 %v2940_v38, %v2939_v6 }
0x1485   :  { %v2935_v25 = vrot.slane %v2934_v58, 2  ;;  %v2942_v30 = vrot.slane %v2941_v37, 2 }
0x1487   :  { %v2936_v63 = vadd.f32 %v2935_v25, %v2934_v58  ;;  %v2943_v57 = vadd.f32 %v2942_v30, %v2941_v37  ;;  %v2647_v58 = vcvt.s32.f32 %v2645_v10  ;;  %v8832_v37 = vld [vmem:[#allocation24_spill] sm:$0xff] }
0x1489   :  { %v2937_v43 = vrot.slane %v2936_v63, 1  ;;  %v2944_v61 = vrot.slane %v2943_v57, 1 }
0x148b   :  { %v2938_v8 = vadd.f32 %v2937_v43, %v2936_v63  ;;  %v2945_v27 = vadd.f32 %v2944_v61, %v2943_v57 }
0x148d   :  { %v2948_v12 = vsel %vm570_vm1, %v2945_v27, %v2938_v8 }
0x148e   :  { %2949 = vrot.lane.b32.xlu1 %v2948_v12, %s7045_s26 }
0x1496   :  { %3167 = vrot.lane.b32.xlu1 %v7876_v13, %s7049_s4 }
0x149e   :  { %3192 = vrot.lane.b32.xlu1 %v3190_v21, %s7051_s5 }
0x14a8   :  { %v2650_v28 = vpop.xlane.xlu0 %2649 }
0x14a9   :  { %vm2651_vm7 = vcmp.eq.f32.partialorder %v2648_v5, %v2650_v28  ;;  %v2656_v63 = vcvt.f32.s32 %v2650_v28 }
0x14aa   :  { %v2652_v30 = vsel %vm2651_vm7, %v2647_v58, inf }
0x14ab   :  { %2653 = vmin.xlane.f32.xlu2 %v2652_v30  ;;  %v2657_v57 = vshll.u32 %v2656_v63, 16 }
0x1500   :  { %v2950_v31 = vpop.permute.xlu1 %2949 }
0x151e   :  { %v2654_v25 = vpop.xlane.xlu2 %2653 }
0x151f   :  { %v2655_v15 = vcvt.f32.s32 %v2654_v25 }
0x1521   :  { %v2658_v55 = vadd.s32 %v2657_v57, %v2655_v15  ;;  %v3168_v57 = vpop.permute.xlu1 %3167 }
0x1523   :  { %vm2659_vm8 = vcmp.eq.s32.totalorder %v8766_v48, %v2658_v55 }
0x1524   :  { %v6608_v53 = vsel %vm2659_vm8, 1.0, %v8773_v23 }
0x1525   :  { %v2952_v13 = vsel %vm646_vm4, %v6608_v53, %v2950_v31 }
0x1526   :  { %v2954_v6 = vsel %vm655_vm5, %v2952_v13, 0 }
0x1527   :  { %v2978_v24 = vand.u32 4294901760, %v2954_v6 }
0x1529   :  { %3034 = vmatmul.f32.vlgmr.msra.gmra.mxu1 %v2978_v24  ;;  %v2979_v35 = vsub.f32 %v2954_v6, %v2978_v24 }
0x152a   :  { %3328 = vmatpush.msra.mxu1 %v7435_v9 }
0x152b   :  { %3068 = vmatmul.f32.vlgmr.msrb.gmra.mxu2 %v2979_v35  ;;  %v2980_v5 = vand.u32 4294901760, %v2979_v35 }
0x152c   :  { %3330 = vmatpush.msra.mxu1 %v7437_v17  ;;  %3357 = vmatpush.msrb.mxu2 %v7448_v39 }
0x152d   :  { %3097 = vmatmul.f32.vlgmr.msrb.gmra.mxu3 %v2980_v5  ;;  %v2981_v54 = vsub.f32 %v2979_v35, %v2980_v5 }
0x152e   :  { %3332 = vmatpush.msra.mxu1 %v7471_v0  ;;  %3388 = vmatpush.msrb.mxu3 %v7435_v9 }
0x152f   :  { %v2982_v38 = vand.u32 4294901760, %v2981_v54  ;;  %3361 = vmatpush.msrb.mxu2 %v7451_v32 }
0x1530   :  { %3334 = vmatpush.msra.mxu1 %v7476_v2  ;;  %3390 = vmatpush.msrb.mxu3 %v7437_v17 }
0x1531   :  { %2983 = vmatmul.f32.vlgmr.msra.gmra.mxu0 %v2982_v38  ;;  %3163 = vmatmul.f32.vlgmr.msrb.gmra.mxu1 %v2978_v24 }
0x1532   :  { %3299 = vmatpush.msra.mxu0 %v7440_v33  ;;  %3392 = vmatpush.msrb.mxu3 %v7471_v0 }
0x1533   :  { %3478 = vmatpush.msrb.mxu1 %v7191_v45  ;;  %3365 = vmatpush.msrb.mxu2 %v7481_v62 }
0x1534   :  { %3302 = vmatpush.msra.mxu0 %v7443_v34  ;;  %3394 = vmatpush.msrb.mxu3 %v7476_v2 }
0x1535   :  { %3484 = vmatpush.msrb.mxu1 %v7202_v52  ;;  %3369 = vmatpush.msrb.mxu2 %v7493_v47 }
0x1536   :  { %3305 = vmatpush.msra.mxu0 %v7474_v3 }
0x1537   :  { %3490 = vmatpush.msrb.mxu1 %v7230_v1 }
0x1538   :  { %3308 = vmatpush.msra.mxu0 %v8799_v7 }
0x1539   :  { %3136 = vmatmul.f32.vlgmr.msrb.gmra.mxu0 %v2978_v24  ;;  %3496 = vmatpush.msrb.mxu1 %v8832_v37 }
0x153a   :  { %3445 = vmatpush.msrb.mxu0 %v7135_v11 }
0x153c   :  { %3447 = vmatpush.msrb.mxu0 %v7156_v20 }
0x153e   :  { %3449 = vmatpush.msrb.mxu0 %v7196_v49 }
0x1540   :  { %3451 = vmatpush.msrb.mxu0 %v7198_v50 }
0x15a6   :  { %v3035_v43 = vpop.f32.mrf.mxu1 }
0x15ae   :  { %v2984_v61 = vpop.f32.mrf.mxu0  ;;  %v3069_v12 = vpop.f32.mrf.mxu2 }
0x15af   :  { %v2985_v8 = vadd.f32 %v2984_v61, %v8775_v42  ;;  %v3164_v63 = vpop.f32.mrf.mxu1 }
0x15b0   :  { %v3098_v10 = vpop.f32.mrf.mxu3 }
0x15b1   :  { %v3036_v27 = vadd.f32 %v3035_v43, %v2985_v8  ;;  %v3193_v8 = vpop.permute.xlu1 %3192 }
0x15b3   :  { %v3070_v21 = vadd.f32 %v3069_v12, %v3036_v27 }
0x15b5   :  { %v3099_v28 = vadd.f32 %v3098_v10, %v3070_v21 }
0x15b6   :  { %v3137_v58 = vpop.f32.mrf.mxu0 }
0x15b7   :  { %v3138_v30 = vadd.f32 %v3137_v58, %v3099_v28 }
0x15b9   :  { %v3165_v25 = vadd.f32 %v3164_v63, %v3138_v30 }
0x15bb   :  { %v3170_v15 = vadd.f32 %v3168_v57, %v3165_v25 }
0x15bd   :  { %v6609_v55 = vmul.f32 -1.442695, %v3170_v15 }
0x15bf   :  { %6700 = vpow2.f32 %v6609_v55 }
0x15c5   :  { %v6701_v31 = vpop.eup %6700 }
0x15c6   :  { %v3174_v53 = vadd.f32 1.0, %v6701_v31 }
0x15c8   :  { %6702 = vrcp.f32 %v3174_v53  ;;  %v3186_v35 = vand.u32 2147483648, %v3174_v53  ;;  %v3184_v54 = vand.u32 2147483647, %v3174_v53  ;;  %vm3180_vm11 = vweird.f32 %v3174_v53 }
0x15ca   :  { %v3187_v43 = vor.u32 1.1754944e-38, %v3186_v35  ;;  %vm3185_vm13 = vcmp.eq.f32.partialorder %v3184_v54, 8.507059e+37  ;;  %v8834_v35 = vld [vmem:[#allocation45_spill] sm:$0xff]  ;;  %v8836_v54 = vld [vmem:[#allocation46_spill] sm:$0xff] }
0x15ce   :  { %v6703_v13 = vpop.eup %6702 }
0x15cf   :  { %v3176_v6 = vmul.f32 %v6703_v13, %v3174_v53  ;;  %vm3181_vm9 = vweird.f32 %v6703_v13 }
0x15d0   :  { %vm3182_vm12 = vmor %vm3180_vm11, %vm3181_vm9 }
0x15d1   :  { %v3177_v24 = vsub.f32 1.0, %v3176_v6 }
0x15d3   :  { %v3178_v5 = vmul.f32 %v6703_v13, %v3177_v24  ;;  %v8833_v24 = vld [vmem:[#allocation23_spill] sm:$0xff] }
0x15d5   :  { %v3179_v38 = vadd.f32 %v6703_v13, %v3178_v5  ;;  %v8835_v5 = vld [vmem:[#allocation34_spill] sm:$0xff] }
0x15d7   :  { %v3183_v61 = vsel %vm3182_vm12, %v6703_v13, %v3179_v38  ;;  %v8837_v38 = vld [vmem:[#allocation30_spill] sm:$0xff]  ;;  %vm6544_vm12 = vcmask 326656  }
0x15d8   :  { %v3188_v27 = vsel %vm3185_vm13, %v3187_v43, %v3183_v61  ;;  %v8838_v43 = vld [vmem:[#allocation35_spill] sm:$0xff]  ;;  %v8839_v61 = vld [vmem:[#allocation50_spill] sm:$0xff] }
0x15d9   :  { %v3195_v12 = vmul.f32 %v3193_v8, %v3188_v27  ;;  %v3202_v58 = vsub.f32 1.0, %v3188_v27  ;;  %v3208_v63 = vmul.f32 %v3188_v27, %v7808_v18  ;;  %v8840_v8 = vld [vmem:[#allocation31_spill] sm:$0xff]  ;;  %v8841_v27 = vld [vmem:[#allocation36_spill] sm:$0xff] }
0x15db   :  { %3197 = vrot.lane.b32.xlu0 %v3195_v12, %s7052_s13  ;;  %v8842_v12 = vld [vmem:[#allocation37_spill] sm:$0xff] }
0x164d   :  { %v3198_v21 = vpop.permute.xlu0 %3197 }
0x164e   :  { %v3200_v10 = vadd.f32 %v3198_v21, %v3165_v25  ;;  %v8843_v21 = vld [vmem:[#allocation32_spill] sm:$0xff] }
0x1650   :  { %6704 = vtanh.f32 %v3200_v10  ;;  %v8844_v10 = vld [vmem:[#allocation48_spill] sm:$0xff] }
0x1656   :  { %v6705_v28 = vpop.eup %6704 }
0x1657   :  { %3204 = vrot.lane.b32.xlu2 %v6705_v28, %s7049_s4  ;;  %v8845_v28 = vld [vmem:[#allocation33_spill] sm:$0xff] }
0x16b1   :  { %v3205_v30 = vpop.permute.xlu2 %3204 }
0x16b2   :  { %v3207_v57 = vmul.f32 %v3205_v30, %v3202_v58  ;;  %v8846_v58 = vld [vmem:[#allocation47_spill] sm:$0xff]  ;;  %v8847_v30 = vld [vmem:[#allocation38_spill] sm:$0xff] }
0x16b4   :  { %v7967_v15 = vadd.f32 %v3208_v63, %v3207_v57  ;;  %v8848_v63 = vld [vmem:[#allocation53_spill] sm:$0xff]  ;;  %v8849_v57 = vld [vmem:[#allocation39_spill] sm:$0xff] }
0x16b6   :  { %3211 = vrot.lane.b32.xlu1 %v7967_v15, %s7049_s4 }
0x1728   :  { %v3212_v55 = vpop.permute.xlu1 %3211 }
0x1729   :  { %v3213_v31 = vsel %vm126_vm0, %v3212_v55, 0  ;;  %v8850_v55 = vld [vmem:[#allocation54_spill] sm:$0xff] }
0x172a   :  { %v3235_v53 = vand.u32 4294901760, %v3213_v31 }
0x172c   :  { %v3236_v13 = vsub.f32 %v3213_v31, %v3235_v53  ;;  %3281 = vmatmul.f32.vlgmr.msra.gmra.mxu3 %v3235_v53  ;;  %v8851_v31 = vld [vmem:[#allocation40_spill] sm:$0xff] }
0x172d   :  { %3545 = vmatpush.msra.mxu3 %v7135_v11 }
0x172e   :  { %3311 = vmatmul.f32.vlgmr.msra.gmra.mxu0 %v3236_v13  ;;  %v3237_v25 = vand.u32 4294901760, %v3236_v13 }
0x172f   :  { %3547 = vmatpush.msra.mxu3 %v7156_v20  ;;  %3574 = vmatpush.msra.mxu0 %v7166_v26 }
0x1730   :  { %3338 = vmatmul.f32.vlgmr.msra.gmra.mxu1 %v3237_v25  ;;  %v3238_v18 = vsub.f32 %v3236_v13, %v3237_v25 }
0x1731   :  { %3549 = vmatpush.msra.mxu3 %v7196_v49  ;;  %3578 = vmatpush.msra.mxu0 %v7183_v36 }
0x1732   :  { %v3239_v6 = vand.u32 4294901760, %v3238_v18  ;;  %3605 = vmatpush.msra.mxu1 %v7135_v11  ;;  %v8855_v18 = vld [vmem:[#allocation44_spill] sm:$0xff] }
0x1733   :  { %3551 = vmatpush.msra.mxu3 %v7198_v50  ;;  %3582 = vmatpush.msra.mxu0 %v7216_v59 }
0x1734   :  { %3240 = vmatmul.f32.vlgmr.msra.gmra.mxu2 %v3239_v6  ;;  %3396 = vmatmul.f32.vlgmr.msrb.gmra.mxu3 %v3235_v53 }
0x1735   :  { %3607 = vmatpush.msra.mxu1 %v7156_v20  ;;  %3516 = vmatpush.msra.mxu2 %v7154_v19 }
0x1736   :  { %3457 = vmatmul.f32.vlgmr.msrb.gmra.mxu0 %v3239_v6  ;;  %3763 = vmatpush.msrb.mxu3 %v7358_v40  ;;  %v8856_v6 = vld [vmem:[#allocation49_spill] sm:$0xff] }
0x1737   :  { %3586 = vmatpush.msra.mxu0 %v7219_v60  ;;  %3609 = vmatpush.msra.mxu1 %v7196_v49 }
0x1738   :  { %3498 = vmatmul.f32.vlgmr.msrb.gmra.mxu1 %v3235_v53  ;;  %3519 = vmatpush.msra.mxu2 %v7172_v29 }
0x1739   :  { %3611 = vmatpush.msra.mxu1 %v7198_v50  ;;  %3769 = vmatpush.msrb.mxu3 %v7360_v41 }
0x173a   :  { %3522 = vmatpush.msra.mxu2 %v7207_v56  ;;  %3811 = vmatpush.msrb.mxu0 %v7307_v16 }
0x173b   :  { %3775 = vmatpush.msrb.mxu3 %v7370_v46  ;;  %3844 = vmatpush.msrb.mxu1 %v7296_v4 }
0x173c   :  { %3371 = vmatmul.f32.vlgmr.msrb.gmra.mxu2 %v3235_v53  ;;  %3555 = vmatmul.f32.vlgmr.msra.gmra.mxu3 %v3237_v25  ;;  %v8854_v25 = vld [vmem:[#allocation58_spill] sm:$0xff] }
0x173d   :  { %3525 = vmatpush.msra.mxu2 %v8833_v24  ;;  %3781 = vmatpush.msrb.mxu3 %v8834_v35 }
0x173e   :  { %3588 = vmatmul.f32.vlgmr.msra.gmra.mxu0 %v3235_v53  ;;  %3846 = vmatpush.msrb.mxu1 %v8837_v38 }
0x173f   :  { %3728 = vmatpush.msrb.mxu2 %v7296_v4  ;;  %3814 = vmatpush.msrb.mxu0 %v8835_v5 }
0x1740   :  { %3787 = vmatpush.msrb.mxu3 %v8836_v54  ;;  %3613 = vmatmul.f32.vlgmr.msra.gmra.mxu1 %v3235_v53  ;;  %v8852_v53 = vld [vmem:[#allocation57_spill] sm:$0xff] }
0x1741   :  { %3730 = vmatpush.msrb.mxu2 %v8837_v38  ;;  %3817 = vmatpush.msrb.mxu0 %v8838_v43 }
0x1742   :  { %3793 = vmatpush.msrb.mxu3 %v8839_v61  ;;  %3848 = vmatpush.msrb.mxu1 %v8840_v8 }
0x1743   :  { %3732 = vmatpush.msrb.mxu2 %v8840_v8  ;;  %3820 = vmatpush.msrb.mxu0 %v8841_v27 }
0x1744   :  { %3528 = vmatmul.f32.vlgmr.msra.gmra.mxu2 %v3236_v13  ;;  %3912 = vmatpush.msra.mxu3 %v7296_v4  ;;  %v8853_v13 = vld [vmem:[#allocation41_spill] sm:$0xff] }
0x1745   :  { %3823 = vmatpush.msrb.mxu0 %v8842_v12  ;;  %3850 = vmatpush.msrb.mxu1 %v8843_v21 }
0x1746   :  { %3914 = vmatpush.msra.mxu3 %v8837_v38  ;;  %3734 = vmatpush.msrb.mxu2 %v8843_v21 }
0x1747   :  { %3826 = vmatpush.msrb.mxu0 %v8844_v10  ;;  %3852 = vmatpush.msrb.mxu1 %v8845_v28 }
0x1748   :  { %3916 = vmatpush.msra.mxu3 %v8840_v8  ;;  %3736 = vmatpush.msrb.mxu2 %v8845_v28 }
0x1749   :  { %3854 = vmatpush.msrb.mxu1 %v8846_v58  ;;  %3989 = vmatpush.msra.mxu0 %v7435_v9 }
0x174a   :  { %3918 = vmatpush.msra.mxu3 %v8843_v21  ;;  %3738 = vmatpush.msrb.mxu2 %v8846_v58 }
0x174b   :  { %4022 = vmatpush.msra.mxu1 %v8848_v63  ;;  %3991 = vmatpush.msra.mxu0 %v7437_v17 }
0x174c   :  { %3875 = vmatpush.msra.mxu2 %v8847_v30  ;;  %3920 = vmatpush.msra.mxu3 %v8845_v28 }
0x174d   :  { %4028 = vmatpush.msra.mxu1 %v8850_v55  ;;  %3993 = vmatpush.msra.mxu0 %v7471_v0 }
0x174e   :  { %3879 = vmatpush.msra.mxu2 %v8849_v57  ;;  %3922 = vmatpush.msra.mxu3 %v8846_v58 }
0x174f   :  { %4034 = vmatpush.msra.mxu1 %v8852_v53  ;;  %3995 = vmatpush.msra.mxu0 %v7476_v2 }
0x1750   :  { %3883 = vmatpush.msra.mxu2 %v8851_v31 }
0x1751   :  { %4040 = vmatpush.msra.mxu1 %v8854_v25 }
0x1752   :  { %3887 = vmatpush.msra.mxu2 %v8853_v13 }
0x1754   :  { %3891 = vmatpush.msra.mxu2 %v8855_v18 }
0x1756   :  { %3895 = vmatpush.msra.mxu2 %v8856_v6 }
0x17ab   :  { %v3312_v55 = vpop.f32.mrf.mxu0 }
0x17ad   :  { %v3339_v30 = vpop.f32.mrf.mxu1 }
0x17af   :  { %v3282_v51 = vpop.f32.mrf.mxu3 }
0x17b3   :  { %v3458_v12 = vpop.f32.mrf.mxu0 }
0x17b5   :  { %v3499_v25 = vpop.f32.mrf.mxu1 }
0x17b6   :  { %v3500_v27 = vadd.f32 %v3499_v25, %v3458_v12 }
0x17b7   :  { %v3241_v57 = vpop.f32.mrf.mxu2  ;;  %v3397_v53 = vpop.f32.mrf.mxu3 }
0x17b8   :  { %v3242_v63 = vadd.f32 %v3241_v57, %v7595_v22 }
0x17ba   :  { %v3283_v58 = vadd.f32 %v3282_v51, %v3242_v63 }
0x17bb   :  { %v3589_v43 = vpop.f32.mrf.mxu0 }
0x17bc   :  { %v3313_v31 = vadd.f32 %v3312_v55, %v3283_v58 }
0x17bd   :  { %v3614_v54 = vpop.f32.mrf.mxu1 }
0x17be   :  { %v3340_v28 = vadd.f32 %v3339_v30, %v3313_v31 }
0x17bf   :  { %v3372_v10 = vpop.f32.mrf.mxu2  ;;  %v3556_v6 = vpop.f32.mrf.mxu3 }
0x17c0   :  { %v3373_v21 = vadd.f32 %v3372_v10, %v3340_v28 }
0x17c2   :  { %v8033_v13 = vadd.f32 %v3397_v53, %v3373_v21  ;;  %v8858_v21 = vld [vmem:[#allocation27_spill] sm:$0xff] }
0x17c4   :  { %8857 = vst [vmem:[#allocation59_spill] sm:$0xff] %v8033_v13 }
0x17c7   :  { %v3529_v18 = vpop.f32.mrf.mxu2 }
0x17c8   :  { %v3530_v8 = vadd.f32 %v3529_v18, %v3500_v27  ;;  %v8859_v27 = vld [vmem:[#allocation28_spill] sm:$0xff] }
0x17ca   :  { %v3557_v61 = vadd.f32 %v3556_v6, %v3530_v8 }
0x17cc   :  { %v3590_v38 = vadd.f32 %v3589_v43, %v3557_v61 }
0x17ce   :  { %v8035_v57 = vadd.f32 %v3614_v54, %v3590_v38 }
0x17d0   :  { %v3619_v51 = vperm.slane %v8035_v57, 0  ;;  %v3618_v58 = vrot.slane %v8035_v57, 1 }
0x17d2   :  { %v3623_v10 = vadd.f32 %v3619_v51, %v8794_v44  ;;  %v3620_v28 = vperm.slane %v3618_v58, 0 }
0x17d4   :  { %6706 = vtanh.f32 %v3623_v10  ;;  %v3624_v30 = vadd.f32 %v3620_v28, %v8858_v21 }
0x17d6   :  { %6708 = vtanh.f32 %v3624_v30 }
0x17da   :  { %v6707_v12 = vpop.eup %6706 }
0x17db   :  { %v3627_v63 = vmul.f32 %v6707_v12, %v8859_v27 }
0x17dc   :  { %v6709_v8 = vpop.eup %6708 }
0x17dd   :  { %v3629_v43 = vsel %vm126_vm0, %v3627_v63, 0.0  ;;  %v3628_v54 = vmul.f32 %v6709_v8, %v8859_v27 }
0x17de   :  { %3630 = vadd.xlane.f32.xlu1 %v3629_v43 }
0x17df   :  { %v3632_v38 = vsel %vm126_vm0, %v3628_v54, 0.0 }
0x17e0   :  { %3633 = vadd.xlane.f32.xlu0 %v3632_v38 }
0x1851   :  { %v3631_v61 = vpop.xlane.xlu1 %3630 }
0x1852   :  { %v3637_v31 = vperm.slane %v3631_v61, %v8766_v48 }
0x1853   :  { %v3634_v55 = vpop.xlane.xlu0 %3633 }
0x1854   :  { %v3638_v53 = vperm.slane %v3634_v55, %v8766_v48 }
0x1856   :  { %v3639_v25 = vsel %vm570_vm1, %v3638_v53, %v3637_v31 }
0x1857   :  { %v3641_v18 = vsel %vm573_vm2, %v3639_v25, -inf }
0x1858   :  { %3642 = vmax.xlane.f32.xlu2 %v3641_v18 }
0x18cb   :  { %v3643_v6 = vpop.xlane.xlu2 %3642 }
0x18cc   :  { %v3645_v51 = vperm.slane %v3643_v6, 0  ;;  %v3646_v58 = vperm.slane %v3643_v6, 1 }
0x18ce   :  { %v3649_v10 = vsub.f32 %v3631_v61, %v3645_v51  ;;  %v3650_v28 = vsub.f32 %v3634_v55, %v3646_v58  ;;  %v3400_v61 = vsel %vm1116_vm10, %v8033_v13, -inf }
0x18d0   :  { %v3651_v30 = vmul.f32 1.442695, %v3649_v10  ;;  %v3653_v12 = vmul.f32 1.442695, %v3650_v28 }
0x18d2   :  { %6710 = vpow2.f32 %v3651_v30 }
0x18d3   :  { %6712 = vpow2.f32 %v3653_v12 }
0x18d8   :  { %v6711_v63 = vpop.eup %6710 }
0x18d9   :  { %v6713_v8 = vpop.eup %6712  ;;  %3658 = vperm.xlu1 %6639, %v6711_v63  }
0x18da   :  { %3661 = vperm.xlu0 %6641, %v6713_v8  }
0x194b   :  { %v3659_v43 = vpop.permute.xlu1 %3658 }
0x194c   :  { %v3662_v54 = vpop.permute.xlu0 %3661  ;;  %v3663_v38 = vperm.slane %v3659_v43, %v8766_v48 }
0x194d   :  { %v3664_v31 = vperm.slane %v3662_v54, %v8766_v48 }
0x194f   :  { %v3665_v53 = vsel %vm570_vm1, %v3664_v31, %v3663_v38 }
0x1950   :  { %v3667_v25 = vsel %vm573_vm2, %v3665_v53, 0.0 }
0x1951   :  { %3668 = vadd.xlane.f32.xlu2 %v3667_v25 }
0x1959   :  { %3401 = vmax.xlane.f32.xlu2 %v3400_v61 }
0x19c4   :  { %v3669_v55 = vpop.xlane.xlu2 %3668 }
0x19c5   :  { %6714 = vrcp.f32 %v3669_v55 }
0x19cb   :  { %v6715_v18 = vpop.eup %6714 }
0x19cc   :  { %v3671_v6 = vmul.f32 %v6715_v18, %v3669_v55  ;;  %v8055_v51 = vpop.xlane.xlu2 %3401 }
0x19cd   :  { %8860 = vst [vmem:[#allocation24_spill] sm:$0xff] %v8055_v51  ;;  %vm3403_vm14 = vcmp.eq.f32.partialorder %v8033_v13, %v8055_v51 }
0x19ce   :  { %v3672_v58 = vsub.f32 2.0, %v3671_v6  ;;  %v3404_v10 = vsel %vm3403_vm14, %v8766_v48, 16 }
0x19cf   :  { %v3405_v28 = vsel %vm1116_vm10, %v3404_v10, 2147483647 }
0x19d0   :  { %v3673_v30 = vmul.f32 %v6715_v18, %v3672_v58  ;;  %v3407_v12 = vshra.s32 %v3405_v28, 16  ;;  %v3406_v25 = vand.u32 65535, %v3405_v28  ;;  %v8862_v18 = vld [vmem:[#allocation42_spill] sm:$0xff] }
0x19d2   :  { %v3409_v43 = vcvt.s32.f32 %v3407_v12  ;;  %v3676_v54 = vperm.slane %v3673_v30, 1  ;;  %v3675_v38 = vperm.slane %v3673_v30, 0  ;;  %v3408_v10 = vcvt.s32.f32 %v3406_v25  ;;  %v8863_v30 = vld [vmem:[#allocation60_spill] sm:$0xff] }
0x19d4   :  { %3410 = vmin.xlane.f32.xlu2 %v3409_v43  ;;  %v3680_v31 = vmul.f32 %v6713_v8, %v3676_v54  ;;  %v3679_v53 = vmul.f32 %v6711_v63, %v3675_v38 }
0x19d6   :  { %3688 = vperm.xlu0 %6641, %v3680_v31   ;;  %3683 = vperm.xlu1 %6639, %v3679_v53  }
0x19ec   :  { %3928 = vrot.lane.b32.xlu2 %v8035_v57, %s7049_s4 }
0x1a47   :  { %v3411_v61 = vpop.xlane.xlu2 %3410 }
0x1a48   :  { %v8063_v55 = vpop.permute.xlu0 %3688  ;;  %v8065_v6 = vpop.permute.xlu1 %3683  ;;  %vm3412_vm15 = vcmp.eq.f32.partialorder %v3409_v43, %v3411_v61 }
0x1a49   :  { %8861 = vst [vmem:[#allocation23_spill] sm:$0xff] %v8063_v55  ;;  %v3692_v58 = vmul.f32 %v8862_v18, %v8063_v55  ;;  %v3691_v8 = vmul.f32 %v8863_v30, %v8065_v6  ;;  %v3413_v63 = vsel %vm3412_vm15, %v3408_v10, inf  ;;  %v3951_v10 = vadd.f32 %v8035_v57, %v8772_v14 }
0x1a4a   :  { %3414 = vmin.xlane.f32.xlu1 %v3413_v63 }
0x1a4b   :  { %v3700_v12 = vsel %vm126_vm0, %v3692_v58, 0.0  ;;  %v3693_v54 = vsel %vm126_vm0, %v3691_v8, 0.0  ;;  %v3417_v58 = vcvt.f32.s32 %v3411_v61 }
0x1a4c   :  { %v3701_v28 = vrot.slane %v3700_v12, 4  ;;  %v3694_v38 = vrot.slane %v3693_v54, 4 }
0x1a4e   :  { %v3702_v31 = vadd.f32 %v3701_v28, %v3700_v12  ;;  %v3695_v53 = vadd.f32 %v3694_v38, %v3693_v54  ;;  %v3418_v12 = vshll.u32 %v3417_v58, 16 }
0x1a50   :  { %v3703_v13 = vrot.slane %v3702_v31, 2  ;;  %v3696_v51 = vrot.slane %v3695_v53, 2 }
0x1a52   :  { %v3704_v25 = vadd.f32 %v3703_v13, %v3702_v31  ;;  %v3697_v43 = vadd.f32 %v3696_v51, %v3695_v53 }
0x1a54   :  { %v3698_v27 = vrot.slane %v3697_v43, 1  ;;  %v3705_v21 = vrot.slane %v3704_v25, 1 }
0x1a56   :  { %v3699_v18 = vadd.f32 %v3698_v27, %v3697_v43  ;;  %v3706_v55 = vadd.f32 %v3705_v21, %v3704_v25 }
0x1a58   :  { %v3709_v30 = vsel %vm570_vm1, %v3706_v55, %v3699_v18 }
0x1a59   :  { %3710 = vrot.lane.b32.xlu0 %v3709_v30, %s7045_s26 }
0x1a61   :  { %3953 = vrot.lane.b32.xlu0 %v3951_v10, %s7051_s5 }
0x1abd   :  { %v3415_v8 = vpop.xlane.xlu1 %3414 }
0x1abe   :  { %v3416_v63 = vcvt.f32.s32 %v3415_v8 }
0x1ac0   :  { %v3419_v54 = vadd.s32 %v3418_v12, %v3416_v63 }
0x1ac2   :  { %vm3420_vm3 = vcmp.eq.s32.totalorder %v8766_v48, %v3419_v54 }
0x1ac3   :  { %v6610_v27 = vsel %vm3420_vm3, 1.0, %v8773_v23 }
0x1acb   :  { %v3711_v13 = vpop.permute.xlu0 %3710 }
0x1acc   :  { %v3713_v21 = vsel %vm646_vm4, %v6610_v27, %v3711_v13  ;;  %v3929_v13 = vpop.permute.xlu2 %3928 }
0x1acd   :  { %v3715_v51 = vsel %vm655_vm5, %v3713_v21, 0 }
0x1ace   :  { %v3739_v55 = vand.u32 4294901760, %v3715_v51 }
0x1ad0   :  { %v3740_v28 = vsub.f32 %v3715_v51, %v3739_v55  ;;  %3795 = vmatmul.f32.vlgmr.msrb.gmra.mxu3 %v3739_v55 }
0x1ad1   :  { %4089 = vmatpush.msrb.mxu3 %v7435_v9 }
0x1ad2   :  { %3829 = vmatmul.f32.vlgmr.msrb.gmra.mxu0 %v3740_v28  ;;  %v3741_v57 = vand.u32 4294901760, %v3740_v28 }
0x1ad3   :  { %4091 = vmatpush.msrb.mxu3 %v7437_v17  ;;  %4118 = vmatpush.msrb.mxu0 %v7448_v39 }
0x1ad4   :  { %3858 = vmatmul.f32.vlgmr.msrb.gmra.mxu1 %v3741_v57  ;;  %v3742_v61 = vsub.f32 %v3740_v28, %v3741_v57 }
0x1ad5   :  { %4093 = vmatpush.msrb.mxu3 %v7471_v0  ;;  %4149 = vmatpush.msrb.mxu1 %v7435_v9 }
0x1ad6   :  { %v3743_v38 = vand.u32 4294901760, %v3742_v61  ;;  %4122 = vmatpush.msrb.mxu0 %v7451_v32 }
0x1ad7   :  { %4095 = vmatpush.msrb.mxu3 %v7476_v2  ;;  %4151 = vmatpush.msrb.mxu1 %v7437_v17 }
0x1ad8   :  { %3744 = vmatmul.f32.vlgmr.msrb.gmra.mxu2 %v3743_v38  ;;  %3924 = vmatmul.f32.vlgmr.msra.gmra.mxu3 %v3739_v55 }
0x1ad9   :  { %4060 = vmatpush.msrb.mxu2 %v7440_v33  ;;  %4153 = vmatpush.msrb.mxu1 %v7471_v0 }
0x1ada   :  { %4239 = vmatpush.msra.mxu3 %v7191_v45  ;;  %4126 = vmatpush.msrb.mxu0 %v7481_v62 }
0x1adb   :  { %4063 = vmatpush.msrb.mxu2 %v7443_v34  ;;  %4155 = vmatpush.msrb.mxu1 %v7476_v2 }
0x1adc   :  { %4245 = vmatpush.msra.mxu3 %v7202_v52  ;;  %4130 = vmatpush.msrb.mxu0 %v7493_v47 }
0x1add   :  { %4066 = vmatpush.msrb.mxu2 %v7474_v3 }
0x1ade   :  { %4251 = vmatpush.msra.mxu3 %v7230_v1 }
0x1adf   :  { %4069 = vmatpush.msrb.mxu2 %v8799_v7 }
0x1ae0   :  { %3897 = vmatmul.f32.vlgmr.msra.gmra.mxu2 %v3739_v55  ;;  %4257 = vmatpush.msra.mxu3 %v8832_v37 }
0x1ae1   :  { %4206 = vmatpush.msra.mxu2 %v7135_v11 }
0x1ae3   :  { %4208 = vmatpush.msra.mxu2 %v7156_v20 }
0x1ae5   :  { %4210 = vmatpush.msra.mxu2 %v7196_v49 }
0x1ae7   :  { %4212 = vmatpush.msra.mxu2 %v7198_v50 }
0x1b4f   :  { %v3830_v18 = vpop.f32.mrf.mxu0 }
0x1b51   :  { %v3859_v10 = vpop.f32.mrf.mxu1 }
0x1b53   :  { %v3796_v31 = vpop.f32.mrf.mxu3 }
0x1b5b   :  { %v3745_v53 = vpop.f32.mrf.mxu2  ;;  %v3925_v12 = vpop.f32.mrf.mxu3 }
0x1b5c   :  { %v3746_v25 = vadd.f32 %v3745_v53, %v8775_v42 }
0x1b5e   :  { %v3797_v43 = vadd.f32 %v3796_v31, %v3746_v25 }
0x1b60   :  { %v3831_v30 = vadd.f32 %v3830_v18, %v3797_v43 }
0x1b62   :  { %v3860_v58 = vadd.f32 %v3859_v10, %v3831_v30  ;;  %v3954_v30 = vpop.permute.xlu0 %3953 }
0x1b63   :  { %v3898_v8 = vpop.f32.mrf.mxu2 }
0x1b64   :  { %v3899_v63 = vadd.f32 %v3898_v8, %v3860_v58 }
0x1b66   :  { %v3926_v54 = vadd.f32 %v3925_v12, %v3899_v63 }
0x1b68   :  { %v3931_v27 = vadd.f32 %v3929_v13, %v3926_v54 }
0x1b6a   :  { %v6611_v21 = vmul.f32 -1.442695, %v3931_v27 }
0x1b6c   :  { %6716 = vpow2.f32 %v6611_v21 }
0x1b72   :  { %v6717_v51 = vpop.eup %6716 }
0x1b73   :  { %v3935_v55 = vadd.f32 1.0, %v6717_v51 }
0x1b75   :  { %6718 = vrcp.f32 %v3935_v55  ;;  %v3947_v38 = vand.u32 2147483648, %v3935_v55  ;;  %v3945_v53 = vand.u32 2147483647, %v3935_v55  ;;  %vm3941_vm7 = vweird.f32 %v3935_v55 }
0x1b77   :  { %v3948_v43 = vor.u32 1.1754944e-38, %v3947_v38  ;;  %vm3946_vm9 = vcmp.eq.f32.partialorder %v3945_v53, 8.507059e+37  ;;  %v8864_v53 = vld [vmem:[#allocation46_spill] sm:$0xff] }
0x1b7b   :  { %v6719_v28 = vpop.eup %6718 }
0x1b7c   :  { %v3937_v57 = vmul.f32 %v6719_v28, %v3935_v55  ;;  %vm3942_vm6 = vweird.f32 %v6719_v28 }
0x1b7d   :  { %vm3943_vm8 = vmor %vm3941_vm7, %vm3942_vm6 }
0x1b7e   :  { %v3938_v61 = vsub.f32 1.0, %v3937_v57 }
0x1b80   :  { %v3939_v31 = vmul.f32 %v6719_v28, %v3938_v61 }
0x1b82   :  { %v3940_v25 = vadd.f32 %v6719_v28, %v3939_v31 }
0x1b84   :  { %v3944_v18 = vsel %vm3943_vm8, %v6719_v28, %v3940_v25  ;;  %v8865_v25 = vld [vmem:[#allocation30_spill] sm:$0xff] }
0x1b85   :  { %v3949_v10 = vsel %vm3946_vm9, %v3948_v43, %v3944_v18  ;;  %v8866_v43 = vld [vmem:[#allocation35_spill] sm:$0xff]  ;;  %v8867_v18 = vld [vmem:[#allocation50_spill] sm:$0xff] }
0x1b86   :  { %v3956_v58 = vmul.f32 %v3954_v30, %v3949_v10  ;;  %v3963_v13 = vsub.f32 1.0, %v3949_v10  ;;  %v3969_v21 = vmul.f32 %v3949_v10, %v7967_v15  ;;  %v8868_v30 = vld [vmem:[#allocation31_spill] sm:$0xff]  ;;  %v8869_v10 = vld [vmem:[#allocation36_spill] sm:$0xff] }
0x1b88   :  { %3958 = vrot.lane.b32.xlu0 %v3956_v58, %s7052_s13  ;;  %v8870_v58 = vld [vmem:[#allocation37_spill] sm:$0xff] }
0x1bfa   :  { %v3959_v8 = vpop.permute.xlu0 %3958 }
0x1bfb   :  { %v3961_v63 = vadd.f32 %v3959_v8, %v3926_v54  ;;  %v8871_v8 = vld [vmem:[#allocation32_spill] sm:$0xff] }
0x1bfd   :  { %6720 = vtanh.f32 %v3961_v63  ;;  %v8872_v63 = vld [vmem:[#allocation48_spill] sm:$0xff] }
0x1c03   :  { %v6721_v12 = vpop.eup %6720 }
0x1c04   :  { %3965 = vrot.lane.b32.xlu0 %v6721_v12, %s7049_s4  ;;  %v8873_v12 = vld [vmem:[#allocation33_spill] sm:$0xff] }
0x1c76   :  { %v3966_v27 = vpop.permute.xlu0 %3965 }
0x1c77   :  { %v3968_v51 = vmul.f32 %v3966_v27, %v3963_v13  ;;  %v8874_v13 = vld [vmem:[#allocation47_spill] sm:$0xff]  ;;  %v8875_v27 = vld [vmem:[#allocation38_spill] sm:$0xff] }
0x1c79   :  { %v8110_v55 = vadd.f32 %v3969_v21, %v3968_v51  ;;  %v8876_v21 = vld [vmem:[#allocation53_spill] sm:$0xff]  ;;  %v8877_v51 = vld [vmem:[#allocation39_spill] sm:$0xff] }
0x1c7b   :  { %3972 = vrot.lane.b32.xlu2 %v8110_v55, %s7049_s4 }
0x1cd5   :  { %v3973_v28 = vpop.permute.xlu2 %3972 }
0x1cd6   :  { %v3974_v57 = vsel %vm126_vm0, %v3973_v28, 0  ;;  %v8878_v28 = vld [vmem:[#allocation54_spill] sm:$0xff] }
0x1cd7   :  { %v3996_v61 = vand.u32 4294901760, %v3974_v57 }
0x1cd9   :  { %v3997_v38 = vsub.f32 %v3974_v57, %v3996_v61  ;;  %4042 = vmatmul.f32.vlgmr.msra.gmra.mxu1 %v3996_v61  ;;  %v8879_v57 = vld [vmem:[#allocation40_spill] sm:$0xff] }
0x1cda   :  { %4306 = vmatpush.msra.mxu1 %v7135_v11 }
0x1cdb   :  { %v3998_v54 = vand.u32 4294901760, %v3997_v38  ;;  %4072 = vmatmul.f32.vlgmr.msrb.gmra.mxu2 %v3997_v38 }
0x1cdc   :  { %4308 = vmatpush.msra.mxu1 %v7156_v20  ;;  %4335 = vmatpush.msrb.mxu2 %v7166_v26 }
0x1cdd   :  { %v3999_v15 = vsub.f32 %v3997_v38, %v3998_v54  ;;  %4099 = vmatmul.f32.vlgmr.msrb.gmra.mxu3 %v3998_v54 }
0x1cde   :  { %4310 = vmatpush.msra.mxu1 %v7196_v49  ;;  %4339 = vmatpush.msrb.mxu2 %v7183_v36 }
0x1cdf   :  { %v4000_v31 = vand.u32 4294901760, %v3999_v15  ;;  %4366 = vmatpush.msrb.mxu3 %v7135_v11  ;;  %v8883_v15 = vld [vmem:[#allocation44_spill] sm:$0xff] }
0x1ce0   :  { %4312 = vmatpush.msra.mxu1 %v7198_v50  ;;  %4343 = vmatpush.msrb.mxu2 %v7216_v59 }
0x1ce1   :  { %4001 = vmatmul.f32.vlgmr.msra.gmra.mxu0 %v4000_v31  ;;  %4157 = vmatmul.f32.vlgmr.msrb.gmra.mxu1 %v3996_v61 }
0x1ce2   :  { %4368 = vmatpush.msrb.mxu3 %v7156_v20  ;;  %4277 = vmatpush.msra.mxu0 %v7154_v19 }
0x1ce3   :  { %4218 = vmatmul.f32.vlgmr.msra.gmra.mxu2 %v4000_v31  ;;  %4524 = vmatpush.msrb.mxu1 %v7358_v40  ;;  %v8884_v31 = vld [vmem:[#allocation49_spill] sm:$0xff] }
0x1ce4   :  { %4347 = vmatpush.msrb.mxu2 %v7219_v60  ;;  %4370 = vmatpush.msrb.mxu3 %v7196_v49 }
0x1ce5   :  { %4259 = vmatmul.f32.vlgmr.msra.gmra.mxu3 %v3996_v61  ;;  %4280 = vmatpush.msra.mxu0 %v7172_v29 }
0x1ce6   :  { %4372 = vmatpush.msrb.mxu3 %v7198_v50  ;;  %4530 = vmatpush.msrb.mxu1 %v7360_v41 }
0x1ce7   :  { %4283 = vmatpush.msra.mxu0 %v7207_v56  ;;  %4572 = vmatpush.msra.mxu2 %v7307_v16 }
0x1ce8   :  { %4536 = vmatpush.msrb.mxu1 %v7370_v46  ;;  %4605 = vmatpush.msra.mxu3 %v7296_v4 }
0x1ce9   :  { %4132 = vmatmul.f32.vlgmr.msrb.gmra.mxu0 %v3996_v61  ;;  %4316 = vmatmul.f32.vlgmr.msra.gmra.mxu1 %v3998_v54  ;;  %v8882_v54 = vld [vmem:[#allocation58_spill] sm:$0xff] }
0x1cea   :  { %4286 = vmatpush.msra.mxu0 %v8833_v24  ;;  %4542 = vmatpush.msrb.mxu1 %v8834_v35 }
0x1ceb   :  { %4349 = vmatmul.f32.vlgmr.msrb.gmra.mxu2 %v3996_v61  ;;  %4607 = vmatpush.msra.mxu3 %v8865_v25 }
0x1cec   :  { %4489 = vmatpush.msrb.mxu0 %v7296_v4  ;;  %4575 = vmatpush.msra.mxu2 %v8835_v5 }
0x1ced   :  { %4548 = vmatpush.msrb.mxu1 %v8864_v53  ;;  %4374 = vmatmul.f32.vlgmr.msrb.gmra.mxu3 %v3996_v61  ;;  %v8880_v61 = vld [vmem:[#allocation57_spill] sm:$0xff] }
0x1cee   :  { %4491 = vmatpush.msrb.mxu0 %v8865_v25  ;;  %4578 = vmatpush.msra.mxu2 %v8866_v43 }
0x1cef   :  { %4554 = vmatpush.msrb.mxu1 %v8867_v18  ;;  %4609 = vmatpush.msra.mxu3 %v8868_v30 }
0x1cf0   :  { %4493 = vmatpush.msrb.mxu0 %v8868_v30  ;;  %4581 = vmatpush.msra.mxu2 %v8869_v10 }
0x1cf1   :  { %4289 = vmatmul.f32.vlgmr.msra.gmra.mxu0 %v3997_v38  ;;  %4673 = vmatpush.msra.mxu1 %v7296_v4  ;;  %v8881_v38 = vld [vmem:[#allocation41_spill] sm:$0xff] }
0x1cf2   :  { %4584 = vmatpush.msra.mxu2 %v8870_v58  ;;  %4611 = vmatpush.msra.mxu3 %v8871_v8 }
0x1cf3   :  { %4675 = vmatpush.msra.mxu1 %v8865_v25  ;;  %4495 = vmatpush.msrb.mxu0 %v8871_v8 }
0x1cf4   :  { %4587 = vmatpush.msra.mxu2 %v8872_v63  ;;  %4613 = vmatpush.msra.mxu3 %v8873_v12 }
0x1cf5   :  { %4677 = vmatpush.msra.mxu1 %v8868_v30  ;;  %4497 = vmatpush.msrb.mxu0 %v8873_v12 }
0x1cf6   :  { %4615 = vmatpush.msra.mxu3 %v8874_v13  ;;  %4750 = vmatpush.msrb.mxu2 %v7435_v9 }
0x1cf7   :  { %4679 = vmatpush.msra.mxu1 %v8871_v8  ;;  %4499 = vmatpush.msrb.mxu0 %v8874_v13 }
0x1cf8   :  { %4783 = vmatpush.msrb.mxu3 %v8876_v21  ;;  %4752 = vmatpush.msrb.mxu2 %v7437_v17 }
0x1cf9   :  { %4636 = vmatpush.msra.mxu0 %v8875_v27  ;;  %4681 = vmatpush.msra.mxu1 %v8873_v12 }
0x1cfa   :  { %4789 = vmatpush.msrb.mxu3 %v8878_v28  ;;  %4754 = vmatpush.msrb.mxu2 %v7471_v0 }
0x1cfb   :  { %4640 = vmatpush.msra.mxu0 %v8877_v51  ;;  %4683 = vmatpush.msra.mxu1 %v8874_v13 }
0x1cfc   :  { %4795 = vmatpush.msrb.mxu3 %v8880_v61  ;;  %4756 = vmatpush.msrb.mxu2 %v7476_v2 }
0x1cfd   :  { %4644 = vmatpush.msra.mxu0 %v8879_v57 }
0x1cfe   :  { %4801 = vmatpush.msrb.mxu3 %v8882_v54 }
0x1cff   :  { %4648 = vmatpush.msra.mxu0 %v8881_v38 }
0x1d01   :  { %4652 = vmatpush.msra.mxu0 %v8883_v15 }
0x1d03   :  { %4656 = vmatpush.msra.mxu0 %v8884_v31 }
0x1d56   :  { %v4043_v51 = vpop.f32.mrf.mxu1 }
0x1d5e   :  { %v4002_v28 = vpop.f32.mrf.mxu0  ;;  %v4073_v21 = vpop.f32.mrf.mxu2 }
0x1d5f   :  { %v4158_v13 = vpop.f32.mrf.mxu1  ;;  %v4003_v31 = vadd.f32 %v4002_v28, %v7595_v22 }
0x1d60   :  { %v4100_v27 = vpop.f32.mrf.mxu3 }
0x1d61   :  { %v4044_v35 = vadd.f32 %v4043_v51, %v4003_v31 }
0x1d66   :  { %v4133_v12 = vpop.f32.mrf.mxu0  ;;  %v4219_v63 = vpop.f32.mrf.mxu2 }
0x1d67   :  { %v4317_v10 = vpop.f32.mrf.mxu1 }
0x1d68   :  { %v4260_v57 = vpop.f32.mrf.mxu3 }
0x1d69   :  { %v4261_v8 = vadd.f32 %v4260_v57, %v4219_v63  ;;  %v8885_v63 = vld [vmem:[#allocation27_spill] sm:$0xff]  ;;  %v8886_v57 = vld [vmem:[#allocation28_spill] sm:$0xff] }
0x1d6e   :  { %v4290_v61 = vpop.f32.mrf.mxu0  ;;  %v4350_v38 = vpop.f32.mrf.mxu2 }
0x1d6f   :  { %v4291_v58 = vadd.f32 %v4290_v61, %v4261_v8 }
0x1d70   :  { %v4375_v54 = vpop.f32.mrf.mxu3 }
0x1d71   :  { %v4318_v30 = vadd.f32 %v4317_v10, %v4291_v58  ;;  %v4074_v10 = vadd.f32 %v4073_v21, %v4044_v35 }
0x1d73   :  { %v4351_v18 = vadd.f32 %v4350_v38, %v4318_v30  ;;  %v4101_v30 = vadd.f32 %v4100_v27, %v4074_v10 }
0x1d75   :  { %v8175_v43 = vadd.f32 %v4375_v54, %v4351_v18  ;;  %v4134_v54 = vadd.f32 %v4133_v12, %v4101_v30 }
0x1d77   :  { %v4379_v15 = vrot.slane %v8175_v43, 1  ;;  %v4380_v25 = vperm.slane %v8175_v43, 0 }
0x1d79   :  { %v4381_v53 = vperm.slane %v4379_v15, 0  ;;  %v4384_v5 = vadd.f32 %v4380_v25, %v8794_v44  ;;  %v8186_v25 = vadd.f32 %v4158_v13, %v4134_v54 }
0x1d7b   :  { %6722 = vtanh.f32 %v4384_v5  ;;  %v4385_v8 = vadd.f32 %v4381_v53, %v8885_v63  ;;  %8887 = vst [vmem:[#allocation42_spill] sm:$0xff] %v8186_v25  ;;  %v4161_v5 = vsel %vm1116_vm10, %v8186_v25, -inf }
0x1d7d   :  { %6724 = vtanh.f32 %v4385_v8 }
0x1d81   :  { %v6723_v58 = vpop.eup %6722 }
0x1d82   :  { %v4388_v18 = vmul.f32 %v6723_v58, %v8886_v57 }
0x1d83   :  { %v6725_v61 = vpop.eup %6724 }
0x1d84   :  { %v4390_v28 = vsel %vm126_vm0, %v4388_v18, 0.0  ;;  %v4389_v38 = vmul.f32 %v6725_v61, %v8886_v57 }
0x1d85   :  { %4391 = vadd.xlane.f32.xlu0 %v4390_v28 }
0x1d86   :  { %v4393_v15 = vsel %vm126_vm0, %v4389_v38, 0.0 }
0x1d87   :  { %4394 = vadd.xlane.f32.xlu2 %v4393_v15 }
0x1d8f   :  { %4162 = vmax.xlane.f32.xlu2 %v4161_v5 }
0x1df8   :  { %v4392_v35 = vpop.xlane.xlu0 %4391 }
0x1df9   :  { %v4398_v27 = vperm.slane %v4392_v35, %v8766_v48 }
0x1dfa   :  { %v4395_v53 = vpop.xlane.xlu2 %4394 }
0x1dfb   :  { %v4399_v21 = vperm.slane %v4395_v53, %v8766_v48 }
0x1dfd   :  { %v4400_v51 = vsel %vm570_vm1, %v4399_v21, %v4398_v27 }
0x1dfe   :  { %v4402_v31 = vsel %vm573_vm2, %v4400_v51, -inf }
0x1dff   :  { %4403 = vmax.xlane.f32.xlu1 %v4402_v31 }
0x1e72   :  { %v4404_v12 = vpop.xlane.xlu1 %4403 }
0x1e73   :  { %v4406_v8 = vperm.slane %v4404_v12, 0  ;;  %v4407_v10 = vperm.slane %v4404_v12, 1 }
0x1e75   :  { %v4410_v13 = vsub.f32 %v4392_v35, %v4406_v8  ;;  %v4411_v58 = vsub.f32 %v4395_v53, %v4407_v10 }
0x1e77   :  { %v4412_v30 = vmul.f32 1.442695, %v4410_v13  ;;  %v4414_v18 = vmul.f32 1.442695, %v4411_v58 }
0x1e79   :  { %6726 = vpow2.f32 %v4412_v30  ;;  %v8198_v30 = vpop.xlane.xlu2 %4162 }
0x1e7a   :  { %6728 = vpow2.f32 %v4414_v18  ;;  %8888 = vst [vmem:[#allocation60_spill] sm:$0xff] %v8198_v30  ;;  %vm4164_vm11 = vcmp.eq.f32.partialorder %v8186_v25, %v8198_v30  ;;  %v8892_v30 = vld [vmem:[#allocation43_spill] sm:$0xff] }
0x1e7b   :  { %v4165_v18 = vsel %vm4164_vm11, %v8766_v48, 16 }
0x1e7f   :  { %v6727_v61 = vpop.eup %6726 }
0x1e80   :  { %v6729_v28 = vpop.eup %6728  ;;  %4419 = vperm.xlu1 %6639, %v6727_v61  }
0x1e81   :  { %4422 = vperm.xlu0 %6641, %v6729_v28  }
0x1ef2   :  { %v4420_v38 = vpop.permute.xlu1 %4419 }
0x1ef3   :  { %v4423_v54 = vpop.permute.xlu0 %4422  ;;  %v4424_v15 = vperm.slane %v4420_v38, %v8766_v48  ;;  %v4166_v38 = vsel %vm1116_vm10, %v4165_v18, 2147483647 }
0x1ef4   :  { %v4425_v5 = vperm.slane %v4423_v54, %v8766_v48  ;;  %v4168_v54 = vshra.s32 %v4166_v38, 16 }
0x1ef6   :  { %v4426_v27 = vsel %vm570_vm1, %v4425_v5, %v4424_v15  ;;  %v4170_v15 = vcvt.s32.f32 %v4168_v54  ;;  %v4712_v5 = vadd.f32 %v8175_v43, %v8772_v14  ;;  %v8216_v54 = vld [vmem:[#allocation2 + $0x8] sm:$0xff] }
0x1ef7   :  { %v4428_v21 = vsel %vm573_vm2, %v4426_v27, 0.0 }
0x1ef8   :  { %4429 = vadd.xlane.f32.xlu1 %v4428_v21 }
0x1f6b   :  { %v4430_v35 = vpop.xlane.xlu1 %4429 }
0x1f6c   :  { %6730 = vrcp.f32 %v4430_v35 }
0x1f72   :  { %v6731_v53 = vpop.eup %6730 }
0x1f73   :  { %v4432_v51 = vmul.f32 %v6731_v53, %v4430_v35  ;;  %v6518_v35 = vadd.s32 4294967264, %v8766_v48 }
0x1f75   :  { %v4433_v31 = vsub.f32 2.0, %v4432_v51  ;;  %v8890_v51 = vld [vmem:[#allocation23_spill] sm:$0xff] }
0x1f76   :  { %8891 = vst [vmem:[#allocation23_spill] sm:$0xff] %v8216_v54 }
0x1f77   :  { %v4434_v12 = vmul.f32 %v6731_v53, %v4433_v31  ;;  %v6520_v31 = vperm.slane %v8890_v51, %v6518_v35 }
0x1f79   :  { %v4437_v8 = vperm.slane %v4434_v12, 1  ;;  %v4436_v10 = vperm.slane %v4434_v12, 0  ;;  %v6519_v12 = vperm.slane %v8065_v6, %v6518_v35 }
0x1f7b   :  { %v4441_v13 = vmul.f32 %v6729_v28, %v4437_v8  ;;  %v4440_v58 = vmul.f32 %v6727_v61, %v4436_v10  ;;  %v8207_v28 = vld [vmem:[#allocation2] sm:$0xff]  ;;  %v6523_v8 = vadd.s32 4294967256, %v8766_v48 }
0x1f7c   :  { %8889 = vst [vmem:[#allocation61_spill] sm:$0xff] %v8207_v28 }
0x1f7d   :  { %4449 = vperm.xlu0 %6641, %v4441_v13   ;;  %4444 = vperm.xlu2 %6640, %v4440_v58   ;;  %v6521_v13 = vsel %vm570_vm1, %v6520_v31, %v6519_v12 }
0x1f7e   :  { %v6543_v14 = vsel %vm126_vm0, %v8892_v30, %v6521_v13  ;;  %v4167_v30 = vand.u32 65535, %v4166_v38 }
0x1fa7   :  { %4171 = vmin.xlane.f32.xlu0 %v4170_v15 }
0x1fbb   :  { %4714 = vrot.lane.b32.xlu0 %v4712_v5, %s7051_s5 }
0x1fd7   :  { %v4445_v61 = vpop.permute.xlu2 %4444 }
0x1fd8   :  { %v4452_v27 = vmul.f32 %v8207_v28, %v4445_v61  ;;  %v6524_v18 = vperm.slane %v4445_v61, %v6523_v8 }
0x1fda   :  { %v4454_v21 = vsel %vm126_vm0, %v4452_v27, 0.0 }
0x1fdb   :  { %v4455_v53 = vrot.slane %v4454_v21, 4 }
0x1fdd   :  { %v4456_v10 = vadd.f32 %v4455_v53, %v4454_v21 }
0x1fdf   :  { %v4457_v25 = vrot.slane %v4456_v10, 2 }
0x1fe1   :  { %v4458_v53 = vadd.f32 %v4457_v25, %v4456_v10 }
0x1fe3   :  { %v4459_v28 = vrot.slane %v4458_v53, 1 }
0x1fe5   :  { %v4460_v63 = vadd.f32 %v4459_v28, %v4458_v53 }
0x1fef   :  { %v4450_v58 = vpop.permute.xlu0 %4449 }
0x1ff0   :  { %v4453_v5 = vmul.f32 %v8216_v54, %v4450_v58  ;;  %v6525_v27 = vperm.slane %v4450_v58, %v6523_v8  ;;  %v4169_v58 = vcvt.s32.f32 %v4167_v30 }
0x1ff2   :  { %v4461_v51 = vsel %vm126_vm0, %v4453_v5, 0.0  ;;  %v6526_v6 = vsel %vm570_vm1, %v6525_v27, %v6524_v18 }
0x1ff3   :  { %v4462_v35 = vrot.slane %v4461_v51, 4  ;;  %v8223_v21 = vsel %vm6544_vm12, %v6543_v14, %v6526_v6 }
0x1ff4   :  { %8893 = vst [vmem:[#allocation43_spill] sm:$0xff] %v8223_v21 }
0x1ff5   :  { %v4463_v31 = vadd.f32 %v4462_v35, %v4461_v51 }
0x1ff7   :  { %v4464_v61 = vrot.slane %v4463_v31, 2 }
0x1ff9   :  { %v4465_v12 = vadd.f32 %v4464_v61, %v4463_v31 }
0x1ffb   :  { %v4466_v57 = vrot.slane %v4465_v12, 1 }
0x1ffd   :  { %v4467_v54 = vadd.f32 %v4466_v57, %v4465_v12 }
0x1fff   :  { %v4470_v8 = vsel %vm570_vm1, %v4467_v54, %v4460_v63 }
0x2000   :  { %4471 = vrot.lane.b32.xlu1 %v4470_v8, %s7045_s26 }
0x2008   :  { %4689 = vrot.lane.b32.xlu1 %v8175_v43, %s7049_s4 }
0x201a   :  { %v4172_v13 = vpop.xlane.xlu0 %4171 }
0x201b   :  { %vm4173_vm13 = vcmp.eq.f32.partialorder %v4170_v15, %v4172_v13  ;;  %v4178_v25 = vcvt.f32.s32 %v4172_v13 }
0x201c   :  { %v4174_v14 = vsel %vm4173_vm13, %v4169_v58, inf }
0x201d   :  { %4175 = vmin.xlane.f32.xlu2 %v4174_v14  ;;  %v4179_v18 = vshll.u32 %v4178_v25, 16 }
0x2072   :  { %v4472_v57 = vpop.permute.xlu1 %4471 }
0x2090   :  { %v4176_v10 = vpop.xlane.xlu2 %4175 }
0x2091   :  { %v4177_v5 = vcvt.f32.s32 %v4176_v10 }
0x2093   :  { %v4180_v27 = vadd.s32 %v4179_v18, %v4177_v5  ;;  %v4690_v18 = vpop.permute.xlu1 %4689 }
0x2095   :  { %vm4181_vm14 = vcmp.eq.s32.totalorder %v8766_v48, %v4180_v27 }
0x2096   :  { %v6612_v63 = vsel %vm4181_vm14, 1.0, %v8773_v23 }
0x2097   :  { %v4474_v28 = vsel %vm646_vm4, %v6612_v63, %v4472_v57 }
0x2098   :  { %v4476_v43 = vsel %vm655_vm5, %v4474_v28, 0 }
0x2099   :  { %v4500_v38 = vand.u32 4294901760, %v4476_v43 }
0x209b   :  { %v4501_v54 = vsub.f32 %v4476_v43, %v4500_v38  ;;  %4556 = vmatmul.f32.vlgmr.msrb.gmra.mxu1 %v4500_v38 }
0x209c   :  { %4850 = vmatpush.msrb.mxu1 %v7435_v9 }
0x209d   :  { %4590 = vmatmul.f32.vlgmr.msra.gmra.mxu2 %v4501_v54  ;;  %v4502_v15 = vand.u32 4294901760, %v4501_v54 }
0x209e   :  { %4852 = vmatpush.msrb.mxu1 %v7437_v17  ;;  %4879 = vmatpush.msra.mxu2 %v7448_v39 }
0x209f   :  { %4619 = vmatmul.f32.vlgmr.msra.gmra.mxu3 %v4502_v15  ;;  %v4503_v51 = vsub.f32 %v4501_v54, %v4502_v15 }
0x20a0   :  { %4854 = vmatpush.msrb.mxu1 %v7471_v0  ;;  %4910 = vmatpush.msra.mxu3 %v7435_v9 }
0x20a1   :  { %v4504_v6 = vand.u32 4294901760, %v4503_v51  ;;  %4883 = vmatpush.msra.mxu2 %v7451_v32 }
0x20a2   :  { %4856 = vmatpush.msrb.mxu1 %v7476_v2  ;;  %4912 = vmatpush.msra.mxu3 %v7437_v17 }
0x20a3   :  { %4505 = vmatmul.f32.vlgmr.msrb.gmra.mxu0 %v4504_v6  ;;  %4685 = vmatmul.f32.vlgmr.msra.gmra.mxu1 %v4500_v38 }
0x20a4   :  { %4821 = vmatpush.msrb.mxu0 %v7440_v33  ;;  %4914 = vmatpush.msra.mxu3 %v7471_v0 }
0x20a5   :  { %5000 = vmatpush.msra.mxu1 %v7191_v45  ;;  %4887 = vmatpush.msra.mxu2 %v7481_v62 }
0x20a6   :  { %4824 = vmatpush.msrb.mxu0 %v7443_v34  ;;  %4916 = vmatpush.msra.mxu3 %v7476_v2 }
0x20a7   :  { %5006 = vmatpush.msra.mxu1 %v7202_v52  ;;  %4891 = vmatpush.msra.mxu2 %v7493_v47 }
0x20a8   :  { %4827 = vmatpush.msrb.mxu0 %v7474_v3 }
0x20a9   :  { %5012 = vmatpush.msra.mxu1 %v7230_v1 }
0x20aa   :  { %4830 = vmatpush.msrb.mxu0 %v8799_v7 }
0x20ab   :  { %4658 = vmatmul.f32.vlgmr.msra.gmra.mxu0 %v4500_v38  ;;  %5018 = vmatpush.msra.mxu1 %v8832_v37 }
0x20ac   :  { %4967 = vmatpush.msra.mxu0 %v7135_v11 }
0x20ae   :  { %4969 = vmatpush.msra.mxu0 %v7156_v20 }
0x20b0   :  { %4971 = vmatpush.msra.mxu0 %v7196_v49 }
0x20b2   :  { %4973 = vmatpush.msra.mxu0 %v7198_v50 }
0x2118   :  { %v4557_v35 = vpop.f32.mrf.mxu1 }
0x2120   :  { %v4506_v53 = vpop.f32.mrf.mxu0  ;;  %v4591_v12 = vpop.f32.mrf.mxu2 }
0x2121   :  { %v4507_v31 = vadd.f32 %v4506_v53, %v8775_v42  ;;  %v4686_v25 = vpop.f32.mrf.mxu1 }
0x2122   :  { %v4620_v30 = vpop.f32.mrf.mxu3 }
0x2123   :  { %v4558_v61 = vadd.f32 %v4557_v35, %v4507_v31  ;;  %v4715_v31 = vpop.permute.xlu0 %4714 }
0x2125   :  { %v4592_v8 = vadd.f32 %v4591_v12, %v4558_v61 }
0x2127   :  { %v4621_v13 = vadd.f32 %v4620_v30, %v4592_v8 }
0x2128   :  { %v4659_v58 = vpop.f32.mrf.mxu0 }
0x2129   :  { %v4660_v14 = vadd.f32 %v4659_v58, %v4621_v13 }
0x212b   :  { %v4687_v10 = vadd.f32 %v4686_v25, %v4660_v14 }
0x212d   :  { %v4692_v5 = vadd.f32 %v4690_v18, %v4687_v10 }
0x212f   :  { %v6613_v27 = vmul.f32 -1.442695, %v4692_v5 }
0x2131   :  { %6732 = vpow2.f32 %v6613_v27 }
0x2137   :  { %v6733_v57 = vpop.eup %6732 }
0x2138   :  { %v4696_v63 = vadd.f32 1.0, %v6733_v57 }
0x213a   :  { %6734 = vrcp.f32 %v4696_v63  ;;  %v4708_v54 = vand.u32 2147483648, %v4696_v63  ;;  %v4706_v51 = vand.u32 2147483647, %v4696_v63  ;;  %vm4702_vm3 = vweird.f32 %v4696_v63 }
0x213c   :  { %v4709_v35 = vor.u32 1.1754944e-38, %v4708_v54  ;;  %vm4707_vm7 = vcmp.eq.f32.partialorder %v4706_v51, 8.507059e+37  ;;  %v8895_v54 = vld [vmem:[#allocation34_spill] sm:$0xff] }
0x213d   :  { %v8897_v51 = vld [vmem:[#allocation30_spill] sm:$0xff] }
0x2140   :  { %v6735_v28 = vpop.eup %6734 }
0x2141   :  { %v4698_v43 = vmul.f32 %v6735_v28, %v4696_v63  ;;  %vm4703_vm15 = vweird.f32 %v6735_v28 }
0x2142   :  { %vm4704_vm6 = vmor %vm4702_vm3, %vm4703_vm15 }
0x2143   :  { %v4699_v38 = vsub.f32 1.0, %v4698_v43 }
0x2145   :  { %v4700_v15 = vmul.f32 %v6735_v28, %v4699_v38  ;;  %v8894_v38 = vld [vmem:[#allocation45_spill] sm:$0xff] }
0x2147   :  { %v4701_v6 = vadd.f32 %v6735_v28, %v4700_v15  ;;  %v8896_v15 = vld [vmem:[#allocation46_spill] sm:$0xff] }
0x2149   :  { %v4705_v53 = vsel %vm4704_vm6, %v6735_v28, %v4701_v6  ;;  %v8898_v6 = vld [vmem:[#allocation35_spill] sm:$0xff]  ;;  %vm6547_vm6 = vcmask 457728  }
0x214a   :  { %v4710_v61 = vsel %vm4707_vm7, %v4709_v35, %v4705_v53  ;;  %v8899_v35 = vld [vmem:[#allocation50_spill] sm:$0xff]  ;;  %v8900_v53 = vld [vmem:[#allocation31_spill] sm:$0xff]  ;;  %vm6549_vm7 = vcmask 517120  }
0x214b   :  { %v4717_v12 = vmul.f32 %v4715_v31, %v4710_v61  ;;  %v4724_v58 = vsub.f32 1.0, %v4710_v61  ;;  %v4730_v25 = vmul.f32 %v4710_v61, %v8110_v55  ;;  %v8901_v31 = vld [vmem:[#allocation36_spill] sm:$0xff]  ;;  %v8902_v61 = vld [vmem:[#allocation37_spill] sm:$0xff] }
0x214d   :  { %4719 = vrot.lane.b32.xlu1 %v4717_v12, %s7052_s13  ;;  %v8903_v12 = vld [vmem:[#allocation32_spill] sm:$0xff] }
0x21bf   :  { %v4720_v8 = vpop.permute.xlu1 %4719 }
0x21c0   :  { %v4722_v30 = vadd.f32 %v4720_v8, %v4687_v10  ;;  %v8904_v8 = vld [vmem:[#allocation48_spill] sm:$0xff] }
0x21c2   :  { %6736 = vtanh.f32 %v4722_v30  ;;  %v8905_v30 = vld [vmem:[#allocation33_spill] sm:$0xff] }
0x21c8   :  { %v6737_v13 = vpop.eup %6736 }
0x21c9   :  { %4726 = vrot.lane.b32.xlu2 %v6737_v13, %s7049_s4  ;;  %v8906_v13 = vld [vmem:[#allocation47_spill] sm:$0xff] }
0x2223   :  { %v4727_v14 = vpop.permute.xlu2 %4726 }
0x2224   :  { %v4729_v18 = vmul.f32 %v4727_v14, %v4724_v58  ;;  %v8907_v58 = vld [vmem:[#allocation38_spill] sm:$0xff]  ;;  %v8908_v14 = vld [vmem:[#allocation53_spill] sm:$0xff] }
0x2226   :  { %v8261_v5 = vadd.f32 %v4730_v25, %v4729_v18  ;;  %v8909_v25 = vld [vmem:[#allocation39_spill] sm:$0xff]  ;;  %v8910_v18 = vld [vmem:[#allocation54_spill] sm:$0xff] }
0x2228   :  { %4733 = vrot.lane.b32.xlu1 %v8261_v5, %s7049_s4 }
0x229a   :  { %v4734_v27 = vpop.permute.xlu1 %4733 }
0x229b   :  { %v4735_v57 = vsel %vm126_vm0, %v4734_v27, 0  ;;  %v8911_v27 = vld [vmem:[#allocation40_spill] sm:$0xff] }
0x229c   :  { %v4757_v63 = vand.u32 4294901760, %v4735_v57 }
0x229e   :  { %v4758_v28 = vsub.f32 %v4735_v57, %v4757_v63  ;;  %4803 = vmatmul.f32.vlgmr.msrb.gmra.mxu3 %v4757_v63  ;;  %v8912_v57 = vld [vmem:[#allocation57_spill] sm:$0xff] }
0x229f   :  { %5067 = vmatpush.msrb.mxu3 %v7135_v11 }
0x22a0   :  { %v4759_v10 = vand.u32 4294901760, %v4758_v28  ;;  %4833 = vmatmul.f32.vlgmr.msrb.gmra.mxu0 %v4758_v28 }
0x22a1   :  { %5069 = vmatpush.msrb.mxu3 %v7156_v20  ;;  %5096 = vmatpush.msrb.mxu0 %v7166_v26 }
0x22a2   :  { %v4760_v55 = vsub.f32 %v4758_v28, %v4759_v10  ;;  %4860 = vmatmul.f32.vlgmr.msrb.gmra.mxu1 %v4759_v10 }
0x22a3   :  { %5071 = vmatpush.msrb.mxu3 %v7196_v49  ;;  %5100 = vmatpush.msrb.mxu0 %v7183_v36 }
0x22a4   :  { %v4761_v43 = vand.u32 4294901760, %v4760_v55  ;;  %5127 = vmatpush.msrb.mxu1 %v7135_v11  ;;  %v8916_v55 = vld [vmem:[#allocation49_spill] sm:$0xff] }
0x22a5   :  { %5073 = vmatpush.msrb.mxu3 %v7198_v50  ;;  %5104 = vmatpush.msrb.mxu0 %v7216_v59 }
0x22a6   :  { %4762 = vmatmul.f32.vlgmr.msrb.gmra.mxu2 %v4761_v43  ;;  %4918 = vmatmul.f32.vlgmr.msra.gmra.mxu3 %v4757_v63 }
0x22a7   :  { %5129 = vmatpush.msrb.mxu1 %v7156_v20  ;;  %5038 = vmatpush.msrb.mxu2 %v7154_v19 }
0x22a8   :  { %4979 = vmatmul.f32.vlgmr.msra.gmra.mxu0 %v4761_v43  ;;  %5285 = vmatpush.msra.mxu3 %v7358_v40 }
0x22a9   :  { %5108 = vmatpush.msrb.mxu0 %v7219_v60  ;;  %5131 = vmatpush.msrb.mxu1 %v7196_v49 }
0x22aa   :  { %5020 = vmatmul.f32.vlgmr.msra.gmra.mxu1 %v4757_v63  ;;  %5041 = vmatpush.msrb.mxu2 %v7172_v29 }
0x22ab   :  { %5133 = vmatpush.msrb.mxu1 %v7198_v50  ;;  %5291 = vmatpush.msra.mxu3 %v7360_v41 }
0x22ac   :  { %5044 = vmatpush.msrb.mxu2 %v7207_v56  ;;  %5333 = vmatpush.msra.mxu0 %v7307_v16 }
0x22ad   :  { %5297 = vmatpush.msra.mxu3 %v7370_v46  ;;  %5366 = vmatpush.msra.mxu1 %v7296_v4 }
0x22ae   :  { %4893 = vmatmul.f32.vlgmr.msra.gmra.mxu2 %v4757_v63  ;;  %5077 = vmatmul.f32.vlgmr.msrb.gmra.mxu3 %v4759_v10  ;;  %v8915_v10 = vld [vmem:[#allocation44_spill] sm:$0xff] }
0x22af   :  { %5047 = vmatpush.msrb.mxu2 %v8833_v24  ;;  %5303 = vmatpush.msra.mxu3 %v8894_v38 }
0x22b0   :  { %5110 = vmatmul.f32.vlgmr.msrb.gmra.mxu0 %v4757_v63  ;;  %5368 = vmatpush.msra.mxu1 %v8897_v51 }
0x22b1   :  { %5250 = vmatpush.msra.mxu2 %v7296_v4  ;;  %5336 = vmatpush.msra.mxu0 %v8895_v54 }
0x22b2   :  { %5309 = vmatpush.msra.mxu3 %v8896_v15  ;;  %5135 = vmatmul.f32.vlgmr.msrb.gmra.mxu1 %v4757_v63  ;;  %v8913_v63 = vld [vmem:[#allocation41_spill] sm:$0xff] }
0x22b3   :  { %5252 = vmatpush.msra.mxu2 %v8897_v51  ;;  %5339 = vmatpush.msra.mxu0 %v8898_v6 }
0x22b4   :  { %5315 = vmatpush.msra.mxu3 %v8899_v35  ;;  %5370 = vmatpush.msra.mxu1 %v8900_v53 }
0x22b5   :  { %5254 = vmatpush.msra.mxu2 %v8900_v53  ;;  %5342 = vmatpush.msra.mxu0 %v8901_v31 }
0x22b6   :  { %5050 = vmatmul.f32.vlgmr.msrb.gmra.mxu2 %v4758_v28  ;;  %5434 = vmatpush.msrb.mxu3 %v7296_v4  ;;  %v8914_v28 = vld [vmem:[#allocation58_spill] sm:$0xff] }
0x22b7   :  { %5345 = vmatpush.msra.mxu0 %v8902_v61  ;;  %5372 = vmatpush.msra.mxu1 %v8903_v12 }
0x22b8   :  { %5436 = vmatpush.msrb.mxu3 %v8897_v51  ;;  %5256 = vmatpush.msra.mxu2 %v8903_v12 }
0x22b9   :  { %5348 = vmatpush.msra.mxu0 %v8904_v8  ;;  %5374 = vmatpush.msra.mxu1 %v8905_v30 }
0x22ba   :  { %5438 = vmatpush.msrb.mxu3 %v8900_v53  ;;  %5258 = vmatpush.msra.mxu2 %v8905_v30 }
0x22bb   :  { %5376 = vmatpush.msra.mxu1 %v8906_v13  ;;  %5511 = vmatpush.msrb.mxu0 %v7435_v9 }
0x22bc   :  { %5440 = vmatpush.msrb.mxu3 %v8903_v12  ;;  %5260 = vmatpush.msra.mxu2 %v8906_v13 }
0x22bd   :  { %5544 = vmatpush.msrb.mxu1 %v8908_v14  ;;  %5513 = vmatpush.msrb.mxu0 %v7437_v17 }
0x22be   :  { %5397 = vmatpush.msrb.mxu2 %v8907_v58  ;;  %5442 = vmatpush.msrb.mxu3 %v8905_v30 }
0x22bf   :  { %5550 = vmatpush.msrb.mxu1 %v8910_v18  ;;  %5515 = vmatpush.msrb.mxu0 %v7471_v0 }
0x22c0   :  { %5401 = vmatpush.msrb.mxu2 %v8909_v25  ;;  %5444 = vmatpush.msrb.mxu3 %v8906_v13 }
0x22c1   :  { %5556 = vmatpush.msrb.mxu1 %v8912_v57  ;;  %5517 = vmatpush.msrb.mxu0 %v7476_v2 }
0x22c2   :  { %5405 = vmatpush.msrb.mxu2 %v8911_v27 }
0x22c3   :  { %5562 = vmatpush.msrb.mxu1 %v8914_v28 }
0x22c4   :  { %5409 = vmatpush.msrb.mxu2 %v8913_v63 }
0x22c6   :  { %5413 = vmatpush.msrb.mxu2 %v8915_v10 }
0x22c8   :  { %5417 = vmatpush.msrb.mxu2 %v8916_v55 }
0x231d   :  { %v4834_v21 = vpop.f32.mrf.mxu0 }
0x231f   :  { %v4861_v14 = vpop.f32.mrf.mxu1 }
0x2321   :  { %v4804_v43 = vpop.f32.mrf.mxu3 }
0x2325   :  { %v4980_v12 = vpop.f32.mrf.mxu0 }
0x2327   :  { %v5021_v28 = vpop.f32.mrf.mxu1 }
0x2328   :  { %v5022_v61 = vadd.f32 %v5021_v28, %v4980_v12 }
0x2329   :  { %v4763_v18 = vpop.f32.mrf.mxu2  ;;  %v4919_v57 = vpop.f32.mrf.mxu3 }
0x232a   :  { %v4764_v25 = vadd.f32 %v4763_v18, %v7595_v22 }
0x232c   :  { %v4805_v58 = vadd.f32 %v4804_v43, %v4764_v25 }
0x232d   :  { %v5111_v35 = vpop.f32.mrf.mxu0 }
0x232e   :  { %v4835_v27 = vadd.f32 %v4834_v21, %v4805_v58 }
0x232f   :  { %v5136_v51 = vpop.f32.mrf.mxu1 }
0x2330   :  { %v4862_v13 = vadd.f32 %v4861_v14, %v4835_v27 }
0x2331   :  { %v4894_v30 = vpop.f32.mrf.mxu2  ;;  %v5078_v55 = vpop.f32.mrf.mxu3 }
0x2332   :  { %v4895_v8 = vadd.f32 %v4894_v30, %v4862_v13 }
0x2334   :  { %v8327_v63 = vadd.f32 %v4919_v57, %v4895_v8  ;;  %v8918_v8 = vld [vmem:[#allocation27_spill] sm:$0xff] }
0x2336   :  { %8917 = vst [vmem:[#allocation45_spill] sm:$0xff] %v8327_v63 }
0x2339   :  { %v5051_v10 = vpop.f32.mrf.mxu2 }
0x233a   :  { %v5052_v31 = vadd.f32 %v5051_v10, %v5022_v61  ;;  %v8919_v61 = vld [vmem:[#allocation28_spill] sm:$0xff] }
0x233c   :  { %v5079_v53 = vadd.f32 %v5078_v55, %v5052_v31 }
0x233e   :  { %v5112_v6 = vadd.f32 %v5111_v35, %v5079_v53 }
0x2340   :  { %v8329_v18 = vadd.f32 %v5136_v51, %v5112_v6 }
0x2342   :  { %v5141_v21 = vperm.slane %v8329_v18, 0  ;;  %v5140_v58 = vrot.slane %v8329_v18, 1 }
0x2344   :  { %v5145_v30 = vadd.f32 %v5141_v21, %v8794_v44  ;;  %v5142_v13 = vperm.slane %v5140_v58, 0 }
0x2346   :  { %6738 = vtanh.f32 %v5145_v30  ;;  %v5146_v14 = vadd.f32 %v5142_v13, %v8918_v8 }
0x2348   :  { %6740 = vtanh.f32 %v5146_v14 }
0x234c   :  { %v6739_v12 = vpop.eup %6738 }
0x234d   :  { %v5149_v25 = vmul.f32 %v6739_v12, %v8919_v61 }
0x234e   :  { %v6741_v31 = vpop.eup %6740 }
0x234f   :  { %v5151_v35 = vsel %vm126_vm0, %v5149_v25, 0.0  ;;  %v5150_v51 = vmul.f32 %v6741_v31, %v8919_v61 }
0x2350   :  { %5152 = vadd.xlane.f32.xlu0 %v5151_v35 }
0x2351   :  { %v5154_v6 = vsel %vm126_vm0, %v5150_v51, 0.0 }
0x2352   :  { %5155 = vadd.xlane.f32.xlu1 %v5154_v6 }
0x23c3   :  { %v5153_v53 = vpop.xlane.xlu0 %5152 }
0x23c4   :  { %v5159_v57 = vperm.slane %v5153_v53, %v8766_v48 }
0x23c5   :  { %v5156_v27 = vpop.xlane.xlu1 %5155 }
0x23c6   :  { %v5160_v28 = vperm.slane %v5156_v27, %v8766_v48 }
0x23c8   :  { %v5161_v10 = vsel %vm570_vm1, %v5160_v28, %v5159_v57 }
0x23c9   :  { %v5163_v55 = vsel %vm573_vm2, %v5161_v10, -inf }
0x23ca   :  { %5164 = vmax.xlane.f32.xlu2 %v5163_v55 }
0x243d   :  { %v5165_v43 = vpop.xlane.xlu2 %5164 }
0x243e   :  { %v5167_v21 = vperm.slane %v5165_v43, 0  ;;  %v5168_v58 = vperm.slane %v5165_v43, 1 }
0x2440   :  { %v5171_v30 = vsub.f32 %v5153_v53, %v5167_v21  ;;  %v5172_v13 = vsub.f32 %v5156_v27, %v5168_v58  ;;  %v4922_v53 = vsel %vm1116_vm10, %v8327_v63, -inf }
0x2442   :  { %v5173_v14 = vmul.f32 1.442695, %v5171_v30  ;;  %v5175_v12 = vmul.f32 1.442695, %v5172_v13 }
0x2444   :  { %6742 = vpow2.f32 %v5173_v14 }
0x2445   :  { %6744 = vpow2.f32 %v5175_v12 }
0x244a   :  { %v6743_v25 = vpop.eup %6742 }
0x244b   :  { %v6745_v31 = vpop.eup %6744  ;;  %5180 = vperm.xlu0 %6641, %v6743_v25  }
0x244c   :  { %5183 = vperm.xlu1 %6639, %v6745_v31  }
0x24bd   :  { %v5181_v35 = vpop.permute.xlu0 %5180 }
0x24be   :  { %v5184_v51 = vpop.permute.xlu1 %5183  ;;  %v5185_v6 = vperm.slane %v5181_v35, %v8766_v48 }
0x24bf   :  { %v5186_v57 = vperm.slane %v5184_v51, %v8766_v48 }
0x24c1   :  { %v5187_v28 = vsel %vm570_vm1, %v5186_v57, %v5185_v6 }
0x24c2   :  { %v5189_v10 = vsel %vm573_vm2, %v5187_v28, 0.0 }
0x24c3   :  { %5190 = vadd.xlane.f32.xlu2 %v5189_v10 }
0x24cb   :  { %4923 = vmax.xlane.f32.xlu2 %v4922_v53  ;;  %v8922_v53 = vld [vmem:[#allocation23_spill] sm:$0xff] }
0x2536   :  { %v5191_v27 = vpop.xlane.xlu2 %5190 }
0x2537   :  { %6746 = vrcp.f32 %v5191_v27 }
0x253d   :  { %v6747_v55 = vpop.eup %6746 }
0x253e   :  { %v5193_v43 = vmul.f32 %v6747_v55, %v5191_v27  ;;  %v8349_v21 = vpop.xlane.xlu2 %4923 }
0x253f   :  { %8920 = vst [vmem:[#allocation34_spill] sm:$0xff] %v8349_v21  ;;  %vm4925_vm8 = vcmp.eq.f32.partialorder %v8327_v63, %v8349_v21 }
0x2540   :  { %v5194_v58 = vsub.f32 2.0, %v5193_v43  ;;  %v4926_v30 = vsel %vm4925_vm8, %v8766_v48, 16 }
0x2541   :  { %v4927_v13 = vsel %vm1116_vm10, %v4926_v30, 2147483647 }
0x2542   :  { %v5195_v14 = vmul.f32 %v6747_v55, %v5194_v58  ;;  %v4929_v12 = vshra.s32 %v4927_v13, 16  ;;  %v4928_v21 = vand.u32 65535, %v4927_v13 }
0x2544   :  { %v4931_v35 = vcvt.s32.f32 %v4929_v12  ;;  %v5197_v51 = vperm.slane %v5195_v14, 0  ;;  %v5198_v6 = vperm.slane %v5195_v14, 1  ;;  %v4930_v58 = vcvt.s32.f32 %v4928_v21 }
0x2546   :  { %4932 = vmin.xlane.f32.xlu1 %v4931_v35  ;;  %v5201_v57 = vmul.f32 %v6743_v25, %v5197_v51  ;;  %v5202_v28 = vmul.f32 %v6745_v31, %v5198_v6  ;;  %v8923_v25 = vld [vmem:[#allocation61_spill] sm:$0xff] }
0x2548   :  { %5205 = vperm.xlu0 %6641, %v5201_v57   ;;  %5210 = vperm.xlu2 %6640, %v5202_v28  }
0x25a2   :  { %v8355_v10 = vpop.permute.xlu2 %5210 }
0x25a3   :  { %8921 = vst [vmem:[#allocation46_spill] sm:$0xff] %v8355_v10  ;;  %v5214_v27 = vmul.f32 %v8922_v53, %v8355_v10 }
0x25a5   :  { %v5222_v43 = vsel %vm126_vm0, %v5214_v27, 0.0 }
0x25a6   :  { %v5223_v63 = vrot.slane %v5222_v43, 4 }
0x25a8   :  { %v5224_v30 = vadd.f32 %v5223_v63, %v5222_v43 }
0x25aa   :  { %v5225_v51 = vrot.slane %v5224_v30, 2 }
0x25ac   :  { %v5226_v28 = vadd.f32 %v5225_v51, %v5224_v30 }
0x25ae   :  { %v5227_v13 = vrot.slane %v5226_v28, 1 }
0x25b0   :  { %v5228_v21 = vadd.f32 %v5227_v13, %v5226_v28 }
0x25b9   :  { %v4933_v55 = vpop.xlane.xlu1 %4932 }
0x25ba   :  { %v8360_v12 = vpop.permute.xlu0 %5205  ;;  %vm4934_vm9 = vcmp.eq.f32.partialorder %v4931_v35, %v4933_v55  ;;  %v8924_v35 = vld [vmem:[#allocation51_spill] sm:$0xff]  ;;  %v4939_v30 = vcvt.f32.s32 %v4933_v55 }
0x25bb   :  { %v5213_v31 = vmul.f32 %v8923_v25, %v8360_v12  ;;  %v4935_v14 = vsel %vm4934_vm9, %v4930_v58, inf  ;;  %v5473_v58 = vadd.f32 %v8329_v18, %v8924_v35 }
0x25bc   :  { %4936 = vmin.xlane.f32.xlu0 %v4935_v14 }
0x25bd   :  { %v5215_v6 = vsel %vm126_vm0, %v5213_v31, 0.0  ;;  %v4940_v31 = vshll.u32 %v4939_v30, 16 }
0x25be   :  { %v5216_v57 = vrot.slane %v5215_v6, 4 }
0x25c0   :  { %v5217_v53 = vadd.f32 %v5216_v57, %v5215_v6 }
0x25c2   :  { %v5218_v27 = vrot.slane %v5217_v53, 2 }
0x25c4   :  { %v5219_v10 = vadd.f32 %v5218_v27, %v5217_v53 }
0x25c6   :  { %v5220_v63 = vrot.slane %v5219_v10, 1 }
0x25c8   :  { %v5221_v43 = vadd.f32 %v5220_v63, %v5219_v10 }
0x25ca   :  { %v5231_v61 = vsel %vm570_vm1, %v5228_v21, %v5221_v43 }
0x25cb   :  { %5232 = vrot.lane.b32.xlu2 %v5231_v61, %s7045_s26 }
0x25d3   :  { %5450 = vrot.lane.b32.xlu2 %v8329_v18, %s7049_s4 }
0x25db   :  { %5475 = vrot.lane.b32.xlu2 %v5473_v58, %s7051_s5 }
0x2625   :  { %v5233_v10 = vpop.permute.xlu2 %5232 }
0x262f   :  { %v4937_v25 = vpop.xlane.xlu0 %4936 }
0x2630   :  { %v4938_v14 = vcvt.f32.s32 %v4937_v25 }
0x2632   :  { %v4941_v51 = vadd.s32 %v4940_v31, %v4938_v14  ;;  %v5451_v14 = vpop.permute.xlu2 %5450 }
0x2634   :  { %vm4942_vm11 = vcmp.eq.s32.totalorder %v8766_v48, %v4941_v51 }
0x2635   :  { %v6614_v6 = vsel %vm4942_vm11, 1.0, %v8773_v23 }
0x2636   :  { %v5235_v61 = vsel %vm646_vm4, %v6614_v6, %v5233_v10 }
0x2637   :  { %v5237_v57 = vsel %vm655_vm5, %v5235_v61, 0 }
0x2638   :  { %v5261_v28 = vand.u32 4294901760, %v5237_v57 }
0x263a   :  { %v5262_v53 = vsub.f32 %v5237_v57, %v5261_v28  ;;  %5317 = vmatmul.f32.vlgmr.msra.gmra.mxu3 %v5261_v28 }
0x263b   :  { %5611 = vmatpush.msra.mxu3 %v7435_v9 }
0x263c   :  { %5351 = vmatmul.f32.vlgmr.msra.gmra.mxu0 %v5262_v53  ;;  %v5263_v18 = vand.u32 4294901760, %v5262_v53 }
0x263d   :  { %5613 = vmatpush.msra.mxu3 %v7437_v17  ;;  %5640 = vmatpush.msra.mxu0 %v7448_v39 }
0x263e   :  { %5380 = vmatmul.f32.vlgmr.msra.gmra.mxu1 %v5263_v18  ;;  %v5264_v55 = vsub.f32 %v5262_v53, %v5263_v18 }
0x263f   :  { %5615 = vmatpush.msra.mxu3 %v7471_v0  ;;  %5671 = vmatpush.msra.mxu1 %v7435_v9 }
0x2640   :  { %v5265_v27 = vand.u32 4294901760, %v5264_v55  ;;  %5644 = vmatpush.msra.mxu0 %v7451_v32 }
0x2641   :  { %5617 = vmatpush.msra.mxu3 %v7476_v2  ;;  %5673 = vmatpush.msra.mxu1 %v7437_v17 }
0x2642   :  { %5266 = vmatmul.f32.vlgmr.msra.gmra.mxu2 %v5265_v27  ;;  %5446 = vmatmul.f32.vlgmr.msrb.gmra.mxu3 %v5261_v28 }
0x2643   :  { %5582 = vmatpush.msra.mxu2 %v7440_v33  ;;  %5675 = vmatpush.msra.mxu1 %v7471_v0 }
0x2644   :  { %5761 = vmatpush.msrb.mxu3 %v7191_v45  ;;  %5648 = vmatpush.msra.mxu0 %v7481_v62 }
0x2645   :  { %5585 = vmatpush.msra.mxu2 %v7443_v34  ;;  %5677 = vmatpush.msra.mxu1 %v7476_v2 }
0x2646   :  { %5767 = vmatpush.msrb.mxu3 %v7202_v52  ;;  %5652 = vmatpush.msra.mxu0 %v7493_v47 }
0x2647   :  { %5588 = vmatpush.msra.mxu2 %v7474_v3 }
0x2648   :  { %5773 = vmatpush.msrb.mxu3 %v7230_v1 }
0x2649   :  { %5591 = vmatpush.msra.mxu2 %v8799_v7 }
0x264a   :  { %5419 = vmatmul.f32.vlgmr.msrb.gmra.mxu2 %v5261_v28  ;;  %5779 = vmatpush.msrb.mxu3 %v8832_v37 }
0x264b   :  { %5728 = vmatpush.msrb.mxu2 %v7135_v11 }
0x264d   :  { %5730 = vmatpush.msrb.mxu2 %v7156_v20 }
0x264f   :  { %5732 = vmatpush.msrb.mxu2 %v7196_v49 }
0x2651   :  { %5734 = vmatpush.msrb.mxu2 %v7198_v50 }
0x26b9   :  { %v5352_v43 = vpop.f32.mrf.mxu0 }
0x26bb   :  { %v5381_v21 = vpop.f32.mrf.mxu1 }
0x26bd   :  { %v5318_v45 = vpop.f32.mrf.mxu3 }
0x26c5   :  { %v5267_v52 = vpop.f32.mrf.mxu2  ;;  %v5447_v37 = vpop.f32.mrf.mxu3 }
0x26c6   :  { %v5268_v13 = vadd.f32 %v5267_v52, %v8775_v42 }
0x26c8   :  { %v5319_v63 = vadd.f32 %v5318_v45, %v5268_v13 }
0x26ca   :  { %v5353_v1 = vadd.f32 %v5352_v43, %v5319_v63  ;;  %v5476_v63 = vpop.permute.xlu2 %5475 }
0x26cc   :  { %v5382_v58 = vadd.f32 %v5381_v21, %v5353_v1 }
0x26cd   :  { %v5420_v30 = vpop.f32.mrf.mxu2 }
0x26ce   :  { %v5421_v25 = vadd.f32 %v5420_v30, %v5382_v58 }
0x26d0   :  { %v5448_v31 = vadd.f32 %v5447_v37, %v5421_v25 }
0x26d2   :  { %v5453_v51 = vadd.f32 %v5451_v14, %v5448_v31 }
0x26d4   :  { %v6615_v10 = vmul.f32 -1.442695, %v5453_v51 }
0x26d6   :  { %6748 = vpow2.f32 %v6615_v10 }
0x26dc   :  { %v6749_v6 = vpop.eup %6748 }
0x26dd   :  { %v5457_v61 = vadd.f32 1.0, %v6749_v6 }
0x26df   :  { %6750 = vrcp.f32 %v5457_v61  ;;  %v5469_v18 = vand.u32 2147483648, %v5457_v61  ;;  %v5467_v27 = vand.u32 2147483647, %v5457_v61  ;;  %vm5463_vm13 = vweird.f32 %v5457_v61 }
0x26e1   :  { %v5470_v52 = vor.u32 1.1754944e-38, %v5469_v18  ;;  %vm5468_vm15 = vcmp.eq.f32.partialorder %v5467_v27, 8.507059e+37 }
0x26e5   :  { %v6751_v57 = vpop.eup %6750 }
0x26e6   :  { %v5459_v28 = vmul.f32 %v6751_v57, %v5457_v61  ;;  %vm5464_vm12 = vweird.f32 %v6751_v57 }
0x26e7   :  { %vm5465_vm14 = vmor %vm5463_vm13, %vm5464_vm12  ;;  %vm6457_vm13 = vcmask 254976  }
0x26e8   :  { %v5460_v53 = vsub.f32 1.0, %v5459_v28 }
0x26ea   :  { %v5461_v55 = vmul.f32 %v6751_v57, %v5460_v53 }
0x26ec   :  { %v5462_v45 = vadd.f32 %v6751_v57, %v5461_v55 }
0x26ee   :  { %v5466_v13 = vsel %vm5465_vm14, %v6751_v57, %v5462_v45  ;;  %vm6492_vm14 = vcmask 654336  }
0x26ef   :  { %v5471_v43 = vsel %vm5468_vm15, %v5470_v52, %v5466_v13  ;;  %vm6494_vm15 = vcmask 785408  }
0x26f0   :  { %v5478_v1 = vmul.f32 %v5476_v63, %v5471_v43  ;;  %v5485_v25 = vsub.f32 1.0, %v5471_v43  ;;  %v5491_v14 = vmul.f32 %v5471_v43, %v8261_v5 }
0x26f2   :  { %5480 = vrot.lane.b32.xlu1 %v5478_v1, %s7052_s13 }
0x2764   :  { %v5481_v21 = vpop.permute.xlu1 %5480 }
0x2765   :  { %v5483_v58 = vadd.f32 %v5481_v21, %v5448_v31 }
0x2767   :  { %6752 = vtanh.f32 %v5483_v58 }
0x276d   :  { %v6753_v30 = vpop.eup %6752 }
0x276e   :  { %5487 = vrot.lane.b32.xlu0 %v6753_v30, %s7049_s4 }
0x27e0   :  { %v5488_v37 = vpop.permute.xlu0 %5487 }
0x27e1   :  { %v5490_v51 = vmul.f32 %v5488_v37, %v5485_v25 }
0x27e3   :  { %v8404_v10 = vadd.f32 %v5491_v14, %v5490_v51 }
0x27e5   :  { %5494 = vrot.lane.b32.xlu2 %v8404_v10, %s7049_s4 }
0x283f   :  { %v5495_v6 = vpop.permute.xlu2 %5494 }
0x2840   :  { %v5496_v61 = vsel %vm126_vm0, %v5495_v6, 0 }
0x2841   :  { %v5518_v57 = vand.u32 4294901760, %v5496_v61 }
0x2843   :  { %v5519_v28 = vsub.f32 %v5496_v61, %v5518_v57  ;;  %5564 = vmatmul.f32.vlgmr.msrb.gmra.mxu1 %v5518_v57 }
0x2844   :  { %5828 = vmatpush.msrb.mxu1 %v7135_v11 }
0x2845   :  { %v5520_v31 = vand.u32 4294901760, %v5519_v28  ;;  %5594 = vmatmul.f32.vlgmr.msra.gmra.mxu2 %v5519_v28 }
0x2846   :  { %5830 = vmatpush.msrb.mxu1 %v7156_v20  ;;  %5857 = vmatpush.msra.mxu2 %v7166_v26  ;;  %v8928_v26 = vld [vmem:[#allocation31_spill] sm:$0xff] }
0x2847   :  { %v5521_v5 = vsub.f32 %v5519_v28, %v5520_v31  ;;  %5621 = vmatmul.f32.vlgmr.msra.gmra.mxu3 %v5520_v31 }
0x2848   :  { %5832 = vmatpush.msrb.mxu1 %v7196_v49  ;;  %5861 = vmatpush.msra.mxu2 %v7183_v36  ;;  %v8930_v36 = vld [vmem:[#allocation37_spill] sm:$0xff] }
0x2849   :  { %v5522_v53 = vand.u32 4294901760, %v5521_v5  ;;  %5888 = vmatpush.msra.mxu3 %v7135_v11  ;;  %v8925_v11 = vld [vmem:[#allocation30_spill] sm:$0xff] }
0x284a   :  { %5834 = vmatpush.msrb.mxu1 %v7198_v50  ;;  %5865 = vmatpush.msra.mxu2 %v7216_v59  ;;  %v8934_v59 = vld [vmem:[#allocation47_spill] sm:$0xff] }
0x284b   :  { %5523 = vmatmul.f32.vlgmr.msrb.gmra.mxu0 %v5522_v53  ;;  %5679 = vmatmul.f32.vlgmr.msra.gmra.mxu1 %v5518_v57 }
0x284c   :  { %5890 = vmatpush.msra.mxu3 %v7156_v20  ;;  %5799 = vmatpush.msrb.mxu0 %v7154_v19  ;;  %v8926_v19 = vld [vmem:[#allocation35_spill] sm:$0xff]  ;;  %v8927_v20 = vld [vmem:[#allocation50_spill] sm:$0xff] }
0x284d   :  { %5740 = vmatmul.f32.vlgmr.msrb.gmra.mxu2 %v5522_v53  ;;  %6046 = vmatpush.msra.mxu1 %v7358_v40  ;;  %v8938_v40 = vld [vmem:[#allocation54_spill] sm:$0xff] }
0x284e   :  { %5869 = vmatpush.msra.mxu2 %v7219_v60  ;;  %5892 = vmatpush.msra.mxu3 %v7196_v49  ;;  %v8931_v49 = vld [vmem:[#allocation32_spill] sm:$0xff]  ;;  %v8935_v60 = vld [vmem:[#allocation38_spill] sm:$0xff] }
0x284f   :  { %5781 = vmatmul.f32.vlgmr.msrb.gmra.mxu3 %v5518_v57  ;;  %5802 = vmatpush.msrb.mxu0 %v7172_v29  ;;  %v8929_v29 = vld [vmem:[#allocation36_spill] sm:$0xff] }
0x2850   :  { %5894 = vmatpush.msra.mxu3 %v7198_v50  ;;  %6052 = vmatpush.msra.mxu1 %v7360_v41  ;;  %v8932_v50 = vld [vmem:[#allocation48_spill] sm:$0xff] }
0x2851   :  { %5805 = vmatpush.msrb.mxu0 %v7207_v56  ;;  %6094 = vmatpush.msrb.mxu2 %v7307_v16  ;;  %v8933_v56 = vld [vmem:[#allocation33_spill] sm:$0xff]  ;;  %v8937_v16 = vld [vmem:[#allocation39_spill] sm:$0xff]  ;;  %v8939_v41 = vld [vmem:[#allocation40_spill] sm:$0xff] }
0x2852   :  { %6058 = vmatpush.msra.mxu1 %v7370_v46  ;;  %6127 = vmatpush.msrb.mxu3 %v7296_v4  ;;  %v8940_v46 = vld [vmem:[#allocation57_spill] sm:$0xff] }
0x2853   :  { %5654 = vmatmul.f32.vlgmr.msra.gmra.mxu0 %v5518_v57  ;;  %5838 = vmatmul.f32.vlgmr.msrb.gmra.mxu1 %v5520_v31 }
0x2854   :  { %5808 = vmatpush.msrb.mxu0 %v8833_v24  ;;  %6064 = vmatpush.msra.mxu1 %v8894_v38  ;;  %v8941_v24 = vld [vmem:[#allocation41_spill] sm:$0xff]  ;;  %v8942_v38 = vld [vmem:[#allocation58_spill] sm:$0xff] }
0x2855   :  { %5871 = vmatmul.f32.vlgmr.msra.gmra.mxu2 %v5518_v57  ;;  %6129 = vmatpush.msrb.mxu3 %v8925_v11 }
0x2856   :  { %6011 = vmatpush.msra.mxu0 %v7296_v4  ;;  %6097 = vmatpush.msrb.mxu2 %v8895_v54  ;;  %v8943_v54 = vld [vmem:[#allocation44_spill] sm:$0xff] }
0x2857   :  { %6070 = vmatpush.msra.mxu1 %v8896_v15  ;;  %5896 = vmatmul.f32.vlgmr.msra.gmra.mxu3 %v5518_v57  ;;  %v8944_v15 = vld [vmem:[#allocation49_spill] sm:$0xff] }
0x2858   :  { %6013 = vmatpush.msra.mxu0 %v8925_v11  ;;  %6100 = vmatpush.msrb.mxu2 %v8926_v19 }
0x2859   :  { %6076 = vmatpush.msra.mxu1 %v8927_v20  ;;  %6131 = vmatpush.msrb.mxu3 %v8928_v26 }
0x285a   :  { %6015 = vmatpush.msra.mxu0 %v8928_v26  ;;  %6103 = vmatpush.msrb.mxu2 %v8929_v29 }
0x285b   :  { %5811 = vmatmul.f32.vlgmr.msrb.gmra.mxu0 %v5519_v28  ;;  %6195 = vmatpush.msrb.mxu1 %v7296_v4  ;;  %v8936_v4 = vld [vmem:[#allocation53_spill] sm:$0xff] }
0x285c   :  { %6106 = vmatpush.msrb.mxu2 %v8930_v36  ;;  %6133 = vmatpush.msrb.mxu3 %v8931_v49 }
0x285d   :  { %6197 = vmatpush.msrb.mxu1 %v8925_v11  ;;  %6017 = vmatpush.msra.mxu0 %v8931_v49 }
0x285e   :  { %6109 = vmatpush.msrb.mxu2 %v8932_v50  ;;  %6135 = vmatpush.msrb.mxu3 %v8933_v56 }
0x285f   :  { %6199 = vmatpush.msrb.mxu1 %v8928_v26  ;;  %6019 = vmatpush.msra.mxu0 %v8933_v56 }
0x2860   :  { %6137 = vmatpush.msrb.mxu3 %v8934_v59  ;;  %6272 = vmatpush.msra.mxu2 %v7435_v9 }
0x2861   :  { %6201 = vmatpush.msrb.mxu1 %v8931_v49  ;;  %6021 = vmatpush.msra.mxu0 %v8934_v59  ;;  %v8945_v49 = vld [vmem:[#allocation28_spill] sm:$0xff] }
0x2862   :  { %6305 = vmatpush.msra.mxu3 %v8936_v4  ;;  %6274 = vmatpush.msra.mxu2 %v7437_v17 }
0x2863   :  { %6158 = vmatpush.msrb.mxu0 %v8935_v60  ;;  %6203 = vmatpush.msrb.mxu1 %v8933_v56 }
0x2864   :  { %6311 = vmatpush.msra.mxu3 %v8938_v40  ;;  %6276 = vmatpush.msra.mxu2 %v7471_v0 }
0x2865   :  { %6162 = vmatpush.msrb.mxu0 %v8937_v16  ;;  %6205 = vmatpush.msrb.mxu1 %v8934_v59 }
0x2866   :  { %6317 = vmatpush.msra.mxu3 %v8940_v46  ;;  %6278 = vmatpush.msra.mxu2 %v7476_v2 }
0x2867   :  { %6166 = vmatpush.msrb.mxu0 %v8939_v41 }
0x2868   :  { %6323 = vmatpush.msra.mxu3 %v8942_v38 }
0x2869   :  { %6170 = vmatpush.msrb.mxu0 %v8941_v24 }
0x286b   :  { %6174 = vmatpush.msrb.mxu0 %v8943_v54 }
0x286d   :  { %6178 = vmatpush.msrb.mxu0 %v8944_v15 }
0x28c0   :  { %v5565_v18 = vpop.f32.mrf.mxu1 }
0x28c8   :  { %v5524_v55 = vpop.f32.mrf.mxu0  ;;  %v5595_v27 = vpop.f32.mrf.mxu2 }
0x28c9   :  { %v5525_v45 = vadd.f32 %v5524_v55, %v7595_v22  ;;  %v5680_v1 = vpop.f32.mrf.mxu1 }
0x28ca   :  { %v5622_v52 = vpop.f32.mrf.mxu3 }
0x28cb   :  { %v5566_v13 = vadd.f32 %v5565_v18, %v5525_v45 }
0x28cd   :  { %v5596_v63 = vadd.f32 %v5595_v27, %v5566_v13 }
0x28cf   :  { %v5623_v43 = vadd.f32 %v5622_v52, %v5596_v63 }
0x28d0   :  { %v5655_v21 = vpop.f32.mrf.mxu0  ;;  %v5741_v30 = vpop.f32.mrf.mxu2 }
0x28d1   :  { %v5656_v58 = vadd.f32 %v5655_v21, %v5623_v43  ;;  %v5839_v61 = vpop.f32.mrf.mxu1 }
0x28d2   :  { %v5782_v37 = vpop.f32.mrf.mxu3 }
0x28d3   :  { %v8470_v25 = vadd.f32 %v5680_v1, %v5656_v58  ;;  %v5783_v14 = vadd.f32 %v5782_v37, %v5741_v30 }
0x28d5   :  { %v5683_v30 = vsel %vm1116_vm10, %v8470_v25, -inf }
0x28d8   :  { %v5812_v51 = vpop.f32.mrf.mxu0  ;;  %v5872_v28 = vpop.f32.mrf.mxu2 }
0x28d9   :  { %v5813_v6 = vadd.f32 %v5812_v51, %v5783_v14 }
0x28da   :  { %v5897_v5 = vpop.f32.mrf.mxu3 }
0x28db   :  { %v5840_v57 = vadd.f32 %v5839_v61, %v5813_v6 }
0x28dd   :  { %v5873_v31 = vadd.f32 %v5872_v28, %v5840_v57 }
0x28df   :  { %v8472_v53 = vadd.f32 %v5897_v5, %v5873_v31 }
0x28e1   :  { %v5901_v11 = vrot.slane %v8472_v53, 1  ;;  %v5902_v19 = vperm.slane %v8472_v53, 0 }
0x28e3   :  { %v5903_v20 = vperm.slane %v5901_v11, 0  ;;  %v5906_v26 = vadd.f32 %v5902_v19, %v8794_v44 }
0x28e5   :  { %6754 = vtanh.f32 %v5906_v26  ;;  %v5907_v29 = vadd.f32 %v5903_v20, %v8918_v8 }
0x28e7   :  { %6756 = vtanh.f32 %v5907_v29 }
0x28eb   :  { %v6755_v36 = vpop.eup %6754 }
0x28ec   :  { %v5910_v50 = vmul.f32 %v6755_v36, %v8945_v49 }
0x28ed   :  { %v6757_v56 = vpop.eup %6756 }
0x28ee   :  { %v5912_v59 = vsel %vm126_vm0, %v5910_v50, 0.0  ;;  %v5911_v60 = vmul.f32 %v6757_v56, %v8945_v49  ;;  %v6808_v49 = vld [vmem:[#allocation2] sm:$0xff] }
0x28ef   :  { %5913 = vadd.xlane.f32.xlu2 %v5912_v59  ;;  %v6528_v59 = vadd.s32 4294967248, %v8766_v48 }
0x28f0   :  { %v5915_v4 = vsel %vm126_vm0, %v5911_v60, 0.0 }
0x28f1   :  { %5916 = vadd.xlane.f32.xlu0 %v5915_v4 }
0x2962   :  { %v5914_v16 = vpop.xlane.xlu2 %5913 }
0x2963   :  { %v5920_v44 = vperm.slane %v5914_v16, %v8766_v48 }
0x2964   :  { %v5917_v40 = vpop.xlane.xlu0 %5916 }
0x2965   :  { %v5921_v41 = vperm.slane %v5917_v40, %v8766_v48 }
0x2967   :  { %v5922_v8 = vsel %vm570_vm1, %v5921_v41, %v5920_v44  ;;  %v8946_v44 = vld [vmem:[#allocation46_spill] sm:$0xff] }
0x2968   :  { %v5924_v46 = vsel %vm573_vm2, %v5922_v8, -inf  ;;  %v6530_v41 = vperm.slane %v8946_v44, %v6528_v59 }
0x2969   :  { %5925 = vmax.xlane.f32.xlu1 %v5924_v46 }
0x29dc   :  { %v5926_v24 = vpop.xlane.xlu1 %5925 }
0x29dd   :  { %v5928_v38 = vperm.slane %v5926_v24, 0  ;;  %v5929_v54 = vperm.slane %v5926_v24, 1 }
0x29df   :  { %v5932_v15 = vsub.f32 %v5914_v16, %v5928_v38  ;;  %v5933_v18 = vsub.f32 %v5917_v40, %v5929_v54  ;;  %v6529_v16 = vperm.slane %v8360_v12, %v6528_v59  ;;  %v6533_v40 = vadd.s32 4294967240, %v8766_v48  ;;  %v8947_v12 = vld [vmem:[#allocation43_spill] sm:$0xff] }
0x29e1   :  { %v5934_v55 = vmul.f32 1.442695, %v5932_v15  ;;  %v5936_v27 = vmul.f32 1.442695, %v5933_v18  ;;  %v6531_v38 = vsel %vm570_vm1, %v6530_v41, %v6529_v16  ;;  %v6809_v18 = vld [vmem:[#allocation2 + $0x8] sm:$0xff] }
0x29e3   :  { %6758 = vpow2.f32 %v5934_v55 }
0x29e4   :  { %6760 = vpow2.f32 %v5936_v27 }
0x29e9   :  { %v6759_v45 = vpop.eup %6758 }
0x29ea   :  { %v6761_v52 = vpop.eup %6760  ;;  %5941 = vperm.xlu2 %6640, %v6759_v45  }
0x29eb   :  { %5944 = vperm.xlu0 %6641, %v6761_v52  }
0x2a44   :  { %v5942_v13 = vpop.permute.xlu2 %5941 }
0x2a45   :  { %v5946_v43 = vperm.slane %v5942_v13, %v8766_v48  ;;  %v6546_v13 = vsel %vm655_vm5, %v8947_v12, %v6531_v38  ;;  %v8949_v12 = vld [vmem:[#allocation52_spill] sm:$0xff] }
0x2a5d   :  { %v5945_v63 = vpop.permute.xlu0 %5944 }
0x2a5e   :  { %v5947_v1 = vperm.slane %v5945_v63, %v8766_v48 }
0x2a60   :  { %v5948_v21 = vsel %vm570_vm1, %v5947_v1, %v5946_v43 }
0x2a61   :  { %v5950_v58 = vsel %vm573_vm2, %v5948_v21, 0.0 }
0x2a62   :  { %5951 = vadd.xlane.f32.xlu1 %v5950_v58 }
0x2a6a   :  { %5684 = vmax.xlane.f32.xlu1 %v5683_v30 }
0x2ad5   :  { %v5952_v37 = vpop.xlane.xlu1 %5951 }
0x2ad6   :  { %6762 = vrcp.f32 %v5952_v37 }
0x2adc   :  { %v6763_v14 = vpop.eup %6762 }
0x2add   :  { %v5954_v51 = vmul.f32 %v6763_v14, %v5952_v37  ;;  %v8492_v6 = vpop.xlane.xlu1 %5684 }
0x2ade   :  { %vm5686_vm3 = vcmp.eq.f32.partialorder %v8470_v25, %v8492_v6 }
0x2adf   :  { %v5955_v61 = vsub.f32 2.0, %v5954_v51  ;;  %v5687_v57 = vsel %vm5686_vm3, %v8766_v48, 16  ;;  %vm6496_vm3 = vcmask 916480  }
0x2ae0   :  { %v5688_v28 = vsel %vm1116_vm10, %v5687_v57, 2147483647 }
0x2ae1   :  { %v5956_v31 = vmul.f32 %v6763_v14, %v5955_v61  ;;  %v5690_v5 = vshra.s32 %v5688_v28, 16  ;;  %v5689_v4 = vand.u32 65535, %v5688_v28 }
0x2ae3   :  { %v5692_v11 = vcvt.s32.f32 %v5690_v5  ;;  %v5958_v19 = vperm.slane %v5956_v31, 0  ;;  %v5959_v20 = vperm.slane %v5956_v31, 1  ;;  %v5691_v24 = vcvt.s32.f32 %v5689_v4 }
0x2ae4   :  { %v6234_v5 = vadd.f32 %v8472_v53, %v8924_v35 }
0x2ae5   :  { %5693 = vmin.xlane.f32.xlu0 %v5692_v11  ;;  %v5962_v26 = vmul.f32 %v6759_v45, %v5958_v19  ;;  %v5963_v29 = vmul.f32 %v6761_v52, %v5959_v20 }
0x2ae7   :  { %5966 = vperm.xlu2 %6640, %v5962_v26   ;;  %5971 = vperm.xlu1 %6639, %v5963_v29  }
0x2b41   :  { %v5967_v36 = vpop.permute.xlu2 %5966 }
0x2b42   :  { %v5974_v50 = vmul.f32 %v6808_v49, %v5967_v36  ;;  %v6534_v15 = vperm.slane %v5967_v36, %v6533_v40 }
0x2b44   :  { %v5976_v56 = vsel %vm126_vm0, %v5974_v50, 0.0 }
0x2b45   :  { %v5977_v60 = vrot.slane %v5976_v56, 4 }
0x2b47   :  { %v5978_v8 = vadd.f32 %v5977_v60, %v5976_v56 }
0x2b49   :  { %v5979_v52 = vrot.slane %v5978_v8, 2 }
0x2b4b   :  { %v5980_v58 = vadd.f32 %v5979_v52, %v5978_v8  ;;  %v8948_v52 = vld [vmem:[#allocation55_spill] sm:$0xff] }
0x2b4d   :  { %v5981_v51 = vrot.slane %v5980_v58, 1 }
0x2b4f   :  { %v5982_v57 = vadd.f32 %v5981_v51, %v5980_v58 }
0x2b58   :  { %v5694_v46 = vpop.xlane.xlu0 %5693 }
0x2b59   :  { %v5972_v54 = vpop.permute.xlu1 %5971  ;;  %vm5695_vm2 = vcmp.eq.f32.partialorder %v5692_v11, %v5694_v46  ;;  %v5700_v19 = vcvt.f32.s32 %v5694_v46 }
0x2b5a   :  { %v5975_v55 = vmul.f32 %v6809_v18, %v5972_v54  ;;  %v6535_v27 = vperm.slane %v5972_v54, %v6533_v40  ;;  %v5696_v45 = vsel %vm5695_vm2, %v5691_v24, inf }
0x2b5b   :  { %5697 = vmin.xlane.f32.xlu2 %v5696_v45  ;;  %v5701_v26 = vshll.u32 %v5700_v19, 16 }
0x2b5c   :  { %v5983_v63 = vsel %vm126_vm0, %v5975_v55, 0.0  ;;  %v6536_v43 = vsel %vm570_vm1, %v6535_v27, %v6534_v15 }
0x2b5d   :  { %v5984_v1 = vrot.slane %v5983_v63, 4  ;;  %v6548_v21 = vsel %vm6547_vm6, %v6546_v13, %v6536_v43  ;;  %v1901_v13 = vsub.f32 %v8949_v12, %v8948_v52  ;;  %v8950_v43 = vld [vmem:[#allocation60_spill] sm:$0xff]  ;;  %v8959_v52 = vld [vmem:[#allocation29_spill] sm:$0xff] }
0x2b5e   :  { %6550 = vst.msk [vmem:[#allocation16] sm:$0x3] %vm6549_vm7, %v6548_v21 }
0x2b5f   :  { %v5985_v30 = vadd.f32 %v5984_v1, %v5983_v63  ;;  %v1902_v63 = vmul.f32 1.442695, %v1901_v13  ;;  %v8951_v1 = vld [vmem:[#allocation42_spill] sm:$0xff] }
0x2b60   :  { %v8541_v21 = vsub.f32 %v8951_v1, %v8950_v43 }
0x2b61   :  { %v5986_v37 = vrot.slane %v5985_v30, 2 }
0x2b62   :  { %v4185_v58 = vmul.f32 1.442695, %v8541_v21 }
0x2b63   :  { %v5987_v14 = vadd.f32 %v5986_v37, %v5985_v30 }
0x2b65   :  { %v5988_v61 = vrot.slane %v5987_v14, 1 }
0x2b67   :  { %v5989_v28 = vadd.f32 %v5988_v61, %v5987_v14 }
0x2b69   :  { %v5992_v31 = vsel %vm570_vm1, %v5989_v28, %v5982_v57 }
0x2b6a   :  { %5993 = vrot.lane.b32.xlu1 %v5992_v31, %s7045_s26  ;;  %v8952_v31 = vld [vmem:[#allocation56_spill] sm:$0xff] }
0x2b72   :  { %6211 = vrot.lane.b32.xlu1 %v8472_v53, %s7049_s4 }
0x2b7a   :  { %6236 = vrot.lane.b32.xlu1 %v6234_v5, %s7051_s5  ;;  %v8953_v5 = vld [vmem:[#allocation26_spill] sm:$0xff] }
0x2bce   :  { %v5698_v11 = vpop.xlane.xlu2 %5697 }
0x2bcf   :  { %v5699_v20 = vcvt.f32.s32 %v5698_v11  ;;  %v8549_v11 = vsub.f32 %v8953_v5, %v8952_v31 }
0x2bd1   :  { %v5702_v29 = vadd.s32 %v5701_v26, %v5699_v20  ;;  %v2663_v19 = vmul.f32 1.442695, %v8549_v11  ;;  %v8554_v20 = vsub.f32 %v8470_v25, %v8492_v6 }
0x2bd3   :  { %vm5703_vm8 = vcmp.eq.s32.totalorder %v8766_v48, %v5702_v29  ;;  %v5707_v26 = vmul.f32 1.442695, %v8554_v20 }
0x2bd4   :  { %v6616_v36 = vsel %vm5703_vm8, 1.0, %v8773_v23 }
0x2bdc   :  { %v5994_v49 = vpop.permute.xlu1 %5993 }
0x2bdd   :  { %v5996_v50 = vsel %vm646_vm4, %v6616_v36, %v5994_v49 }
0x2bde   :  { %v5998_v56 = vsel %vm655_vm5, %v5996_v50, 0 }
0x2bdf   :  { %v6022_v59 = vand.u32 4294901760, %v5998_v56 }
0x2be1   :  { %v6023_v60 = vsub.f32 %v5998_v56, %v6022_v59  ;;  %6078 = vmatmul.f32.vlgmr.msra.gmra.mxu1 %v6022_v59 }
0x2be2   :  { %6372 = vmatpush.msra.mxu1 %v7435_v9 }
0x2be3   :  { %v6024_v35 = vand.u32 4294901760, %v6023_v60  ;;  %6112 = vmatmul.f32.vlgmr.msrb.gmra.mxu2 %v6023_v60 }
0x2be4   :  { %6374 = vmatpush.msra.mxu1 %v7437_v17  ;;  %6401 = vmatpush.msrb.mxu2 %v7448_v39  ;;  %v6212_v40 = vpop.permute.xlu1 %6211 }
0x2be5   :  { %v6025_v53 = vsub.f32 %v6023_v60, %v6024_v35  ;;  %6141 = vmatmul.f32.vlgmr.msrb.gmra.mxu3 %v6024_v35 }
0x2be6   :  { %6376 = vmatpush.msra.mxu1 %v7471_v0  ;;  %6432 = vmatpush.msrb.mxu3 %v7435_v9 }
0x2be7   :  { %v6026_v48 = vand.u32 4294901760, %v6025_v53  ;;  %6405 = vmatpush.msrb.mxu2 %v7451_v32 }
0x2be8   :  { %6378 = vmatpush.msra.mxu1 %v7476_v2  ;;  %6434 = vmatpush.msrb.mxu3 %v7437_v17 }
0x2be9   :  { %6027 = vmatmul.f32.vlgmr.msra.gmra.mxu0 %v6026_v48  ;;  %6207 = vmatmul.f32.vlgmr.msrb.gmra.mxu1 %v6022_v59 }
0x2bea   :  { %6343 = vmatpush.msra.mxu0 %v7440_v33  ;;  %6436 = vmatpush.msrb.mxu3 %v7471_v0 }
0x2beb   :  { %6409 = vmatpush.msrb.mxu2 %v7481_v62 }
0x2bec   :  { %6346 = vmatpush.msra.mxu0 %v7443_v34  ;;  %6438 = vmatpush.msrb.mxu3 %v7476_v2  ;;  %v6237_v55 = vpop.permute.xlu1 %6236 }
0x2bed   :  { %6413 = vmatpush.msrb.mxu2 %v7493_v47 }
0x2bee   :  { %6349 = vmatpush.msra.mxu0 %v7474_v3 }
0x2bf0   :  { %6352 = vmatpush.msra.mxu0 %v8799_v7 }
0x2bf1   :  { %6180 = vmatmul.f32.vlgmr.msrb.gmra.mxu0 %v6022_v59 }
0x2c5e   :  { %v6079_v9 = vpop.f32.mrf.mxu1 }
0x2c66   :  { %v6028_v17 = vpop.f32.mrf.mxu0  ;;  %v6113_v32 = vpop.f32.mrf.mxu2 }
0x2c67   :  { %v6029_v39 = vadd.f32 %v6028_v17, %v8775_v42  ;;  %v6208_v16 = vpop.f32.mrf.mxu1 }
0x2c68   :  { %v6142_v23 = vpop.f32.mrf.mxu3 }
0x2c69   :  { %v6080_v33 = vadd.f32 %v6079_v9, %v6029_v39 }
0x2c6b   :  { %v6114_v0 = vadd.f32 %v6113_v32, %v6080_v33 }
0x2c6d   :  { %v6143_v62 = vadd.f32 %v6142_v23, %v6114_v0 }
0x2c6e   :  { %v6181_v4 = vpop.f32.mrf.mxu0 }
0x2c6f   :  { %v6182_v34 = vadd.f32 %v6181_v4, %v6143_v62 }
0x2c71   :  { %v6209_v2 = vadd.f32 %v6208_v16, %v6182_v34 }
0x2c73   :  { %v6214_v47 = vadd.f32 %v6212_v40, %v6209_v2  ;;  %v8955_v40 = vld [vmem:[#allocation59_spill] sm:$0xff] }
0x2c75   :  { %v6617_v44 = vmul.f32 -1.442695, %v6214_v47 }
0x2c77   :  { %6764 = vpow2.f32 %v6617_v44 }
0x2c7d   :  { %v6765_v3 = vpop.eup %6764 }
0x2c7e   :  { %v6218_v7 = vadd.f32 1.0, %v6765_v3 }
0x2c80   :  { %6766 = vrcp.f32 %v6218_v7  ;;  %v6230_v42 = vand.u32 2147483648, %v6218_v7  ;;  %v6228_v38 = vand.u32 2147483647, %v6218_v7  ;;  %vm6224_vm9 = vweird.f32 %v6218_v7 }
0x2c81   :  { %6768 = vpow2.f32 %v1902_v63 }
0x2c82   :  { %v6231_v15 = vor.u32 1.1754944e-38, %v6230_v42  ;;  %vm6229_vm12 = vcmp.eq.f32.partialorder %v6228_v38, 8.507059e+37  ;;  %6770 = vpow2.f32 %v4185_v58 }
0x2c86   :  { %v6767_v41 = vpop.eup %6766 }
0x2c87   :  { %v6220_v8 = vmul.f32 %v6767_v41, %v6218_v7  ;;  %vm6225_vm1 = vweird.f32 %v6767_v41  ;;  %v6769_v30 = vpop.eup %6768 }
0x2c88   :  { %vm6226_vm11 = vmor %vm6224_vm9, %vm6225_vm1  ;;  %v1904_v37 = vsel %vm1116_vm10, %v6769_v30, 0.0  ;;  %v6771_v14 = vpop.eup %6770 }
0x2c89   :  { %v6221_v46 = vsub.f32 1.0, %v6220_v8  ;;  %v4187_v51 = vsel %vm1116_vm10, %v6771_v14, 0.0 }
0x2c8b   :  { %v6222_v24 = vmul.f32 %v6767_v41, %v6221_v46 }
0x2c8d   :  { %v6223_v54 = vadd.f32 %v6767_v41, %v6222_v24 }
0x2c8f   :  { %v6227_v18 = vsel %vm6226_vm11, %v6767_v41, %v6223_v54  ;;  %v8956_v54 = vld [vmem:[#allocation34_spill] sm:$0xff] }
0x2c90   :  { %v6232_v27 = vsel %vm6229_vm12, %v6231_v15, %v6227_v18  ;;  %v8957_v15 = vld [vmem:[#allocation45_spill] sm:$0xff] }
0x2c91   :  { %v6239_v45 = vmul.f32 %v6237_v55, %v6232_v27  ;;  %v6246_v25 = vsub.f32 1.0, %v6232_v27  ;;  %v6252_v53 = vmul.f32 %v6232_v27, %v8404_v10  ;;  %v4945_v18 = vsub.f32 %v8957_v15, %v8956_v54 }
0x2c93   :  { %6241 = vrot.lane.b32.xlu0 %v6239_v45, %s7052_s13  ;;  %v8958_v45 = vld [vmem:[#allocation25_spill] sm:$0xff] }
0x2c94   :  { %v8571_v12 = vsub.f32 %v8959_v52, %v8958_v45 }
0x2c96   :  { %v1141_v63 = vmul.f32 1.442695, %v8571_v12 }
0x2cbd   :  { %1905 = vadd.xlane.f32.xlu0 %v1904_v37 }
0x2cc5   :  { %4188 = vadd.xlane.f32.xlu0 %v4187_v51 }
0x2d05   :  { %v6242_v61 = vpop.permute.xlu0 %6241 }
0x2d06   :  { %v6244_v57 = vadd.f32 %v6242_v61, %v6209_v2  ;;  %v8954_v2 = vld [vmem:[#allocation24_spill] sm:$0xff] }
0x2d07   :  { %v3423_v47 = vsub.f32 %v8955_v40, %v8954_v2 }
0x2d08   :  { %6772 = vtanh.f32 %v6244_v57 }
0x2d09   :  { %6774 = vpow2.f32 %v2663_v19  ;;  %v3424_v8 = vmul.f32 1.442695, %v3423_v47 }
0x2d0a   :  { %6776 = vpow2.f32 %v5707_v26 }
0x2d0e   :  { %v6773_v28 = vpop.eup %6772 }
0x2d0f   :  { %6248 = vrot.lane.b32.xlu2 %v6773_v28, %s7049_s4  ;;  %v6775_v29 = vpop.eup %6774 }
0x2d10   :  { %v2665_v36 = vsel %vm1116_vm10, %v6775_v29, 0.0  ;;  %v6777_v49 = vpop.eup %6776 }
0x2d11   :  { %v5709_v50 = vsel %vm1116_vm10, %v6777_v49, 0.0 }
0x2d30   :  { %v1906_v56 = vpop.xlane.xlu0 %1905 }
0x2d31   :  { %6778 = vlog2.f32 %v1906_v56 }
0x2d32   :  { %6780 = vpow2.f32 %v3424_v8 }
0x2d37   :  { %v6779_v59 = vpop.eup %6778 }
0x2d38   :  { %2666 = vadd.xlane.f32.xlu2 %v2665_v36  ;;  %v1908_v60 = vmul.f32 0.6931472, %v6779_v59  ;;  %v6781_v27 = vpop.eup %6780  ;;  %v4189_v59 = vpop.xlane.xlu0 %4188 }
0x2d3a   :  { %v1909_v35 = vsub.f32 %v1901_v13, %v1908_v60  ;;  %v3426_v13 = vsel %vm1116_vm10, %v6781_v27, 0.0 }
0x2d40   :  { %5710 = vadd.xlane.f32.xlu2 %v5709_v50 }
0x2d58   :  { %6460 = vrot.lane.b32.xlu2 %v1909_v35, %s7045_s26 }
0x2d69   :  { %v6249_v6 = vpop.permute.xlu2 %6248 }
0x2d6a   :  { %v6251_v48 = vmul.f32 %v6249_v6, %v6246_v25 }
0x2d6c   :  { %v6253_v9 = vadd.f32 %v6252_v53, %v6251_v48 }
0x2d6e   :  { %6255 = vrot.lane.b32.xlu1 %v6253_v9, %s7049_s4 }
0x2dab   :  { %v2667_v37 = vpop.xlane.xlu2 %2666 }
0x2db3   :  { %v5711_v28 = vpop.xlane.xlu2 %5710 }
0x2de0   :  { %v6256_v17 = vpop.permute.xlu1 %6255 }
0x2de1   :  { %v6257_v39 = vsel %vm126_vm0, %v6256_v17, 0  ;;  %6458 = vst.msk [vmem:[#allocation14] sm:$0x3] %vm6457_vm13, %v6256_v17 }
0x2de2   :  { %v6279_v33 = vand.u32 4294901760, %v6257_v39  ;;  %6572 = dma.vmem_to_hbm [thread:$0]  %s6568_s17, 32, %s6570_s19, [#allocation15]  }
0x2de3   :  { %6583 = dma.vmem_to_hbm [thread:$0]  %s6579_s21, 32, %s6581_s3, [#allocation15]  }
0x2de4   :  { %v6280_v32 = vsub.f32 %v6257_v39, %v6279_v33  ;;  %6325 = vmatmul.f32.vlgmr.msra.gmra.mxu3 %v6279_v33 }
0x2de6   :  { %v6281_v0 = vand.u32 4294901760, %v6280_v32  ;;  %6355 = vmatmul.f32.vlgmr.msra.gmra.mxu0 %v6280_v32 }
0x2de8   :  { %v6282_v23 = vsub.f32 %v6280_v32, %v6281_v0  ;;  %6382 = vmatmul.f32.vlgmr.msra.gmra.mxu1 %v6281_v0 }
0x2dea   :  { %v6283_v62 = vand.u32 4294901760, %v6282_v23 }
0x2dec   :  { %6284 = vmatmul.f32.vlgmr.msra.gmra.mxu2 %v6283_v62  ;;  %6440 = vmatmul.f32.vlgmr.msrb.gmra.mxu3 %v6279_v33 }
0x2df4   :  { %6415 = vmatmul.f32.vlgmr.msrb.gmra.mxu2 %v6279_v33 }
0x2e63   :  { %v6356_v44 = vpop.f32.mrf.mxu0 }
0x2e65   :  { %v6383_v7 = vpop.f32.mrf.mxu1 }
0x2e67   :  { %v6326_v10 = vpop.f32.mrf.mxu3 }
0x2e6f   :  { %v6285_v4 = vpop.f32.mrf.mxu2  ;;  %v6441_v24 = vpop.f32.mrf.mxu3 }
0x2e70   :  { %v6286_v34 = vadd.f32 %v6285_v4, %v7595_v22  ;;  %v4946_v22 = vmul.f32 1.442695, %v4945_v18  ;;  %v6461_v4 = vpop.permute.xlu2 %6460 }
0x2e72   :  { %v6327_v16 = vadd.f32 %v6326_v10, %v6286_v34  ;;  %6782 = vpow2.f32 %v4946_v22 }
0x2e73   :  { %6784 = vpow2.f32 %v1141_v63 }
0x2e74   :  { %v6357_v3 = vadd.f32 %v6356_v44, %v6327_v16 }
0x2e76   :  { %v6384_v41 = vadd.f32 %v6383_v7, %v6357_v3 }
0x2e77   :  { %v6416_v46 = vpop.f32.mrf.mxu2 }
0x2e78   :  { %v6417_v42 = vadd.f32 %v6416_v46, %v6384_v41  ;;  %v6783_v43 = vpop.eup %6782 }
0x2e79   :  { %v4948_v1 = vsel %vm1116_vm10, %v6783_v43, 0.0  ;;  %v6785_v58 = vpop.eup %6784 }
0x2e7a   :  { %v6442_v38 = vadd.f32 %v6441_v24, %v6417_v42  ;;  %v1143_v30 = vsel %vm1116_vm10, %v6785_v58, 0.0 }
0x2e7c   :  { %v6444_v55 = vsel %vm1116_vm10, %v6442_v38, -inf }
0x2e7d   :  { %6445 = vmax.xlane.f32.xlu1 %v6444_v55 }
0x2e85   :  { %3427 = vadd.xlane.f32.xlu1 %v3426_v13 }
0x2e8d   :  { %4949 = vadd.xlane.f32.xlu1 %v4948_v1 }
0x2e95   :  { %1144 = vadd.xlane.f32.xlu1 %v1143_v30 }
0x2ef0   :  { %v6446_v14 = vpop.xlane.xlu1 %6445 }
0x2ef1   :  { %v6447_v51 = vsub.f32 %v6442_v38, %v6446_v14 }
0x2ef3   :  { %v6448_v61 = vmul.f32 1.442695, %v6447_v51 }
0x2ef5   :  { %6786 = vpow2.f32 %v6448_v61 }
0x2ef8   :  { %v3428_v57 = vpop.xlane.xlu1 %3427 }
0x2ef9   :  { %6788 = vlog2.f32 %v3428_v57 }
0x2efa   :  { %6790 = vlog2.f32 %v5711_v28 }
0x2efb   :  { %v6787_v31 = vpop.eup %6786 }
0x2efc   :  { %v6450_v5 = vsel %vm1116_vm10, %v6787_v31, 0.0  ;;  %vm6490_vm10 = vcmask 523264  }
0x2efd   :  { %6451 = vadd.xlane.f32.xlu0 %v6450_v5 }
0x2eff   :  { %v6789_v19 = vpop.eup %6788 }
0x2f00   :  { %v3430_v26 = vmul.f32 0.6931472, %v6789_v19  ;;  %v4950_v29 = vpop.xlane.xlu1 %4949  ;;  %v6791_v49 = vpop.eup %6790 }
0x2f01   :  { %6792 = vlog2.f32 %v4950_v29  ;;  %v5713_v50 = vmul.f32 0.6931472, %v6791_v49 }
0x2f02   :  { %6794 = vlog2.f32 %v2667_v37  ;;  %v3431_v36 = vsub.f32 %v3423_v47, %v3430_v26 }
0x2f03   :  { %6796 = vlog2.f32 %v4189_v59  ;;  %v5714_v25 = vsub.f32 %v8554_v20, %v5713_v50 }
0x2f04   :  { %6468 = vrot.lane.b32.xlu1 %v3431_v36, %s7053_s14 }
0x2f07   :  { %v6793_v56 = vpop.eup %6792 }
0x2f08   :  { %v6795_v60 = vpop.eup %6794  ;;  %v4952_v35 = vmul.f32 0.6931472, %v6793_v56  ;;  %v1145_v32 = vpop.xlane.xlu1 %1144 }
0x2f09   :  { %v2669_v53 = vmul.f32 0.6931472, %v6795_v60  ;;  %v6797_v9 = vpop.eup %6796 }
0x2f0a   :  { %v4953_v6 = vsub.f32 %v4945_v18, %v4952_v35  ;;  %v4191_v17 = vmul.f32 0.6931472, %v6797_v9 }
0x2f0b   :  { %v2670_v48 = vsub.f32 %v8549_v11, %v2669_v53 }
0x2f0c   :  { %6480 = vrot.lane.b32.xlu1 %v5714_v25, %s7049_s4  ;;  %6476 = vrot.lane.b32.xlu2 %v4953_v6, %s7054_s15  ;;  %v4192_v39 = vsub.f32 %v8541_v21, %v4191_v17 }
0x2f11   :  { %6464 = vrot.lane.b32.xlu0 %v2670_v48, %s7051_s5 }
0x2f19   :  { %6472 = vrot.lane.b32.xlu0 %v4192_v39, %s7052_s13 }
0x2f66   :  { %v6477_v3 = vpop.permute.xlu2 %6476 }
0x2f70   :  { %v6452_v20 = vpop.xlane.xlu0 %6451 }
0x2f71   :  { %6798 = vlog2.f32 %v6452_v20 }
0x2f72   :  { %6800 = vlog2.f32 %v1145_v32 }
0x2f76   :  { %v6469_v34 = vpop.permute.xlu1 %6468 }
0x2f77   :  { %v6799_v21 = vpop.eup %6798 }
0x2f78   :  { %v6454_v11 = vmul.f32 0.6931472, %v6799_v21  ;;  %v6801_v0 = vpop.eup %6800 }
0x2f79   :  { %v1147_v23 = vmul.f32 0.6931472, %v6801_v0 }
0x2f7a   :  { %v6455_v33 = vsub.f32 %v6447_v51, %v6454_v11 }
0x2f7b   :  { %v1148_v10 = vsub.f32 %v8571_v12, %v1147_v23 }
0x2f7c   :  { %6484 = vrot.lane.b32.xlu0 %v6455_v33, %s7057_s24 }
0x2f7d   :  { %v6487_v16 = vsel %vm646_vm4, %v1148_v10, %v6461_v4 }
0x2f7e   :  { %v6481_v41 = vpop.permute.xlu1 %6480 }
0x2f83   :  { %v6465_v62 = vpop.permute.xlu0 %6464 }
0x2f84   :  { %v6488_v2 = vsel %vm126_vm0, %v6487_v16, %v6465_v62 }
0x2f85   :  { %v6489_v47 = vsel %vm655_vm5, %v6488_v2, %v6469_v34 }
0x2f8b   :  { %v6473_v40 = vpop.permute.xlu0 %6472 }
0x2f8c   :  { %v6491_v44 = vsel %vm6490_vm10, %v6489_v47, %v6473_v40 }
0x2f8d   :  { %v6493_v7 = vsel %vm6492_vm14, %v6491_v44, %v6477_v3 }
0x2f8e   :  { %v6495_v8 = vsel %vm6494_vm15, %v6493_v7, %v6481_v41 }
0x2fee   :  { %v6485_v46 = vpop.permute.xlu0 %6484 }
0x2fef   :  { %v6497_v42 = vsel %vm6496_vm3, %v6495_v8, %v6485_v46 }
0x2ff0   :  { %6498 = vst [vmem:[#allocation13] sm:$0x3] %v6497_v42 }
0x2ff1   :  { %6561 = dma.vmem_to_hbm [thread:$0]  %s6557_s8, 32, %s6559_s0, [#allocation4]  }
0x2ff2   :  { %7034 = dma.done.wait [#allocation4], 32  }
0x2ff3   :  { %7035 = vsyncadd [#allocation4], 4294967264 }
0x2ff4   :  { %7036 = dma.done.wait [#allocation15], 64  }
0x2ff5   :  { %7037 = vsyncadd [#allocation15], 4294967232 }
0x2ff6   :  { %6596 = vsyncpa [#allocation3], 1 }
0x2ff7   :  { %6597 = vsyncpa [#allocation6], 1 }
0x2ff8   :  { %6598 = vsyncpa [#allocation9], 1 }
0x2ff9   :  { %6599 = vsyncpa [#allocation12], 1 }
0x2ffa   :  { %6600 = vsyncpa [#allocation4], 1 }
0x2ffb   :  { %6601 = vsyncpa [#allocation15], 1 }

</bundles_post_ra>
